<compile_context>
chip_gen: v7x
topology: tpu7x:2x2x1
jax: 0.10.0
libtpu: 0.0.40
codegen_flags: <defaults>
</compile_context>

<pallas_src>
import functools

import jax
import jax.numpy as jnp
from jax.experimental import pallas as pl
from jax.experimental.pallas import tpu as pltpu

LANE = 128      # lane width (last dim)
SUBLANE = 8     # sublane granularity (second-to-last dim)


# ----------------------------- fused Pallas kernel ---------------------------

def _ae_fused_kernel(x_ref, w_ref, b_ref, g_ref, beta_ref, o_ref, h_scratch,
                     *, acts, relu_slope, eps, batch, feat, batch_pad):
    """Runs the whole AE (all layers, statically unrolled) on a VMEM-resident
    activation slab of shape (batch_pad, 128)."""
    # --- in-kernel zero-padding of the (B, F) input to (B_pad, 128) ----------
    if batch == batch_pad and feat == LANE:
        h = x_ref[...]
    else:
        h_scratch[...] = jnp.zeros_like(h_scratch)
        h_scratch[0:batch, 0:feat] = x_ref[...]     # masked partial store
        h = h_scratch[...]

    inv_b = 1.0 / float(batch)

    if batch_pad != batch:
        row_ids = jax.lax.broadcasted_iota(jnp.int32, (batch_pad, 1), 0)
        row_mask = (row_ids < batch).astype(jnp.float32)
    else:
        row_mask = None                              # no masking cost when B % 8 == 0

    for l, act in enumerate(acts):                   # static unroll over layers
        # Linear: weights pre-transposed to (f_in, f_out), zero-padded to 128x128.
        h = jnp.dot(h, w_ref[l], preferred_element_type=jnp.float32) + b_ref[l]
        if act:
            # LeakyReLU (slope in [0,1]): 1 vmul + 1 vmax instead of cmp+select.
            h = jnp.maximum(h, relu_slope * h)

        # BatchNorm1d (training mode), one-pass statistics.
        hm = h if row_mask is None else h * row_mask
        s1 = jnp.sum(hm, axis=0, keepdims=True)            # (1, 128)
        s2 = jnp.sum(hm * hm, axis=0, keepdims=True)       # (1, 128), overlaps s1
        mean = s1 * inv_b
        var = jnp.maximum(s2 * inv_b - mean * mean, 0.0)   # guard cancellation
        inv = jax.lax.rsqrt(var + eps)                     # EUP, effectively free
        scale = g_ref[l] * inv                             # (1, 128)
        shift = beta_ref[l] - mean * scale                 # (1, 128)
        h = h * scale + shift                              # folded affine

    o_ref[...] = h.astype(o_ref.dtype)


@functools.partial(jax.jit,
                   static_argnames=("acts", "relu_slope", "eps", "out_features"))
def ae_forward_fused(x, w_stack, b_stack, g_stack, beta_stack, *,
                     acts, relu_slope=0.01, eps=1e-5, out_features=None):
    """Single fused pallas_call for the entire AE forward pass."""
    B, F = x.shape
    B_pad = ((B + SUBLANE - 1) // SUBLANE) * SUBLANE

    kernel = functools.partial(_ae_fused_kernel, acts=acts,
                               relu_slope=relu_slope, eps=eps,
                               batch=B, feat=F, batch_pad=B_pad)

    out = pl.pallas_call(
        kernel,
        out_shape=jax.ShapeDtypeStruct((B_pad, LANE), jnp.float32),
        in_specs=[
            pl.BlockSpec(memory_space=pltpu.VMEM),   # x      (B, F) natural shape
            pl.BlockSpec(memory_space=pltpu.VMEM),   # W      (L, 128, 128) ~1.25 MiB
            pl.BlockSpec(memory_space=pltpu.VMEM),   # bias   (L, 1, 128)
            pl.BlockSpec(memory_space=pltpu.VMEM),   # gamma  (L, 1, 128)
            pl.BlockSpec(memory_space=pltpu.VMEM),   # beta   (L, 1, 128)
        ],
        out_specs=pl.BlockSpec(memory_space=pltpu.VMEM),
        scratch_shapes=[pltpu.VMEM((B_pad, LANE), jnp.float32)],
    )(x.astype(jnp.float32), w_stack, b_stack, g_stack, beta_stack)

    return out[:B, :out_features]


# ------------------------- AE parameter construction -------------------------

def ae_hidden_sizes(in_size, num_layer=9, rep_dim=20):
    diff = (in_size - rep_dim) / (num_layer + 1)
    return ([in_size]
            + [int(in_size - diff * (i + 1)) for i in range(num_layer)]
            + [rep_dim])


def ae_layer_specs(in_size, num_layer=9, rep_dim=20):
    """List of (f_in, f_out, act) for encoder followed by decoder."""
    hs = ae_hidden_sizes(in_size, num_layer, rep_dim)
    specs = []
    for i in range(len(hs) - 2):                 # encoder
        specs.append((hs[i], hs[i + 1], True))
    specs.append((hs[-2], hs[-1], False))
    for i in reversed(range(2, len(hs))):        # decoder
        specs.append((hs[i], hs[i - 1], True))
    specs.append((hs[1], hs[0], False))
    return specs


def init_ae_params(key, specs):
    """Linear weight/bias ~ U(-1/sqrt(fan_in), +); BN gamma=1, beta=0."""
    params = []
    for (f_in, f_out, act) in specs:
        key, kw, kb = jax.random.split(key, 3)
        bound = 1.0 / (f_in ** 0.5)
        w = jax.random.uniform(kw, (f_out, f_in), jnp.float32, -bound, bound)
        b = jax.random.uniform(kb, (f_out,), jnp.float32, -bound, bound)
        gamma = jnp.ones((f_out,), jnp.float32)
        beta = jnp.zeros((f_out,), jnp.float32)
        params.append((w, b, gamma, beta, act))
    return params


def pack_ae_params(params):
    """Pack per-layer params into lane-padded stacks, pre-transposed, ONCE."""
    L = len(params)
    w_stack = jnp.zeros((L, LANE, LANE), jnp.float32)
    b_stack = jnp.zeros((L, 1, LANE), jnp.float32)
    g_stack = jnp.zeros((L, 1, LANE), jnp.float32)     # padded gamma = 0 -> padded lanes stay 0
    beta_stack = jnp.zeros((L, 1, LANE), jnp.float32)
    acts = []
    for l, (w, b, gamma, beta, act) in enumerate(params):
        f_out, f_in = w.shape
        assert f_in <= LANE and f_out <= LANE, "feature width exceeds one lane tile"
        w_stack = w_stack.at[l, :f_in, :f_out].set(w.T)
        b_stack = b_stack.at[l, 0, :f_out].set(b)
        g_stack = g_stack.at[l, 0, :f_out].set(gamma)
        beta_stack = beta_stack.at[l, 0, :f_out].set(beta)
        acts.append(bool(act))
    return w_stack, b_stack, g_stack, beta_stack, tuple(acts)


# ----------------------------- pure-JAX reference ----------------------------

def ae_forward_ref(x, params, relu_slope=0.01, eps=1e-5):
    h = x
    for (w, b, gamma, beta, act) in params:
        h = h @ w.T + b
        if act:
            h = jnp.where(h > 0, h, relu_slope * h)
        mean = jnp.mean(h, axis=0, keepdims=True)
        var = jnp.mean((h - mean) ** 2, axis=0, keepdims=True)
        h = gamma * (h - mean) * jax.lax.rsqrt(var + eps) + beta
    return h


# ----------------------------------- main ------------------------------------

if __name__ == "__main__":
    B = 8            # batch (>1 needed for batch-norm training statistics)
    in_size = 64     # input feature size
    relu = 0.01
    num_layer = 9
    rep_dim = 20

    specs = ae_layer_specs(in_size, num_layer=num_layer, rep_dim=rep_dim)
    key = jax.random.PRNGKey(0)
    key, kx = jax.random.split(key)
    params = init_ae_params(key, specs)
    w_s, b_s, g_s, beta_s, acts = pack_ae_params(params)

    x = jax.random.normal(kx, (B, in_size), jnp.float32)

    out = ae_forward_fused(x, w_s, b_s, g_s, beta_s, acts=acts,
                           relu_slope=relu, out_features=in_size)
    out = jax.block_until_ready(out)

    assert out.shape == (B, in_size), out.shape
    assert jnp.all(jnp.isfinite(out))

    ref = ae_forward_ref(x, params, relu_slope=relu)
    assert jnp.allclose(out, ref, atol=5e-3, rtol=5e-3), \
        float(jnp.max(jnp.abs(out - ref)))

    print("KERNEL_OK")
</pallas_src>

<mosaic_0001>
module attributes {stable_mosaic.version = 11 : i64} {
  func.func @_ae_fused_kernel(%arg0: memref<8x64xf32, #tpu.memory_space<vmem>>, %arg1: memref<20x128x128xf32, #tpu.memory_space<vmem>>, %arg2: memref<20x1x128xf32, #tpu.memory_space<vmem>>, %arg3: memref<20x1x128xf32, #tpu.memory_space<vmem>>, %arg4: memref<20x1x128xf32, #tpu.memory_space<vmem>>, %arg5: memref<8x128xf32, #tpu.memory_space<vmem>>, %arg6: memref<8x128xf32, #tpu.memory_space<vmem>>) attributes {dimension_semantics = [], scalar_prefetch = 0 : i64, scratch_operands = 1 : i64, tpu.core_type = #tpu.core_type<tc>} {
    %cst = arith.constant 0.000000e+00 : f32
    %0 = vector.broadcast %cst : f32 to vector<8x128xf32>
    %c0 = arith.constant 0 : index
    %c0_0 = arith.constant 0 : index
    %1 = vector.load %arg6[%c0, %c0_0] : memref<8x128xf32, #tpu.memory_space<vmem>>, vector<8x128xf32>
    tpu.vector_store %arg6[%c0, %c0_0], %0 {strides = array<i32>} : memref<8x128xf32, #tpu.memory_space<vmem>>, vector<8x128xf32>,
    %c0_1 = arith.constant 0 : index
    %c0_2 = arith.constant 0 : index
    %2 = vector.load %arg0[%c0_1, %c0_2] : memref<8x64xf32, #tpu.memory_space<vmem>>, vector<8x64xf32>
    %c0_3 = arith.constant 0 : index
    %c0_4 = arith.constant 0 : index
    %3 = vector.load %arg6[%c0_3, %c0_4] : memref<8x128xf32, #tpu.memory_space<vmem>>, vector<8x64xf32>
    tpu.vector_store %arg6[%c0_3, %c0_4], %2 {strides = array<i32>} : memref<8x128xf32, #tpu.memory_space<vmem>>, vector<8x64xf32>,
    %c0_5 = arith.constant 0 : index
    %c0_6 = arith.constant 0 : index
    %4 = vector.load %arg6[%c0_5, %c0_6] : memref<8x128xf32, #tpu.memory_space<vmem>>, vector<8x128xf32>
    %c0_7 = arith.constant 0 : index
    %c0_8 = arith.constant 0 : index
    %c0_9 = arith.constant 0 : index
    %5 = vector.load %arg1[%c0_7, %c0_8, %c0_9] : memref<20x128x128xf32, #tpu.memory_space<vmem>>, vector<1x128x128xf32>
    %6 = vector.shape_cast %5 : vector<1x128x128xf32> to vector<128x128xf32>
    %cst_10 = arith.constant dense<0.000000e+00> : vector<8x128xf32>
    %7 = tpu.matmul %4, %6, %cst_10 {dimension_numbers = #tpu.dot_dimension_numbers<[1], [0], [0], [1], [0, 0, 1, 1], [], []>} : vector<8x128xf32>, vector<128x128xf32>, vector<8x128xf32> -> vector<8x128xf32>
    %c0_11 = arith.constant 0 : index
    %c0_12 = arith.constant 0 : index
    %c0_13 = arith.constant 0 : index
    %8 = vector.load %arg2[%c0_11, %c0_12, %c0_13] : memref<20x1x128xf32, #tpu.memory_space<vmem>>, vector<1x1x128xf32>
    %9 = vector.shape_cast %8 : vector<1x1x128xf32> to vector<1x128xf32>
    %10 = vector.broadcast %9 : vector<1x128xf32> to vector<8x128xf32>
    %11 = arith.addf %7, %10 : vector<8x128xf32>
    %cst_14 = arith.constant 0.00999999977 : f32
    %12 = vector.broadcast %cst_14 : f32 to vector<8x128xf32>
    %13 = arith.mulf %12, %11 : vector<8x128xf32>
    %14 = arith.maximumf %11, %13 : vector<8x128xf32>
    %cst_15 = arith.constant dense<0.000000e+00> : vector<128xf32>
    %15 = vector.multi_reduction <add>, %14, %cst_15 [0] : vector<8x128xf32> to vector<128xf32>
    %16 = vector.shape_cast %15 : vector<128xf32> to vector<1x128xf32>
    %17 = arith.mulf %14, %14 : vector<8x128xf32>
    %cst_16 = arith.constant dense<0.000000e+00> : vector<128xf32>
    %18 = vector.multi_reduction <add>, %17, %cst_16 [0] : vector<8x128xf32> to vector<128xf32>
    %19 = vector.shape_cast %18 : vector<128xf32> to vector<1x128xf32>
    %cst_17 = arith.constant 1.250000e-01 : f32
    %20 = vector.broadcast %cst_17 : f32 to vector<1x128xf32>
    %21 = arith.mulf %16, %20 : vector<1x128xf32>
    %cst_18 = arith.constant 1.250000e-01 : f32
    %22 = vector.broadcast %cst_18 : f32 to vector<1x128xf32>
    %23 = arith.mulf %19, %22 : vector<1x128xf32>
    %24 = arith.mulf %21, %21 : vector<1x128xf32>
    %25 = arith.subf %23, %24 : vector<1x128xf32>
    %cst_19 = arith.constant 0.000000e+00 : f32
    %26 = vector.broadcast %cst_19 : f32 to vector<1x128xf32>
    %27 = arith.maximumf %25, %26 : vector<1x128xf32>
    %cst_20 = arith.constant 9.99999974E-6 : f32
    %28 = vector.broadcast %cst_20 : f32 to vector<1x128xf32>
    %29 = arith.addf %27, %28 : vector<1x128xf32>
    %30 = math.rsqrt %29 : vector<1x128xf32>
    %c0_21 = arith.constant 0 : index
    %c0_22 = arith.constant 0 : index
    %c0_23 = arith.constant 0 : index
    %31 = vector.load %arg3[%c0_21, %c0_22, %c0_23] : memref<20x1x128xf32, #tpu.memory_space<vmem>>, vector<1x1x128xf32>
    %32 = vector.shape_cast %31 : vector<1x1x128xf32> to vector<1x128xf32>
    %33 = arith.mulf %32, %30 : vector<1x128xf32>
    %c0_24 = arith.constant 0 : index
    %c0_25 = arith.constant 0 : index
    %c0_26 = arith.constant 0 : index
    %34 = vector.load %arg4[%c0_24, %c0_25, %c0_26] : memref<20x1x128xf32, #tpu.memory_space<vmem>>, vector<1x1x128xf32>
    %35 = vector.shape_cast %34 : vector<1x1x128xf32> to vector<1x128xf32>
    %36 = arith.mulf %21, %33 : vector<1x128xf32>
    %37 = arith.subf %35, %36 : vector<1x128xf32>
    %38 = vector.broadcast %33 : vector<1x128xf32> to vector<8x128xf32>
    %39 = arith.mulf %14, %38 : vector<8x128xf32>
    %40 = vector.broadcast %37 : vector<1x128xf32> to vector<8x128xf32>
    %41 = arith.addf %39, %40 : vector<8x128xf32>
    %c1 = arith.constant 1 : index
    %c0_27 = arith.constant 0 : index
    %c0_28 = arith.constant 0 : index
    %42 = vector.load %arg1[%c1, %c0_27, %c0_28] : memref<20x128x128xf32, #tpu.memory_space<vmem>>, vector<1x128x128xf32>
    %43 = vector.shape_cast %42 : vector<1x128x128xf32> to vector<128x128xf32>
    %cst_29 = arith.constant dense<0.000000e+00> : vector<8x128xf32>
    %44 = tpu.matmul %41, %43, %cst_29 {dimension_numbers = #tpu.dot_dimension_numbers<[1], [0], [0], [1], [0, 0, 1, 1], [], []>} : vector<8x128xf32>, vector<128x128xf32>, vector<8x128xf32> -> vector<8x128xf32>
    %c1_30 = arith.constant 1 : index
    %c0_31 = arith.constant 0 : index
    %c0_32 = arith.constant 0 : index
    %45 = vector.load %arg2[%c1_30, %c0_31, %c0_32] : memref<20x1x128xf32, #tpu.memory_space<vmem>>, vector<1x1x128xf32>
    %46 = vector.shape_cast %45 : vector<1x1x128xf32> to vector<1x128xf32>
    %47 = vector.broadcast %46 : vector<1x128xf32> to vector<8x128xf32>
    %48 = arith.addf %44, %47 : vector<8x128xf32>
    %cst_33 = arith.constant 0.00999999977 : f32
    %49 = vector.broadcast %cst_33 : f32 to vector<8x128xf32>
    %50 = arith.mulf %49, %48 : vector<8x128xf32>
    %51 = arith.maximumf %48, %50 : vector<8x128xf32>
    %cst_34 = arith.constant dense<0.000000e+00> : vector<128xf32>
    %52 = vector.multi_reduction <add>, %51, %cst_34 [0] : vector<8x128xf32> to vector<128xf32>
    %53 = vector.shape_cast %52 : vector<128xf32> to vector<1x128xf32>
    %54 = arith.mulf %51, %51 : vector<8x128xf32>
    %cst_35 = arith.constant dense<0.000000e+00> : vector<128xf32>
    %55 = vector.multi_reduction <add>, %54, %cst_35 [0] : vector<8x128xf32> to vector<128xf32>
    %56 = vector.shape_cast %55 : vector<128xf32> to vector<1x128xf32>
    %cst_36 = arith.constant 1.250000e-01 : f32
    %57 = vector.broadcast %cst_36 : f32 to vector<1x128xf32>
    %58 = arith.mulf %53, %57 : vector<1x128xf32>
    %cst_37 = arith.constant 1.250000e-01 : f32
    %59 = vector.broadcast %cst_37 : f32 to vector<1x128xf32>
    %60 = arith.mulf %56, %59 : vector<1x128xf32>
    %61 = arith.mulf %58, %58 : vector<1x128xf32>
    %62 = arith.subf %60, %61 : vector<1x128xf32>
    %cst_38 = arith.constant 0.000000e+00 : f32
    %63 = vector.broadcast %cst_38 : f32 to vector<1x128xf32>
    %64 = arith.maximumf %62, %63 : vector<1x128xf32>
    %cst_39 = arith.constant 9.99999974E-6 : f32
    %65 = vector.broadcast %cst_39 : f32 to vector<1x128xf32>
    %66 = arith.addf %64, %65 : vector<1x128xf32>
    %67 = math.rsqrt %66 : vector<1x128xf32>
    %c1_40 = arith.constant 1 : index
    %c0_41 = arith.constant 0 : index
    %c0_42 = arith.constant 0 : index
    %68 = vector.load %arg3[%c1_40, %c0_41, %c0_42] : memref<20x1x128xf32, #tpu.memory_space<vmem>>, vector<1x1x128xf32>
    %69 = vector.shape_cast %68 : vector<1x1x128xf32> to vector<1x128xf32>
    %70 = arith.mulf %69, %67 : vector<1x128xf32>
    %c1_43 = arith.constant 1 : index
    %c0_44 = arith.constant 0 : index
    %c0_45 = arith.constant 0 : index
    %71 = vector.load %arg4[%c1_43, %c0_44, %c0_45] : memref<20x1x128xf32, #tpu.memory_space<vmem>>, vector<1x1x128xf32>
    %72 = vector.shape_cast %71 : vector<1x1x128xf32> to vector<1x128xf32>
    %73 = arith.mulf %58, %70 : vector<1x128xf32>
    %74 = arith.subf %72, %73 : vector<1x128xf32>
    %75 = vector.broadcast %70 : vector<1x128xf32> to vector<8x128xf32>
    %76 = arith.mulf %51, %75 : vector<8x128xf32>
    %77 = vector.broadcast %74 : vector<1x128xf32> to vector<8x128xf32>
    %78 = arith.addf %76, %77 : vector<8x128xf32>
    %c2 = arith.constant 2 : index
    %c0_46 = arith.constant 0 : index
    %c0_47 = arith.constant 0 : index
    %79 = vector.load %arg1[%c2, %c0_46, %c0_47] : memref<20x128x128xf32, #tpu.memory_space<vmem>>, vector<1x128x128xf32>
    %80 = vector.shape_cast %79 : vector<1x128x128xf32> to vector<128x128xf32>
    %cst_48 = arith.constant dense<0.000000e+00> : vector<8x128xf32>
    %81 = tpu.matmul %78, %80, %cst_48 {dimension_numbers = #tpu.dot_dimension_numbers<[1], [0], [0], [1], [0, 0, 1, 1], [], []>} : vector<8x128xf32>, vector<128x128xf32>, vector<8x128xf32> -> vector<8x128xf32>
    %c2_49 = arith.constant 2 : index
    %c0_50 = arith.constant 0 : index
    %c0_51 = arith.constant 0 : index
    %82 = vector.load %arg2[%c2_49, %c0_50, %c0_51] : memref<20x1x128xf32, #tpu.memory_space<vmem>>, vector<1x1x128xf32>
    %83 = vector.shape_cast %82 : vector<1x1x128xf32> to vector<1x128xf32>
    %84 = vector.broadcast %83 : vector<1x128xf32> to vector<8x128xf32>
    %85 = arith.addf %81, %84 : vector<8x128xf32>
    %cst_52 = arith.constant 0.00999999977 : f32
    %86 = vector.broadcast %cst_52 : f32 to vector<8x128xf32>
    %87 = arith.mulf %86, %85 : vector<8x128xf32>
    %88 = arith.maximumf %85, %87 : vector<8x128xf32>
    %cst_53 = arith.constant dense<0.000000e+00> : vector<128xf32>
    %89 = vector.multi_reduction <add>, %88, %cst_53 [0] : vector<8x128xf32> to vector<128xf32>
    %90 = vector.shape_cast %89 : vector<128xf32> to vector<1x128xf32>
    %91 = arith.mulf %88, %88 : vector<8x128xf32>
    %cst_54 = arith.constant dense<0.000000e+00> : vector<128xf32>
    %92 = vector.multi_reduction <add>, %91, %cst_54 [0] : vector<8x128xf32> to vector<128xf32>
    %93 = vector.shape_cast %92 : vector<128xf32> to vector<1x128xf32>
    %cst_55 = arith.constant 1.250000e-01 : f32
    %94 = vector.broadcast %cst_55 : f32 to vector<1x128xf32>
    %95 = arith.mulf %90, %94 : vector<1x128xf32>
    %cst_56 = arith.constant 1.250000e-01 : f32
    %96 = vector.broadcast %cst_56 : f32 to vector<1x128xf32>
    %97 = arith.mulf %93, %96 : vector<1x128xf32>
    %98 = arith.mulf %95, %95 : vector<1x128xf32>
    %99 = arith.subf %97, %98 : vector<1x128xf32>
    %cst_57 = arith.constant 0.000000e+00 : f32
    %100 = vector.broadcast %cst_57 : f32 to vector<1x128xf32>
    %101 = arith.maximumf %99, %100 : vector<1x128xf32>
    %cst_58 = arith.constant 9.99999974E-6 : f32
    %102 = vector.broadcast %cst_58 : f32 to vector<1x128xf32>
    %103 = arith.addf %101, %102 : vector<1x128xf32>
    %104 = math.rsqrt %103 : vector<1x128xf32>
    %c2_59 = arith.constant 2 : index
    %c0_60 = arith.constant 0 : index
    %c0_61 = arith.constant 0 : index
    %105 = vector.load %arg3[%c2_59, %c0_60, %c0_61] : memref<20x1x128xf32, #tpu.memory_space<vmem>>, vector<1x1x128xf32>
    %106 = vector.shape_cast %105 : vector<1x1x128xf32> to vector<1x128xf32>
    %107 = arith.mulf %106, %104 : vector<1x128xf32>
    %c2_62 = arith.constant 2 : index
    %c0_63 = arith.constant 0 : index
    %c0_64 = arith.constant 0 : index
    %108 = vector.load %arg4[%c2_62, %c0_63, %c0_64] : memref<20x1x128xf32, #tpu.memory_space<vmem>>, vector<1x1x128xf32>
    %109 = vector.shape_cast %108 : vector<1x1x128xf32> to vector<1x128xf32>
    %110 = arith.mulf %95, %107 : vector<1x128xf32>
    %111 = arith.subf %109, %110 : vector<1x128xf32>
    %112 = vector.broadcast %107 : vector<1x128xf32> to vector<8x128xf32>
    %113 = arith.mulf %88, %112 : vector<8x128xf32>
    %114 = vector.broadcast %111 : vector<1x128xf32> to vector<8x128xf32>
    %115 = arith.addf %113, %114 : vector<8x128xf32>
    %c3 = arith.constant 3 : index
    %c0_65 = arith.constant 0 : index
    %c0_66 = arith.constant 0 : index
    %116 = vector.load %arg1[%c3, %c0_65, %c0_66] : memref<20x128x128xf32, #tpu.memory_space<vmem>>, vector<1x128x128xf32>
    %117 = vector.shape_cast %116 : vector<1x128x128xf32> to vector<128x128xf32>
    %cst_67 = arith.constant dense<0.000000e+00> : vector<8x128xf32>
    %118 = tpu.matmul %115, %117, %cst_67 {dimension_numbers = #tpu.dot_dimension_numbers<[1], [0], [0], [1], [0, 0, 1, 1], [], []>} : vector<8x128xf32>, vector<128x128xf32>, vector<8x128xf32> -> vector<8x128xf32>
    %c3_68 = arith.constant 3 : index
    %c0_69 = arith.constant 0 : index
    %c0_70 = arith.constant 0 : index
    %119 = vector.load %arg2[%c3_68, %c0_69, %c0_70] : memref<20x1x128xf32, #tpu.memory_space<vmem>>, vector<1x1x128xf32>
    %120 = vector.shape_cast %119 : vector<1x1x128xf32> to vector<1x128xf32>
    %121 = vector.broadcast %120 : vector<1x128xf32> to vector<8x128xf32>
    %122 = arith.addf %118, %121 : vector<8x128xf32>
    %cst_71 = arith.constant 0.00999999977 : f32
    %123 = vector.broadcast %cst_71 : f32 to vector<8x128xf32>
    %124 = arith.mulf %123, %122 : vector<8x128xf32>
    %125 = arith.maximumf %122, %124 : vector<8x128xf32>
    %cst_72 = arith.constant dense<0.000000e+00> : vector<128xf32>
    %126 = vector.multi_reduction <add>, %125, %cst_72 [0] : vector<8x128xf32> to vector<128xf32>
    %127 = vector.shape_cast %126 : vector<128xf32> to vector<1x128xf32>
    %128 = arith.mulf %125, %125 : vector<8x128xf32>
    %cst_73 = arith.constant dense<0.000000e+00> : vector<128xf32>
    %129 = vector.multi_reduction <add>, %128, %cst_73 [0] : vector<8x128xf32> to vector<128xf32>
    %130 = vector.shape_cast %129 : vector<128xf32> to vector<1x128xf32>
    %cst_74 = arith.constant 1.250000e-01 : f32
    %131 = vector.broadcast %cst_74 : f32 to vector<1x128xf32>
    %132 = arith.mulf %127, %131 : vector<1x128xf32>
    %cst_75 = arith.constant 1.250000e-01 : f32
    %133 = vector.broadcast %cst_75 : f32 to vector<1x128xf32>
    %134 = arith.mulf %130, %133 : vector<1x128xf32>
    %135 = arith.mulf %132, %132 : vector<1x128xf32>
    %136 = arith.subf %134, %135 : vector<1x128xf32>
    %cst_76 = arith.constant 0.000000e+00 : f32
    %137 = vector.broadcast %cst_76 : f32 to vector<1x128xf32>
    %138 = arith.maximumf %136, %137 : vector<1x128xf32>
    %cst_77 = arith.constant 9.99999974E-6 : f32
    %139 = vector.broadcast %cst_77 : f32 to vector<1x128xf32>
    %140 = arith.addf %138, %139 : vector<1x128xf32>
    %141 = math.rsqrt %140 : vector<1x128xf32>
    %c3_78 = arith.constant 3 : index
    %c0_79 = arith.constant 0 : index
    %c0_80 = arith.constant 0 : index
    %142 = vector.load %arg3[%c3_78, %c0_79, %c0_80] : memref<20x1x128xf32, #tpu.memory_space<vmem>>, vector<1x1x128xf32>
    %143 = vector.shape_cast %142 : vector<1x1x128xf32> to vector<1x128xf32>
    %144 = arith.mulf %143, %141 : vector<1x128xf32>
    %c3_81 = arith.constant 3 : index
    %c0_82 = arith.constant 0 : index
    %c0_83 = arith.constant 0 : index
    %145 = vector.load %arg4[%c3_81, %c0_82, %c0_83] : memref<20x1x128xf32, #tpu.memory_space<vmem>>, vector<1x1x128xf32>
    %146 = vector.shape_cast %145 : vector<1x1x128xf32> to vector<1x128xf32>
    %147 = arith.mulf %132, %144 : vector<1x128xf32>
    %148 = arith.subf %146, %147 : vector<1x128xf32>
    %149 = vector.broadcast %144 : vector<1x128xf32> to vector<8x128xf32>
    %150 = arith.mulf %125, %149 : vector<8x128xf32>
    %151 = vector.broadcast %148 : vector<1x128xf32> to vector<8x128xf32>
    %152 = arith.addf %150, %151 : vector<8x128xf32>
    %c4 = arith.constant 4 : index
    %c0_84 = arith.constant 0 : index
    %c0_85 = arith.constant 0 : index
    %153 = vector.load %arg1[%c4, %c0_84, %c0_85] : memref<20x128x128xf32, #tpu.memory_space<vmem>>, vector<1x128x128xf32>
    %154 = vector.shape_cast %153 : vector<1x128x128xf32> to vector<128x128xf32>
    %cst_86 = arith.constant dense<0.000000e+00> : vector<8x128xf32>
    %155 = tpu.matmul %152, %154, %cst_86 {dimension_numbers = #tpu.dot_dimension_numbers<[1], [0], [0], [1], [0, 0, 1, 1], [], []>} : vector<8x128xf32>, vector<128x128xf32>, vector<8x128xf32> -> vector<8x128xf32>
    %c4_87 = arith.constant 4 : index
    %c0_88 = arith.constant 0 : index
    %c0_89 = arith.constant 0 : index
    %156 = vector.load %arg2[%c4_87, %c0_88, %c0_89] : memref<20x1x128xf32, #tpu.memory_space<vmem>>, vector<1x1x128xf32>
    %157 = vector.shape_cast %156 : vector<1x1x128xf32> to vector<1x128xf32>
    %158 = vector.broadcast %157 : vector<1x128xf32> to vector<8x128xf32>
    %159 = arith.addf %155, %158 : vector<8x128xf32>
    %cst_90 = arith.constant 0.00999999977 : f32
    %160 = vector.broadcast %cst_90 : f32 to vector<8x128xf32>
    %161 = arith.mulf %160, %159 : vector<8x128xf32>
    %162 = arith.maximumf %159, %161 : vector<8x128xf32>
    %cst_91 = arith.constant dense<0.000000e+00> : vector<128xf32>
    %163 = vector.multi_reduction <add>, %162, %cst_91 [0] : vector<8x128xf32> to vector<128xf32>
    %164 = vector.shape_cast %163 : vector<128xf32> to vector<1x128xf32>
    %165 = arith.mulf %162, %162 : vector<8x128xf32>
    %cst_92 = arith.constant dense<0.000000e+00> : vector<128xf32>
    %166 = vector.multi_reduction <add>, %165, %cst_92 [0] : vector<8x128xf32> to vector<128xf32>
    %167 = vector.shape_cast %166 : vector<128xf32> to vector<1x128xf32>
    %cst_93 = arith.constant 1.250000e-01 : f32
    %168 = vector.broadcast %cst_93 : f32 to vector<1x128xf32>
    %169 = arith.mulf %164, %168 : vector<1x128xf32>
    %cst_94 = arith.constant 1.250000e-01 : f32
    %170 = vector.broadcast %cst_94 : f32 to vector<1x128xf32>
    %171 = arith.mulf %167, %170 : vector<1x128xf32>
    %172 = arith.mulf %169, %169 : vector<1x128xf32>
    %173 = arith.subf %171, %172 : vector<1x128xf32>
    %cst_95 = arith.constant 0.000000e+00 : f32
    %174 = vector.broadcast %cst_95 : f32 to vector<1x128xf32>
    %175 = arith.maximumf %173, %174 : vector<1x128xf32>
    %cst_96 = arith.constant 9.99999974E-6 : f32
    %176 = vector.broadcast %cst_96 : f32 to vector<1x128xf32>
    %177 = arith.addf %175, %176 : vector<1x128xf32>
    %178 = math.rsqrt %177 : vector<1x128xf32>
    %c4_97 = arith.constant 4 : index
    %c0_98 = arith.constant 0 : index
    %c0_99 = arith.constant 0 : index
    %179 = vector.load %arg3[%c4_97, %c0_98, %c0_99] : memref<20x1x128xf32, #tpu.memory_space<vmem>>, vector<1x1x128xf32>
    %180 = vector.shape_cast %179 : vector<1x1x128xf32> to vector<1x128xf32>
    %181 = arith.mulf %180, %178 : vector<1x128xf32>
    %c4_100 = arith.constant 4 : index
    %c0_101 = arith.constant 0 : index
    %c0_102 = arith.constant 0 : index
    %182 = vector.load %arg4[%c4_100, %c0_101, %c0_102] : memref<20x1x128xf32, #tpu.memory_space<vmem>>, vector<1x1x128xf32>
    %183 = vector.shape_cast %182 : vector<1x1x128xf32> to vector<1x128xf32>
    %184 = arith.mulf %169, %181 : vector<1x128xf32>
    %185 = arith.subf %183, %184 : vector<1x128xf32>
    %186 = vector.broadcast %181 : vector<1x128xf32> to vector<8x128xf32>
    %187 = arith.mulf %162, %186 : vector<8x128xf32>
    %188 = vector.broadcast %185 : vector<1x128xf32> to vector<8x128xf32>
    %189 = arith.addf %187, %188 : vector<8x128xf32>
    %c5 = arith.constant 5 : index
    %c0_103 = arith.constant 0 : index
    %c0_104 = arith.constant 0 : index
    %190 = vector.load %arg1[%c5, %c0_103, %c0_104] : memref<20x128x128xf32, #tpu.memory_space<vmem>>, vector<1x128x128xf32>
    %191 = vector.shape_cast %190 : vector<1x128x128xf32> to vector<128x128xf32>
    %cst_105 = arith.constant dense<0.000000e+00> : vector<8x128xf32>
    %192 = tpu.matmul %189, %191, %cst_105 {dimension_numbers = #tpu.dot_dimension_numbers<[1], [0], [0], [1], [0, 0, 1, 1], [], []>} : vector<8x128xf32>, vector<128x128xf32>, vector<8x128xf32> -> vector<8x128xf32>
    %c5_106 = arith.constant 5 : index
    %c0_107 = arith.constant 0 : index
    %c0_108 = arith.constant 0 : index
    %193 = vector.load %arg2[%c5_106, %c0_107, %c0_108] : memref<20x1x128xf32, #tpu.memory_space<vmem>>, vector<1x1x128xf32>
    %194 = vector.shape_cast %193 : vector<1x1x128xf32> to vector<1x128xf32>
    %195 = vector.broadcast %194 : vector<1x128xf32> to vector<8x128xf32>
    %196 = arith.addf %192, %195 : vector<8x128xf32>
    %cst_109 = arith.constant 0.00999999977 : f32
    %197 = vector.broadcast %cst_109 : f32 to vector<8x128xf32>
    %198 = arith.mulf %197, %196 : vector<8x128xf32>
    %199 = arith.maximumf %196, %198 : vector<8x128xf32>
    %cst_110 = arith.constant dense<0.000000e+00> : vector<128xf32>
    %200 = vector.multi_reduction <add>, %199, %cst_110 [0] : vector<8x128xf32> to vector<128xf32>
    %201 = vector.shape_cast %200 : vector<128xf32> to vector<1x128xf32>
    %202 = arith.mulf %199, %199 : vector<8x128xf32>
    %cst_111 = arith.constant dense<0.000000e+00> : vector<128xf32>
    %203 = vector.multi_reduction <add>, %202, %cst_111 [0] : vector<8x128xf32> to vector<128xf32>
    %204 = vector.shape_cast %203 : vector<128xf32> to vector<1x128xf32>
    %cst_112 = arith.constant 1.250000e-01 : f32
    %205 = vector.broadcast %cst_112 : f32 to vector<1x128xf32>
    %206 = arith.mulf %201, %205 : vector<1x128xf32>
    %cst_113 = arith.constant 1.250000e-01 : f32
    %207 = vector.broadcast %cst_113 : f32 to vector<1x128xf32>
    %208 = arith.mulf %204, %207 : vector<1x128xf32>
    %209 = arith.mulf %206, %206 : vector<1x128xf32>
    %210 = arith.subf %208, %209 : vector<1x128xf32>
    %cst_114 = arith.constant 0.000000e+00 : f32
    %211 = vector.broadcast %cst_114 : f32 to vector<1x128xf32>
    %212 = arith.maximumf %210, %211 : vector<1x128xf32>
    %cst_115 = arith.constant 9.99999974E-6 : f32
    %213 = vector.broadcast %cst_115 : f32 to vector<1x128xf32>
    %214 = arith.addf %212, %213 : vector<1x128xf32>
    %215 = math.rsqrt %214 : vector<1x128xf32>
    %c5_116 = arith.constant 5 : index
    %c0_117 = arith.constant 0 : index
    %c0_118 = arith.constant 0 : index
    %216 = vector.load %arg3[%c5_116, %c0_117, %c0_118] : memref<20x1x128xf32, #tpu.memory_space<vmem>>, vector<1x1x128xf32>
    %217 = vector.shape_cast %216 : vector<1x1x128xf32> to vector<1x128xf32>
    %218 = arith.mulf %217, %215 : vector<1x128xf32>
    %c5_119 = arith.constant 5 : index
    %c0_120 = arith.constant 0 : index
    %c0_121 = arith.constant 0 : index
    %219 = vector.load %arg4[%c5_119, %c0_120, %c0_121] : memref<20x1x128xf32, #tpu.memory_space<vmem>>, vector<1x1x128xf32>
    %220 = vector.shape_cast %219 : vector<1x1x128xf32> to vector<1x128xf32>
    %221 = arith.mulf %206, %218 : vector<1x128xf32>
    %222 = arith.subf %220, %221 : vector<1x128xf32>
    %223 = vector.broadcast %218 : vector<1x128xf32> to vector<8x128xf32>
    %224 = arith.mulf %199, %223 : vector<8x128xf32>
    %225 = vector.broadcast %222 : vector<1x128xf32> to vector<8x128xf32>
    %226 = arith.addf %224, %225 : vector<8x128xf32>
    %c6 = arith.constant 6 : index
    %c0_122 = arith.constant 0 : index
    %c0_123 = arith.constant 0 : index
    %227 = vector.load %arg1[%c6, %c0_122, %c0_123] : memref<20x128x128xf32, #tpu.memory_space<vmem>>, vector<1x128x128xf32>
    %228 = vector.shape_cast %227 : vector<1x128x128xf32> to vector<128x128xf32>
    %cst_124 = arith.constant dense<0.000000e+00> : vector<8x128xf32>
    %229 = tpu.matmul %226, %228, %cst_124 {dimension_numbers = #tpu.dot_dimension_numbers<[1], [0], [0], [1], [0, 0, 1, 1], [], []>} : vector<8x128xf32>, vector<128x128xf32>, vector<8x128xf32> -> vector<8x128xf32>
    %c6_125 = arith.constant 6 : index
    %c0_126 = arith.constant 0 : index
    %c0_127 = arith.constant 0 : index
    %230 = vector.load %arg2[%c6_125, %c0_126, %c0_127] : memref<20x1x128xf32, #tpu.memory_space<vmem>>, vector<1x1x128xf32>
    %231 = vector.shape_cast %230 : vector<1x1x128xf32> to vector<1x128xf32>
    %232 = vector.broadcast %231 : vector<1x128xf32> to vector<8x128xf32>
    %233 = arith.addf %229, %232 : vector<8x128xf32>
    %cst_128 = arith.constant 0.00999999977 : f32
    %234 = vector.broadcast %cst_128 : f32 to vector<8x128xf32>
    %235 = arith.mulf %234, %233 : vector<8x128xf32>
    %236 = arith.maximumf %233, %235 : vector<8x128xf32>
    %cst_129 = arith.constant dense<0.000000e+00> : vector<128xf32>
    %237 = vector.multi_reduction <add>, %236, %cst_129 [0] : vector<8x128xf32> to vector<128xf32>
    %238 = vector.shape_cast %237 : vector<128xf32> to vector<1x128xf32>
    %239 = arith.mulf %236, %236 : vector<8x128xf32>
    %cst_130 = arith.constant dense<0.000000e+00> : vector<128xf32>
    %240 = vector.multi_reduction <add>, %239, %cst_130 [0] : vector<8x128xf32> to vector<128xf32>
    %241 = vector.shape_cast %240 : vector<128xf32> to vector<1x128xf32>
    %cst_131 = arith.constant 1.250000e-01 : f32
    %242 = vector.broadcast %cst_131 : f32 to vector<1x128xf32>
    %243 = arith.mulf %238, %242 : vector<1x128xf32>
    %cst_132 = arith.constant 1.250000e-01 : f32
    %244 = vector.broadcast %cst_132 : f32 to vector<1x128xf32>
    %245 = arith.mulf %241, %244 : vector<1x128xf32>
    %246 = arith.mulf %243, %243 : vector<1x128xf32>
    %247 = arith.subf %245, %246 : vector<1x128xf32>
    %cst_133 = arith.constant 0.000000e+00 : f32
    %248 = vector.broadcast %cst_133 : f32 to vector<1x128xf32>
    %249 = arith.maximumf %247, %248 : vector<1x128xf32>
    %cst_134 = arith.constant 9.99999974E-6 : f32
    %250 = vector.broadcast %cst_134 : f32 to vector<1x128xf32>
    %251 = arith.addf %249, %250 : vector<1x128xf32>
    %252 = math.rsqrt %251 : vector<1x128xf32>
    %c6_135 = arith.constant 6 : index
    %c0_136 = arith.constant 0 : index
    %c0_137 = arith.constant 0 : index
    %253 = vector.load %arg3[%c6_135, %c0_136, %c0_137] : memref<20x1x128xf32, #tpu.memory_space<vmem>>, vector<1x1x128xf32>
    %254 = vector.shape_cast %253 : vector<1x1x128xf32> to vector<1x128xf32>
    %255 = arith.mulf %254, %252 : vector<1x128xf32>
    %c6_138 = arith.constant 6 : index
    %c0_139 = arith.constant 0 : index
    %c0_140 = arith.constant 0 : index
    %256 = vector.load %arg4[%c6_138, %c0_139, %c0_140] : memref<20x1x128xf32, #tpu.memory_space<vmem>>, vector<1x1x128xf32>
    %257 = vector.shape_cast %256 : vector<1x1x128xf32> to vector<1x128xf32>
    %258 = arith.mulf %243, %255 : vector<1x128xf32>
    %259 = arith.subf %257, %258 : vector<1x128xf32>
    %260 = vector.broadcast %255 : vector<1x128xf32> to vector<8x128xf32>
    %261 = arith.mulf %236, %260 : vector<8x128xf32>
    %262 = vector.broadcast %259 : vector<1x128xf32> to vector<8x128xf32>
    %263 = arith.addf %261, %262 : vector<8x128xf32>
    %c7 = arith.constant 7 : index
    %c0_141 = arith.constant 0 : index
    %c0_142 = arith.constant 0 : index
    %264 = vector.load %arg1[%c7, %c0_141, %c0_142] : memref<20x128x128xf32, #tpu.memory_space<vmem>>, vector<1x128x128xf32>
    %265 = vector.shape_cast %264 : vector<1x128x128xf32> to vector<128x128xf32>
    %cst_143 = arith.constant dense<0.000000e+00> : vector<8x128xf32>
    %266 = tpu.matmul %263, %265, %cst_143 {dimension_numbers = #tpu.dot_dimension_numbers<[1], [0], [0], [1], [0, 0, 1, 1], [], []>} : vector<8x128xf32>, vector<128x128xf32>, vector<8x128xf32> -> vector<8x128xf32>
    %c7_144 = arith.constant 7 : index
    %c0_145 = arith.constant 0 : index
    %c0_146 = arith.constant 0 : index
    %267 = vector.load %arg2[%c7_144, %c0_145, %c0_146] : memref<20x1x128xf32, #tpu.memory_space<vmem>>, vector<1x1x128xf32>
    %268 = vector.shape_cast %267 : vector<1x1x128xf32> to vector<1x128xf32>
    %269 = vector.broadcast %268 : vector<1x128xf32> to vector<8x128xf32>
    %270 = arith.addf %266, %269 : vector<8x128xf32>
    %cst_147 = arith.constant 0.00999999977 : f32
    %271 = vector.broadcast %cst_147 : f32 to vector<8x128xf32>
    %272 = arith.mulf %271, %270 : vector<8x128xf32>
    %273 = arith.maximumf %270, %272 : vector<8x128xf32>
    %cst_148 = arith.constant dense<0.000000e+00> : vector<128xf32>
    %274 = vector.multi_reduction <add>, %273, %cst_148 [0] : vector<8x128xf32> to vector<128xf32>
    %275 = vector.shape_cast %274 : vector<128xf32> to vector<1x128xf32>
    %276 = arith.mulf %273, %273 : vector<8x128xf32>
    %cst_149 = arith.constant dense<0.000000e+00> : vector<128xf32>
    %277 = vector.multi_reduction <add>, %276, %cst_149 [0] : vector<8x128xf32> to vector<128xf32>
    %278 = vector.shape_cast %277 : vector<128xf32> to vector<1x128xf32>
    %cst_150 = arith.constant 1.250000e-01 : f32
    %279 = vector.broadcast %cst_150 : f32 to vector<1x128xf32>
    %280 = arith.mulf %275, %279 : vector<1x128xf32>
    %cst_151 = arith.constant 1.250000e-01 : f32
    %281 = vector.broadcast %cst_151 : f32 to vector<1x128xf32>
    %282 = arith.mulf %278, %281 : vector<1x128xf32>
    %283 = arith.mulf %280, %280 : vector<1x128xf32>
    %284 = arith.subf %282, %283 : vector<1x128xf32>
    %cst_152 = arith.constant 0.000000e+00 : f32
    %285 = vector.broadcast %cst_152 : f32 to vector<1x128xf32>
    %286 = arith.maximumf %284, %285 : vector<1x128xf32>
    %cst_153 = arith.constant 9.99999974E-6 : f32
    %287 = vector.broadcast %cst_153 : f32 to vector<1x128xf32>
    %288 = arith.addf %286, %287 : vector<1x128xf32>
    %289 = math.rsqrt %288 : vector<1x128xf32>
    %c7_154 = arith.constant 7 : index
    %c0_155 = arith.constant 0 : index
    %c0_156 = arith.constant 0 : index
    %290 = vector.load %arg3[%c7_154, %c0_155, %c0_156] : memref<20x1x128xf32, #tpu.memory_space<vmem>>, vector<1x1x128xf32>
    %291 = vector.shape_cast %290 : vector<1x1x128xf32> to vector<1x128xf32>
    %292 = arith.mulf %291, %289 : vector<1x128xf32>
    %c7_157 = arith.constant 7 : index
    %c0_158 = arith.constant 0 : index
    %c0_159 = arith.constant 0 : index
    %293 = vector.load %arg4[%c7_157, %c0_158, %c0_159] : memref<20x1x128xf32, #tpu.memory_space<vmem>>, vector<1x1x128xf32>
    %294 = vector.shape_cast %293 : vector<1x1x128xf32> to vector<1x128xf32>
    %295 = arith.mulf %280, %292 : vector<1x128xf32>
    %296 = arith.subf %294, %295 : vector<1x128xf32>
    %297 = vector.broadcast %292 : vector<1x128xf32> to vector<8x128xf32>
    %298 = arith.mulf %273, %297 : vector<8x128xf32>
    %299 = vector.broadcast %296 : vector<1x128xf32> to vector<8x128xf32>
    %300 = arith.addf %298, %299 : vector<8x128xf32>
    %c8 = arith.constant 8 : index
    %c0_160 = arith.constant 0 : index
    %c0_161 = arith.constant 0 : index
    %301 = vector.load %arg1[%c8, %c0_160, %c0_161] : memref<20x128x128xf32, #tpu.memory_space<vmem>>, vector<1x128x128xf32>
    %302 = vector.shape_cast %301 : vector<1x128x128xf32> to vector<128x128xf32>
    %cst_162 = arith.constant dense<0.000000e+00> : vector<8x128xf32>
    %303 = tpu.matmul %300, %302, %cst_162 {dimension_numbers = #tpu.dot_dimension_numbers<[1], [0], [0], [1], [0, 0, 1, 1], [], []>} : vector<8x128xf32>, vector<128x128xf32>, vector<8x128xf32> -> vector<8x128xf32>
    %c8_163 = arith.constant 8 : index
    %c0_164 = arith.constant 0 : index
    %c0_165 = arith.constant 0 : index
    %304 = vector.load %arg2[%c8_163, %c0_164, %c0_165] : memref<20x1x128xf32, #tpu.memory_space<vmem>>, vector<1x1x128xf32>
    %305 = vector.shape_cast %304 : vector<1x1x128xf32> to vector<1x128xf32>
    %306 = vector.broadcast %305 : vector<1x128xf32> to vector<8x128xf32>
    %307 = arith.addf %303, %306 : vector<8x128xf32>
    %cst_166 = arith.constant 0.00999999977 : f32
    %308 = vector.broadcast %cst_166 : f32 to vector<8x128xf32>
    %309 = arith.mulf %308, %307 : vector<8x128xf32>
    %310 = arith.maximumf %307, %309 : vector<8x128xf32>
    %cst_167 = arith.constant dense<0.000000e+00> : vector<128xf32>
    %311 = vector.multi_reduction <add>, %310, %cst_167 [0] : vector<8x128xf32> to vector<128xf32>
    %312 = vector.shape_cast %311 : vector<128xf32> to vector<1x128xf32>
    %313 = arith.mulf %310, %310 : vector<8x128xf32>
    %cst_168 = arith.constant dense<0.000000e+00> : vector<128xf32>
    %314 = vector.multi_reduction <add>, %313, %cst_168 [0] : vector<8x128xf32> to vector<128xf32>
    %315 = vector.shape_cast %314 : vector<128xf32> to vector<1x128xf32>
    %cst_169 = arith.constant 1.250000e-01 : f32
    %316 = vector.broadcast %cst_169 : f32 to vector<1x128xf32>
    %317 = arith.mulf %312, %316 : vector<1x128xf32>
    %cst_170 = arith.constant 1.250000e-01 : f32
    %318 = vector.broadcast %cst_170 : f32 to vector<1x128xf32>
    %319 = arith.mulf %315, %318 : vector<1x128xf32>
    %320 = arith.mulf %317, %317 : vector<1x128xf32>
    %321 = arith.subf %319, %320 : vector<1x128xf32>
    %cst_171 = arith.constant 0.000000e+00 : f32
    %322 = vector.broadcast %cst_171 : f32 to vector<1x128xf32>
    %323 = arith.maximumf %321, %322 : vector<1x128xf32>
    %cst_172 = arith.constant 9.99999974E-6 : f32
    %324 = vector.broadcast %cst_172 : f32 to vector<1x128xf32>
    %325 = arith.addf %323, %324 : vector<1x128xf32>
    %326 = math.rsqrt %325 : vector<1x128xf32>
    %c8_173 = arith.constant 8 : index
    %c0_174 = arith.constant 0 : index
    %c0_175 = arith.constant 0 : index
    %327 = vector.load %arg3[%c8_173, %c0_174, %c0_175] : memref<20x1x128xf32, #tpu.memory_space<vmem>>, vector<1x1x128xf32>
    %328 = vector.shape_cast %327 : vector<1x1x128xf32> to vector<1x128xf32>
    %329 = arith.mulf %328, %326 : vector<1x128xf32>
    %c8_176 = arith.constant 8 : index
    %c0_177 = arith.constant 0 : index
    %c0_178 = arith.constant 0 : index
    %330 = vector.load %arg4[%c8_176, %c0_177, %c0_178] : memref<20x1x128xf32, #tpu.memory_space<vmem>>, vector<1x1x128xf32>
    %331 = vector.shape_cast %330 : vector<1x1x128xf32> to vector<1x128xf32>
    %332 = arith.mulf %317, %329 : vector<1x128xf32>
    %333 = arith.subf %331, %332 : vector<1x128xf32>
    %334 = vector.broadcast %329 : vector<1x128xf32> to vector<8x128xf32>
    %335 = arith.mulf %310, %334 : vector<8x128xf32>
    %336 = vector.broadcast %333 : vector<1x128xf32> to vector<8x128xf32>
    %337 = arith.addf %335, %336 : vector<8x128xf32>
    %c9 = arith.constant 9 : index
    %c0_179 = arith.constant 0 : index
    %c0_180 = arith.constant 0 : index
    %338 = vector.load %arg1[%c9, %c0_179, %c0_180] : memref<20x128x128xf32, #tpu.memory_space<vmem>>, vector<1x128x128xf32>
    %339 = vector.shape_cast %338 : vector<1x128x128xf32> to vector<128x128xf32>
    %cst_181 = arith.constant dense<0.000000e+00> : vector<8x128xf32>
    %340 = tpu.matmul %337, %339, %cst_181 {dimension_numbers = #tpu.dot_dimension_numbers<[1], [0], [0], [1], [0, 0, 1, 1], [], []>} : vector<8x128xf32>, vector<128x128xf32>, vector<8x128xf32> -> vector<8x128xf32>
    %c9_182 = arith.constant 9 : index
    %c0_183 = arith.constant 0 : index
    %c0_184 = arith.constant 0 : index
    %341 = vector.load %arg2[%c9_182, %c0_183, %c0_184] : memref<20x1x128xf32, #tpu.memory_space<vmem>>, vector<1x1x128xf32>
    %342 = vector.shape_cast %341 : vector<1x1x128xf32> to vector<1x128xf32>
    %343 = vector.broadcast %342 : vector<1x128xf32> to vector<8x128xf32>
    %344 = arith.addf %340, %343 : vector<8x128xf32>
    %cst_185 = arith.constant dense<0.000000e+00> : vector<128xf32>
    %345 = vector.multi_reduction <add>, %344, %cst_185 [0] : vector<8x128xf32> to vector<128xf32>
    %346 = vector.shape_cast %345 : vector<128xf32> to vector<1x128xf32>
    %347 = arith.mulf %344, %344 : vector<8x128xf32>
    %cst_186 = arith.constant dense<0.000000e+00> : vector<128xf32>
    %348 = vector.multi_reduction <add>, %347, %cst_186 [0] : vector<8x128xf32> to vector<128xf32>
    %349 = vector.shape_cast %348 : vector<128xf32> to vector<1x128xf32>
    %cst_187 = arith.constant 1.250000e-01 : f32
    %350 = vector.broadcast %cst_187 : f32 to vector<1x128xf32>
    %351 = arith.mulf %346, %350 : vector<1x128xf32>
    %cst_188 = arith.constant 1.250000e-01 : f32
    %352 = vector.broadcast %cst_188 : f32 to vector<1x128xf32>
    %353 = arith.mulf %349, %352 : vector<1x128xf32>
    %354 = arith.mulf %351, %351 : vector<1x128xf32>
    %355 = arith.subf %353, %354 : vector<1x128xf32>
    %cst_189 = arith.constant 0.000000e+00 : f32
    %356 = vector.broadcast %cst_189 : f32 to vector<1x128xf32>
    %357 = arith.maximumf %355, %356 : vector<1x128xf32>
    %cst_190 = arith.constant 9.99999974E-6 : f32
    %358 = vector.broadcast %cst_190 : f32 to vector<1x128xf32>
    %359 = arith.addf %357, %358 : vector<1x128xf32>
    %360 = math.rsqrt %359 : vector<1x128xf32>
    %c9_191 = arith.constant 9 : index
    %c0_192 = arith.constant 0 : index
    %c0_193 = arith.constant 0 : index
    %361 = vector.load %arg3[%c9_191, %c0_192, %c0_193] : memref<20x1x128xf32, #tpu.memory_space<vmem>>, vector<1x1x128xf32>
    %362 = vector.shape_cast %361 : vector<1x1x128xf32> to vector<1x128xf32>
    %363 = arith.mulf %362, %360 : vector<1x128xf32>
    %c9_194 = arith.constant 9 : index
    %c0_195 = arith.constant 0 : index
    %c0_196 = arith.constant 0 : index
    %364 = vector.load %arg4[%c9_194, %c0_195, %c0_196] : memref<20x1x128xf32, #tpu.memory_space<vmem>>, vector<1x1x128xf32>
    %365 = vector.shape_cast %364 : vector<1x1x128xf32> to vector<1x128xf32>
    %366 = arith.mulf %351, %363 : vector<1x128xf32>
    %367 = arith.subf %365, %366 : vector<1x128xf32>
    %368 = vector.broadcast %363 : vector<1x128xf32> to vector<8x128xf32>
    %369 = arith.mulf %344, %368 : vector<8x128xf32>
    %370 = vector.broadcast %367 : vector<1x128xf32> to vector<8x128xf32>
    %371 = arith.addf %369, %370 : vector<8x128xf32>
    %c10 = arith.constant 10 : index
    %c0_197 = arith.constant 0 : index
    %c0_198 = arith.constant 0 : index
    %372 = vector.load %arg1[%c10, %c0_197, %c0_198] : memref<20x128x128xf32, #tpu.memory_space<vmem>>, vector<1x128x128xf32>
    %373 = vector.shape_cast %372 : vector<1x128x128xf32> to vector<128x128xf32>
    %cst_199 = arith.constant dense<0.000000e+00> : vector<8x128xf32>
    %374 = tpu.matmul %371, %373, %cst_199 {dimension_numbers = #tpu.dot_dimension_numbers<[1], [0], [0], [1], [0, 0, 1, 1], [], []>} : vector<8x128xf32>, vector<128x128xf32>, vector<8x128xf32> -> vector<8x128xf32>
    %c10_200 = arith.constant 10 : index
    %c0_201 = arith.constant 0 : index
    %c0_202 = arith.constant 0 : index
    %375 = vector.load %arg2[%c10_200, %c0_201, %c0_202] : memref<20x1x128xf32, #tpu.memory_space<vmem>>, vector<1x1x128xf32>
    %376 = vector.shape_cast %375 : vector<1x1x128xf32> to vector<1x128xf32>
    %377 = vector.broadcast %376 : vector<1x128xf32> to vector<8x128xf32>
    %378 = arith.addf %374, %377 : vector<8x128xf32>
    %cst_203 = arith.constant 0.00999999977 : f32
    %379 = vector.broadcast %cst_203 : f32 to vector<8x128xf32>
    %380 = arith.mulf %379, %378 : vector<8x128xf32>
    %381 = arith.maximumf %378, %380 : vector<8x128xf32>
    %cst_204 = arith.constant dense<0.000000e+00> : vector<128xf32>
    %382 = vector.multi_reduction <add>, %381, %cst_204 [0] : vector<8x128xf32> to vector<128xf32>
    %383 = vector.shape_cast %382 : vector<128xf32> to vector<1x128xf32>
    %384 = arith.mulf %381, %381 : vector<8x128xf32>
    %cst_205 = arith.constant dense<0.000000e+00> : vector<128xf32>
    %385 = vector.multi_reduction <add>, %384, %cst_205 [0] : vector<8x128xf32> to vector<128xf32>
    %386 = vector.shape_cast %385 : vector<128xf32> to vector<1x128xf32>
    %cst_206 = arith.constant 1.250000e-01 : f32
    %387 = vector.broadcast %cst_206 : f32 to vector<1x128xf32>
    %388 = arith.mulf %383, %387 : vector<1x128xf32>
    %cst_207 = arith.constant 1.250000e-01 : f32
    %389 = vector.broadcast %cst_207 : f32 to vector<1x128xf32>
    %390 = arith.mulf %386, %389 : vector<1x128xf32>
    %391 = arith.mulf %388, %388 : vector<1x128xf32>
    %392 = arith.subf %390, %391 : vector<1x128xf32>
    %cst_208 = arith.constant 0.000000e+00 : f32
    %393 = vector.broadcast %cst_208 : f32 to vector<1x128xf32>
    %394 = arith.maximumf %392, %393 : vector<1x128xf32>
    %cst_209 = arith.constant 9.99999974E-6 : f32
    %395 = vector.broadcast %cst_209 : f32 to vector<1x128xf32>
    %396 = arith.addf %394, %395 : vector<1x128xf32>
    %397 = math.rsqrt %396 : vector<1x128xf32>
    %c10_210 = arith.constant 10 : index
    %c0_211 = arith.constant 0 : index
    %c0_212 = arith.constant 0 : index
    %398 = vector.load %arg3[%c10_210, %c0_211, %c0_212] : memref<20x1x128xf32, #tpu.memory_space<vmem>>, vector<1x1x128xf32>
    %399 = vector.shape_cast %398 : vector<1x1x128xf32> to vector<1x128xf32>
    %400 = arith.mulf %399, %397 : vector<1x128xf32>
    %c10_213 = arith.constant 10 : index
    %c0_214 = arith.constant 0 : index
    %c0_215 = arith.constant 0 : index
    %401 = vector.load %arg4[%c10_213, %c0_214, %c0_215] : memref<20x1x128xf32, #tpu.memory_space<vmem>>, vector<1x1x128xf32>
    %402 = vector.shape_cast %401 : vector<1x1x128xf32> to vector<1x128xf32>
    %403 = arith.mulf %388, %400 : vector<1x128xf32>
    %404 = arith.subf %402, %403 : vector<1x128xf32>
    %405 = vector.broadcast %400 : vector<1x128xf32> to vector<8x128xf32>
    %406 = arith.mulf %381, %405 : vector<8x128xf32>
    %407 = vector.broadcast %404 : vector<1x128xf32> to vector<8x128xf32>
    %408 = arith.addf %406, %407 : vector<8x128xf32>
    %c11 = arith.constant 11 : index
    %c0_216 = arith.constant 0 : index
    %c0_217 = arith.constant 0 : index
    %409 = vector.load %arg1[%c11, %c0_216, %c0_217] : memref<20x128x128xf32, #tpu.memory_space<vmem>>, vector<1x128x128xf32>
    %410 = vector.shape_cast %409 : vector<1x128x128xf32> to vector<128x128xf32>
    %cst_218 = arith.constant dense<0.000000e+00> : vector<8x128xf32>
    %411 = tpu.matmul %408, %410, %cst_218 {dimension_numbers = #tpu.dot_dimension_numbers<[1], [0], [0], [1], [0, 0, 1, 1], [], []>} : vector<8x128xf32>, vector<128x128xf32>, vector<8x128xf32> -> vector<8x128xf32>
    %c11_219 = arith.constant 11 : index
    %c0_220 = arith.constant 0 : index
    %c0_221 = arith.constant 0 : index
    %412 = vector.load %arg2[%c11_219, %c0_220, %c0_221] : memref<20x1x128xf32, #tpu.memory_space<vmem>>, vector<1x1x128xf32>
    %413 = vector.shape_cast %412 : vector<1x1x128xf32> to vector<1x128xf32>
    %414 = vector.broadcast %413 : vector<1x128xf32> to vector<8x128xf32>
    %415 = arith.addf %411, %414 : vector<8x128xf32>
    %cst_222 = arith.constant 0.00999999977 : f32
    %416 = vector.broadcast %cst_222 : f32 to vector<8x128xf32>
    %417 = arith.mulf %416, %415 : vector<8x128xf32>
    %418 = arith.maximumf %415, %417 : vector<8x128xf32>
    %cst_223 = arith.constant dense<0.000000e+00> : vector<128xf32>
    %419 = vector.multi_reduction <add>, %418, %cst_223 [0] : vector<8x128xf32> to vector<128xf32>
    %420 = vector.shape_cast %419 : vector<128xf32> to vector<1x128xf32>
    %421 = arith.mulf %418, %418 : vector<8x128xf32>
    %cst_224 = arith.constant dense<0.000000e+00> : vector<128xf32>
    %422 = vector.multi_reduction <add>, %421, %cst_224 [0] : vector<8x128xf32> to vector<128xf32>
    %423 = vector.shape_cast %422 : vector<128xf32> to vector<1x128xf32>
    %cst_225 = arith.constant 1.250000e-01 : f32
    %424 = vector.broadcast %cst_225 : f32 to vector<1x128xf32>
    %425 = arith.mulf %420, %424 : vector<1x128xf32>
    %cst_226 = arith.constant 1.250000e-01 : f32
    %426 = vector.broadcast %cst_226 : f32 to vector<1x128xf32>
    %427 = arith.mulf %423, %426 : vector<1x128xf32>
    %428 = arith.mulf %425, %425 : vector<1x128xf32>
    %429 = arith.subf %427, %428 : vector<1x128xf32>
    %cst_227 = arith.constant 0.000000e+00 : f32
    %430 = vector.broadcast %cst_227 : f32 to vector<1x128xf32>
    %431 = arith.maximumf %429, %430 : vector<1x128xf32>
    %cst_228 = arith.constant 9.99999974E-6 : f32
    %432 = vector.broadcast %cst_228 : f32 to vector<1x128xf32>
    %433 = arith.addf %431, %432 : vector<1x128xf32>
    %434 = math.rsqrt %433 : vector<1x128xf32>
    %c11_229 = arith.constant 11 : index
    %c0_230 = arith.constant 0 : index
    %c0_231 = arith.constant 0 : index
    %435 = vector.load %arg3[%c11_229, %c0_230, %c0_231] : memref<20x1x128xf32, #tpu.memory_space<vmem>>, vector<1x1x128xf32>
    %436 = vector.shape_cast %435 : vector<1x1x128xf32> to vector<1x128xf32>
    %437 = arith.mulf %436, %434 : vector<1x128xf32>
    %c11_232 = arith.constant 11 : index
    %c0_233 = arith.constant 0 : index
    %c0_234 = arith.constant 0 : index
    %438 = vector.load %arg4[%c11_232, %c0_233, %c0_234] : memref<20x1x128xf32, #tpu.memory_space<vmem>>, vector<1x1x128xf32>
    %439 = vector.shape_cast %438 : vector<1x1x128xf32> to vector<1x128xf32>
    %440 = arith.mulf %425, %437 : vector<1x128xf32>
    %441 = arith.subf %439, %440 : vector<1x128xf32>
    %442 = vector.broadcast %437 : vector<1x128xf32> to vector<8x128xf32>
    %443 = arith.mulf %418, %442 : vector<8x128xf32>
    %444 = vector.broadcast %441 : vector<1x128xf32> to vector<8x128xf32>
    %445 = arith.addf %443, %444 : vector<8x128xf32>
    %c12 = arith.constant 12 : index
    %c0_235 = arith.constant 0 : index
    %c0_236 = arith.constant 0 : index
    %446 = vector.load %arg1[%c12, %c0_235, %c0_236] : memref<20x128x128xf32, #tpu.memory_space<vmem>>, vector<1x128x128xf32>
    %447 = vector.shape_cast %446 : vector<1x128x128xf32> to vector<128x128xf32>
    %cst_237 = arith.constant dense<0.000000e+00> : vector<8x128xf32>
    %448 = tpu.matmul %445, %447, %cst_237 {dimension_numbers = #tpu.dot_dimension_numbers<[1], [0], [0], [1], [0, 0, 1, 1], [], []>} : vector<8x128xf32>, vector<128x128xf32>, vector<8x128xf32> -> vector<8x128xf32>
    %c12_238 = arith.constant 12 : index
    %c0_239 = arith.constant 0 : index
    %c0_240 = arith.constant 0 : index
    %449 = vector.load %arg2[%c12_238, %c0_239, %c0_240] : memref<20x1x128xf32, #tpu.memory_space<vmem>>, vector<1x1x128xf32>
    %450 = vector.shape_cast %449 : vector<1x1x128xf32> to vector<1x128xf32>
    %451 = vector.broadcast %450 : vector<1x128xf32> to vector<8x128xf32>
    %452 = arith.addf %448, %451 : vector<8x128xf32>
    %cst_241 = arith.constant 0.00999999977 : f32
    %453 = vector.broadcast %cst_241 : f32 to vector<8x128xf32>
    %454 = arith.mulf %453, %452 : vector<8x128xf32>
    %455 = arith.maximumf %452, %454 : vector<8x128xf32>
    %cst_242 = arith.constant dense<0.000000e+00> : vector<128xf32>
    %456 = vector.multi_reduction <add>, %455, %cst_242 [0] : vector<8x128xf32> to vector<128xf32>
    %457 = vector.shape_cast %456 : vector<128xf32> to vector<1x128xf32>
    %458 = arith.mulf %455, %455 : vector<8x128xf32>
    %cst_243 = arith.constant dense<0.000000e+00> : vector<128xf32>
    %459 = vector.multi_reduction <add>, %458, %cst_243 [0] : vector<8x128xf32> to vector<128xf32>
    %460 = vector.shape_cast %459 : vector<128xf32> to vector<1x128xf32>
    %cst_244 = arith.constant 1.250000e-01 : f32
    %461 = vector.broadcast %cst_244 : f32 to vector<1x128xf32>
    %462 = arith.mulf %457, %461 : vector<1x128xf32>
    %cst_245 = arith.constant 1.250000e-01 : f32
    %463 = vector.broadcast %cst_245 : f32 to vector<1x128xf32>
    %464 = arith.mulf %460, %463 : vector<1x128xf32>
    %465 = arith.mulf %462, %462 : vector<1x128xf32>
    %466 = arith.subf %464, %465 : vector<1x128xf32>
    %cst_246 = arith.constant 0.000000e+00 : f32
    %467 = vector.broadcast %cst_246 : f32 to vector<1x128xf32>
    %468 = arith.maximumf %466, %467 : vector<1x128xf32>
    %cst_247 = arith.constant 9.99999974E-6 : f32
    %469 = vector.broadcast %cst_247 : f32 to vector<1x128xf32>
    %470 = arith.addf %468, %469 : vector<1x128xf32>
    %471 = math.rsqrt %470 : vector<1x128xf32>
    %c12_248 = arith.constant 12 : index
    %c0_249 = arith.constant 0 : index
    %c0_250 = arith.constant 0 : index
    %472 = vector.load %arg3[%c12_248, %c0_249, %c0_250] : memref<20x1x128xf32, #tpu.memory_space<vmem>>, vector<1x1x128xf32>
    %473 = vector.shape_cast %472 : vector<1x1x128xf32> to vector<1x128xf32>
    %474 = arith.mulf %473, %471 : vector<1x128xf32>
    %c12_251 = arith.constant 12 : index
    %c0_252 = arith.constant 0 : index
    %c0_253 = arith.constant 0 : index
    %475 = vector.load %arg4[%c12_251, %c0_252, %c0_253] : memref<20x1x128xf32, #tpu.memory_space<vmem>>, vector<1x1x128xf32>
    %476 = vector.shape_cast %475 : vector<1x1x128xf32> to vector<1x128xf32>
    %477 = arith.mulf %462, %474 : vector<1x128xf32>
    %478 = arith.subf %476, %477 : vector<1x128xf32>
    %479 = vector.broadcast %474 : vector<1x128xf32> to vector<8x128xf32>
    %480 = arith.mulf %455, %479 : vector<8x128xf32>
    %481 = vector.broadcast %478 : vector<1x128xf32> to vector<8x128xf32>
    %482 = arith.addf %480, %481 : vector<8x128xf32>
    %c13 = arith.constant 13 : index
    %c0_254 = arith.constant 0 : index
    %c0_255 = arith.constant 0 : index
    %483 = vector.load %arg1[%c13, %c0_254, %c0_255] : memref<20x128x128xf32, #tpu.memory_space<vmem>>, vector<1x128x128xf32>
    %484 = vector.shape_cast %483 : vector<1x128x128xf32> to vector<128x128xf32>
    %cst_256 = arith.constant dense<0.000000e+00> : vector<8x128xf32>
    %485 = tpu.matmul %482, %484, %cst_256 {dimension_numbers = #tpu.dot_dimension_numbers<[1], [0], [0], [1], [0, 0, 1, 1], [], []>} : vector<8x128xf32>, vector<128x128xf32>, vector<8x128xf32> -> vector<8x128xf32>
    %c13_257 = arith.constant 13 : index
    %c0_258 = arith.constant 0 : index
    %c0_259 = arith.constant 0 : index
    %486 = vector.load %arg2[%c13_257, %c0_258, %c0_259] : memref<20x1x128xf32, #tpu.memory_space<vmem>>, vector<1x1x128xf32>
    %487 = vector.shape_cast %486 : vector<1x1x128xf32> to vector<1x128xf32>
    %488 = vector.broadcast %487 : vector<1x128xf32> to vector<8x128xf32>
    %489 = arith.addf %485, %488 : vector<8x128xf32>
    %cst_260 = arith.constant 0.00999999977 : f32
    %490 = vector.broadcast %cst_260 : f32 to vector<8x128xf32>
    %491 = arith.mulf %490, %489 : vector<8x128xf32>
    %492 = arith.maximumf %489, %491 : vector<8x128xf32>
    %cst_261 = arith.constant dense<0.000000e+00> : vector<128xf32>
    %493 = vector.multi_reduction <add>, %492, %cst_261 [0] : vector<8x128xf32> to vector<128xf32>
    %494 = vector.shape_cast %493 : vector<128xf32> to vector<1x128xf32>
    %495 = arith.mulf %492, %492 : vector<8x128xf32>
    %cst_262 = arith.constant dense<0.000000e+00> : vector<128xf32>
    %496 = vector.multi_reduction <add>, %495, %cst_262 [0] : vector<8x128xf32> to vector<128xf32>
    %497 = vector.shape_cast %496 : vector<128xf32> to vector<1x128xf32>
    %cst_263 = arith.constant 1.250000e-01 : f32
    %498 = vector.broadcast %cst_263 : f32 to vector<1x128xf32>
    %499 = arith.mulf %494, %498 : vector<1x128xf32>
    %cst_264 = arith.constant 1.250000e-01 : f32
    %500 = vector.broadcast %cst_264 : f32 to vector<1x128xf32>
    %501 = arith.mulf %497, %500 : vector<1x128xf32>
    %502 = arith.mulf %499, %499 : vector<1x128xf32>
    %503 = arith.subf %501, %502 : vector<1x128xf32>
    %cst_265 = arith.constant 0.000000e+00 : f32
    %504 = vector.broadcast %cst_265 : f32 to vector<1x128xf32>
    %505 = arith.maximumf %503, %504 : vector<1x128xf32>
    %cst_266 = arith.constant 9.99999974E-6 : f32
    %506 = vector.broadcast %cst_266 : f32 to vector<1x128xf32>
    %507 = arith.addf %505, %506 : vector<1x128xf32>
    %508 = math.rsqrt %507 : vector<1x128xf32>
    %c13_267 = arith.constant 13 : index
    %c0_268 = arith.constant 0 : index
    %c0_269 = arith.constant 0 : index
    %509 = vector.load %arg3[%c13_267, %c0_268, %c0_269] : memref<20x1x128xf32, #tpu.memory_space<vmem>>, vector<1x1x128xf32>
    %510 = vector.shape_cast %509 : vector<1x1x128xf32> to vector<1x128xf32>
    %511 = arith.mulf %510, %508 : vector<1x128xf32>
    %c13_270 = arith.constant 13 : index
    %c0_271 = arith.constant 0 : index
    %c0_272 = arith.constant 0 : index
    %512 = vector.load %arg4[%c13_270, %c0_271, %c0_272] : memref<20x1x128xf32, #tpu.memory_space<vmem>>, vector<1x1x128xf32>
    %513 = vector.shape_cast %512 : vector<1x1x128xf32> to vector<1x128xf32>
    %514 = arith.mulf %499, %511 : vector<1x128xf32>
    %515 = arith.subf %513, %514 : vector<1x128xf32>
    %516 = vector.broadcast %511 : vector<1x128xf32> to vector<8x128xf32>
    %517 = arith.mulf %492, %516 : vector<8x128xf32>
    %518 = vector.broadcast %515 : vector<1x128xf32> to vector<8x128xf32>
    %519 = arith.addf %517, %518 : vector<8x128xf32>
    %c14 = arith.constant 14 : index
    %c0_273 = arith.constant 0 : index
    %c0_274 = arith.constant 0 : index
    %520 = vector.load %arg1[%c14, %c0_273, %c0_274] : memref<20x128x128xf32, #tpu.memory_space<vmem>>, vector<1x128x128xf32>
    %521 = vector.shape_cast %520 : vector<1x128x128xf32> to vector<128x128xf32>
    %cst_275 = arith.constant dense<0.000000e+00> : vector<8x128xf32>
    %522 = tpu.matmul %519, %521, %cst_275 {dimension_numbers = #tpu.dot_dimension_numbers<[1], [0], [0], [1], [0, 0, 1, 1], [], []>} : vector<8x128xf32>, vector<128x128xf32>, vector<8x128xf32> -> vector<8x128xf32>
    %c14_276 = arith.constant 14 : index
    %c0_277 = arith.constant 0 : index
    %c0_278 = arith.constant 0 : index
    %523 = vector.load %arg2[%c14_276, %c0_277, %c0_278] : memref<20x1x128xf32, #tpu.memory_space<vmem>>, vector<1x1x128xf32>
    %524 = vector.shape_cast %523 : vector<1x1x128xf32> to vector<1x128xf32>
    %525 = vector.broadcast %524 : vector<1x128xf32> to vector<8x128xf32>
    %526 = arith.addf %522, %525 : vector<8x128xf32>
    %cst_279 = arith.constant 0.00999999977 : f32
    %527 = vector.broadcast %cst_279 : f32 to vector<8x128xf32>
    %528 = arith.mulf %527, %526 : vector<8x128xf32>
    %529 = arith.maximumf %526, %528 : vector<8x128xf32>
    %cst_280 = arith.constant dense<0.000000e+00> : vector<128xf32>
    %530 = vector.multi_reduction <add>, %529, %cst_280 [0] : vector<8x128xf32> to vector<128xf32>
    %531 = vector.shape_cast %530 : vector<128xf32> to vector<1x128xf32>
    %532 = arith.mulf %529, %529 : vector<8x128xf32>
    %cst_281 = arith.constant dense<0.000000e+00> : vector<128xf32>
    %533 = vector.multi_reduction <add>, %532, %cst_281 [0] : vector<8x128xf32> to vector<128xf32>
    %534 = vector.shape_cast %533 : vector<128xf32> to vector<1x128xf32>
    %cst_282 = arith.constant 1.250000e-01 : f32
    %535 = vector.broadcast %cst_282 : f32 to vector<1x128xf32>
    %536 = arith.mulf %531, %535 : vector<1x128xf32>
    %cst_283 = arith.constant 1.250000e-01 : f32
    %537 = vector.broadcast %cst_283 : f32 to vector<1x128xf32>
    %538 = arith.mulf %534, %537 : vector<1x128xf32>
    %539 = arith.mulf %536, %536 : vector<1x128xf32>
    %540 = arith.subf %538, %539 : vector<1x128xf32>
    %cst_284 = arith.constant 0.000000e+00 : f32
    %541 = vector.broadcast %cst_284 : f32 to vector<1x128xf32>
    %542 = arith.maximumf %540, %541 : vector<1x128xf32>
    %cst_285 = arith.constant 9.99999974E-6 : f32
    %543 = vector.broadcast %cst_285 : f32 to vector<1x128xf32>
    %544 = arith.addf %542, %543 : vector<1x128xf32>
    %545 = math.rsqrt %544 : vector<1x128xf32>
    %c14_286 = arith.constant 14 : index
    %c0_287 = arith.constant 0 : index
    %c0_288 = arith.constant 0 : index
    %546 = vector.load %arg3[%c14_286, %c0_287, %c0_288] : memref<20x1x128xf32, #tpu.memory_space<vmem>>, vector<1x1x128xf32>
    %547 = vector.shape_cast %546 : vector<1x1x128xf32> to vector<1x128xf32>
    %548 = arith.mulf %547, %545 : vector<1x128xf32>
    %c14_289 = arith.constant 14 : index
    %c0_290 = arith.constant 0 : index
    %c0_291 = arith.constant 0 : index
    %549 = vector.load %arg4[%c14_289, %c0_290, %c0_291] : memref<20x1x128xf32, #tpu.memory_space<vmem>>, vector<1x1x128xf32>
    %550 = vector.shape_cast %549 : vector<1x1x128xf32> to vector<1x128xf32>
    %551 = arith.mulf %536, %548 : vector<1x128xf32>
    %552 = arith.subf %550, %551 : vector<1x128xf32>
    %553 = vector.broadcast %548 : vector<1x128xf32> to vector<8x128xf32>
    %554 = arith.mulf %529, %553 : vector<8x128xf32>
    %555 = vector.broadcast %552 : vector<1x128xf32> to vector<8x128xf32>
    %556 = arith.addf %554, %555 : vector<8x128xf32>
    %c15 = arith.constant 15 : index
    %c0_292 = arith.constant 0 : index
    %c0_293 = arith.constant 0 : index
    %557 = vector.load %arg1[%c15, %c0_292, %c0_293] : memref<20x128x128xf32, #tpu.memory_space<vmem>>, vector<1x128x128xf32>
    %558 = vector.shape_cast %557 : vector<1x128x128xf32> to vector<128x128xf32>
    %cst_294 = arith.constant dense<0.000000e+00> : vector<8x128xf32>
    %559 = tpu.matmul %556, %558, %cst_294 {dimension_numbers = #tpu.dot_dimension_numbers<[1], [0], [0], [1], [0, 0, 1, 1], [], []>} : vector<8x128xf32>, vector<128x128xf32>, vector<8x128xf32> -> vector<8x128xf32>
    %c15_295 = arith.constant 15 : index
    %c0_296 = arith.constant 0 : index
    %c0_297 = arith.constant 0 : index
    %560 = vector.load %arg2[%c15_295, %c0_296, %c0_297] : memref<20x1x128xf32, #tpu.memory_space<vmem>>, vector<1x1x128xf32>
    %561 = vector.shape_cast %560 : vector<1x1x128xf32> to vector<1x128xf32>
    %562 = vector.broadcast %561 : vector<1x128xf32> to vector<8x128xf32>
    %563 = arith.addf %559, %562 : vector<8x128xf32>
    %cst_298 = arith.constant 0.00999999977 : f32
    %564 = vector.broadcast %cst_298 : f32 to vector<8x128xf32>
    %565 = arith.mulf %564, %563 : vector<8x128xf32>
    %566 = arith.maximumf %563, %565 : vector<8x128xf32>
    %cst_299 = arith.constant dense<0.000000e+00> : vector<128xf32>
    %567 = vector.multi_reduction <add>, %566, %cst_299 [0] : vector<8x128xf32> to vector<128xf32>
    %568 = vector.shape_cast %567 : vector<128xf32> to vector<1x128xf32>
    %569 = arith.mulf %566, %566 : vector<8x128xf32>
    %cst_300 = arith.constant dense<0.000000e+00> : vector<128xf32>
    %570 = vector.multi_reduction <add>, %569, %cst_300 [0] : vector<8x128xf32> to vector<128xf32>
    %571 = vector.shape_cast %570 : vector<128xf32> to vector<1x128xf32>
    %cst_301 = arith.constant 1.250000e-01 : f32
    %572 = vector.broadcast %cst_301 : f32 to vector<1x128xf32>
    %573 = arith.mulf %568, %572 : vector<1x128xf32>
    %cst_302 = arith.constant 1.250000e-01 : f32
    %574 = vector.broadcast %cst_302 : f32 to vector<1x128xf32>
    %575 = arith.mulf %571, %574 : vector<1x128xf32>
    %576 = arith.mulf %573, %573 : vector<1x128xf32>
    %577 = arith.subf %575, %576 : vector<1x128xf32>
    %cst_303 = arith.constant 0.000000e+00 : f32
    %578 = vector.broadcast %cst_303 : f32 to vector<1x128xf32>
    %579 = arith.maximumf %577, %578 : vector<1x128xf32>
    %cst_304 = arith.constant 9.99999974E-6 : f32
    %580 = vector.broadcast %cst_304 : f32 to vector<1x128xf32>
    %581 = arith.addf %579, %580 : vector<1x128xf32>
    %582 = math.rsqrt %581 : vector<1x128xf32>
    %c15_305 = arith.constant 15 : index
    %c0_306 = arith.constant 0 : index
    %c0_307 = arith.constant 0 : index
    %583 = vector.load %arg3[%c15_305, %c0_306, %c0_307] : memref<20x1x128xf32, #tpu.memory_space<vmem>>, vector<1x1x128xf32>
    %584 = vector.shape_cast %583 : vector<1x1x128xf32> to vector<1x128xf32>
    %585 = arith.mulf %584, %582 : vector<1x128xf32>
    %c15_308 = arith.constant 15 : index
    %c0_309 = arith.constant 0 : index
    %c0_310 = arith.constant 0 : index
    %586 = vector.load %arg4[%c15_308, %c0_309, %c0_310] : memref<20x1x128xf32, #tpu.memory_space<vmem>>, vector<1x1x128xf32>
    %587 = vector.shape_cast %586 : vector<1x1x128xf32> to vector<1x128xf32>
    %588 = arith.mulf %573, %585 : vector<1x128xf32>
    %589 = arith.subf %587, %588 : vector<1x128xf32>
    %590 = vector.broadcast %585 : vector<1x128xf32> to vector<8x128xf32>
    %591 = arith.mulf %566, %590 : vector<8x128xf32>
    %592 = vector.broadcast %589 : vector<1x128xf32> to vector<8x128xf32>
    %593 = arith.addf %591, %592 : vector<8x128xf32>
    %c16 = arith.constant 16 : index
    %c0_311 = arith.constant 0 : index
    %c0_312 = arith.constant 0 : index
    %594 = vector.load %arg1[%c16, %c0_311, %c0_312] : memref<20x128x128xf32, #tpu.memory_space<vmem>>, vector<1x128x128xf32>
    %595 = vector.shape_cast %594 : vector<1x128x128xf32> to vector<128x128xf32>
    %cst_313 = arith.constant dense<0.000000e+00> : vector<8x128xf32>
    %596 = tpu.matmul %593, %595, %cst_313 {dimension_numbers = #tpu.dot_dimension_numbers<[1], [0], [0], [1], [0, 0, 1, 1], [], []>} : vector<8x128xf32>, vector<128x128xf32>, vector<8x128xf32> -> vector<8x128xf32>
    %c16_314 = arith.constant 16 : index
    %c0_315 = arith.constant 0 : index
    %c0_316 = arith.constant 0 : index
    %597 = vector.load %arg2[%c16_314, %c0_315, %c0_316] : memref<20x1x128xf32, #tpu.memory_space<vmem>>, vector<1x1x128xf32>
    %598 = vector.shape_cast %597 : vector<1x1x128xf32> to vector<1x128xf32>
    %599 = vector.broadcast %598 : vector<1x128xf32> to vector<8x128xf32>
    %600 = arith.addf %596, %599 : vector<8x128xf32>
    %cst_317 = arith.constant 0.00999999977 : f32
    %601 = vector.broadcast %cst_317 : f32 to vector<8x128xf32>
    %602 = arith.mulf %601, %600 : vector<8x128xf32>
    %603 = arith.maximumf %600, %602 : vector<8x128xf32>
    %cst_318 = arith.constant dense<0.000000e+00> : vector<128xf32>
    %604 = vector.multi_reduction <add>, %603, %cst_318 [0] : vector<8x128xf32> to vector<128xf32>
    %605 = vector.shape_cast %604 : vector<128xf32> to vector<1x128xf32>
    %606 = arith.mulf %603, %603 : vector<8x128xf32>
    %cst_319 = arith.constant dense<0.000000e+00> : vector<128xf32>
    %607 = vector.multi_reduction <add>, %606, %cst_319 [0] : vector<8x128xf32> to vector<128xf32>
    %608 = vector.shape_cast %607 : vector<128xf32> to vector<1x128xf32>
    %cst_320 = arith.constant 1.250000e-01 : f32
    %609 = vector.broadcast %cst_320 : f32 to vector<1x128xf32>
    %610 = arith.mulf %605, %609 : vector<1x128xf32>
    %cst_321 = arith.constant 1.250000e-01 : f32
    %611 = vector.broadcast %cst_321 : f32 to vector<1x128xf32>
    %612 = arith.mulf %608, %611 : vector<1x128xf32>
    %613 = arith.mulf %610, %610 : vector<1x128xf32>
    %614 = arith.subf %612, %613 : vector<1x128xf32>
    %cst_322 = arith.constant 0.000000e+00 : f32
    %615 = vector.broadcast %cst_322 : f32 to vector<1x128xf32>
    %616 = arith.maximumf %614, %615 : vector<1x128xf32>
    %cst_323 = arith.constant 9.99999974E-6 : f32
    %617 = vector.broadcast %cst_323 : f32 to vector<1x128xf32>
    %618 = arith.addf %616, %617 : vector<1x128xf32>
    %619 = math.rsqrt %618 : vector<1x128xf32>
    %c16_324 = arith.constant 16 : index
    %c0_325 = arith.constant 0 : index
    %c0_326 = arith.constant 0 : index
    %620 = vector.load %arg3[%c16_324, %c0_325, %c0_326] : memref<20x1x128xf32, #tpu.memory_space<vmem>>, vector<1x1x128xf32>
    %621 = vector.shape_cast %620 : vector<1x1x128xf32> to vector<1x128xf32>
    %622 = arith.mulf %621, %619 : vector<1x128xf32>
    %c16_327 = arith.constant 16 : index
    %c0_328 = arith.constant 0 : index
    %c0_329 = arith.constant 0 : index
    %623 = vector.load %arg4[%c16_327, %c0_328, %c0_329] : memref<20x1x128xf32, #tpu.memory_space<vmem>>, vector<1x1x128xf32>
    %624 = vector.shape_cast %623 : vector<1x1x128xf32> to vector<1x128xf32>
    %625 = arith.mulf %610, %622 : vector<1x128xf32>
    %626 = arith.subf %624, %625 : vector<1x128xf32>
    %627 = vector.broadcast %622 : vector<1x128xf32> to vector<8x128xf32>
    %628 = arith.mulf %603, %627 : vector<8x128xf32>
    %629 = vector.broadcast %626 : vector<1x128xf32> to vector<8x128xf32>
    %630 = arith.addf %628, %629 : vector<8x128xf32>
    %c17 = arith.constant 17 : index
    %c0_330 = arith.constant 0 : index
    %c0_331 = arith.constant 0 : index
    %631 = vector.load %arg1[%c17, %c0_330, %c0_331] : memref<20x128x128xf32, #tpu.memory_space<vmem>>, vector<1x128x128xf32>
    %632 = vector.shape_cast %631 : vector<1x128x128xf32> to vector<128x128xf32>
    %cst_332 = arith.constant dense<0.000000e+00> : vector<8x128xf32>
    %633 = tpu.matmul %630, %632, %cst_332 {dimension_numbers = #tpu.dot_dimension_numbers<[1], [0], [0], [1], [0, 0, 1, 1], [], []>} : vector<8x128xf32>, vector<128x128xf32>, vector<8x128xf32> -> vector<8x128xf32>
    %c17_333 = arith.constant 17 : index
    %c0_334 = arith.constant 0 : index
    %c0_335 = arith.constant 0 : index
    %634 = vector.load %arg2[%c17_333, %c0_334, %c0_335] : memref<20x1x128xf32, #tpu.memory_space<vmem>>, vector<1x1x128xf32>
    %635 = vector.shape_cast %634 : vector<1x1x128xf32> to vector<1x128xf32>
    %636 = vector.broadcast %635 : vector<1x128xf32> to vector<8x128xf32>
    %637 = arith.addf %633, %636 : vector<8x128xf32>
    %cst_336 = arith.constant 0.00999999977 : f32
    %638 = vector.broadcast %cst_336 : f32 to vector<8x128xf32>
    %639 = arith.mulf %638, %637 : vector<8x128xf32>
    %640 = arith.maximumf %637, %639 : vector<8x128xf32>
    %cst_337 = arith.constant dense<0.000000e+00> : vector<128xf32>
    %641 = vector.multi_reduction <add>, %640, %cst_337 [0] : vector<8x128xf32> to vector<128xf32>
    %642 = vector.shape_cast %641 : vector<128xf32> to vector<1x128xf32>
    %643 = arith.mulf %640, %640 : vector<8x128xf32>
    %cst_338 = arith.constant dense<0.000000e+00> : vector<128xf32>
    %644 = vector.multi_reduction <add>, %643, %cst_338 [0] : vector<8x128xf32> to vector<128xf32>
    %645 = vector.shape_cast %644 : vector<128xf32> to vector<1x128xf32>
    %cst_339 = arith.constant 1.250000e-01 : f32
    %646 = vector.broadcast %cst_339 : f32 to vector<1x128xf32>
    %647 = arith.mulf %642, %646 : vector<1x128xf32>
    %cst_340 = arith.constant 1.250000e-01 : f32
    %648 = vector.broadcast %cst_340 : f32 to vector<1x128xf32>
    %649 = arith.mulf %645, %648 : vector<1x128xf32>
    %650 = arith.mulf %647, %647 : vector<1x128xf32>
    %651 = arith.subf %649, %650 : vector<1x128xf32>
    %cst_341 = arith.constant 0.000000e+00 : f32
    %652 = vector.broadcast %cst_341 : f32 to vector<1x128xf32>
    %653 = arith.maximumf %651, %652 : vector<1x128xf32>
    %cst_342 = arith.constant 9.99999974E-6 : f32
    %654 = vector.broadcast %cst_342 : f32 to vector<1x128xf32>
    %655 = arith.addf %653, %654 : vector<1x128xf32>
    %656 = math.rsqrt %655 : vector<1x128xf32>
    %c17_343 = arith.constant 17 : index
    %c0_344 = arith.constant 0 : index
    %c0_345 = arith.constant 0 : index
    %657 = vector.load %arg3[%c17_343, %c0_344, %c0_345] : memref<20x1x128xf32, #tpu.memory_space<vmem>>, vector<1x1x128xf32>
    %658 = vector.shape_cast %657 : vector<1x1x128xf32> to vector<1x128xf32>
    %659 = arith.mulf %658, %656 : vector<1x128xf32>
    %c17_346 = arith.constant 17 : index
    %c0_347 = arith.constant 0 : index
    %c0_348 = arith.constant 0 : index
    %660 = vector.load %arg4[%c17_346, %c0_347, %c0_348] : memref<20x1x128xf32, #tpu.memory_space<vmem>>, vector<1x1x128xf32>
    %661 = vector.shape_cast %660 : vector<1x1x128xf32> to vector<1x128xf32>
    %662 = arith.mulf %647, %659 : vector<1x128xf32>
    %663 = arith.subf %661, %662 : vector<1x128xf32>
    %664 = vector.broadcast %659 : vector<1x128xf32> to vector<8x128xf32>
    %665 = arith.mulf %640, %664 : vector<8x128xf32>
    %666 = vector.broadcast %663 : vector<1x128xf32> to vector<8x128xf32>
    %667 = arith.addf %665, %666 : vector<8x128xf32>
    %c18 = arith.constant 18 : index
    %c0_349 = arith.constant 0 : index
    %c0_350 = arith.constant 0 : index
    %668 = vector.load %arg1[%c18, %c0_349, %c0_350] : memref<20x128x128xf32, #tpu.memory_space<vmem>>, vector<1x128x128xf32>
    %669 = vector.shape_cast %668 : vector<1x128x128xf32> to vector<128x128xf32>
    %cst_351 = arith.constant dense<0.000000e+00> : vector<8x128xf32>
    %670 = tpu.matmul %667, %669, %cst_351 {dimension_numbers = #tpu.dot_dimension_numbers<[1], [0], [0], [1], [0, 0, 1, 1], [], []>} : vector<8x128xf32>, vector<128x128xf32>, vector<8x128xf32> -> vector<8x128xf32>
    %c18_352 = arith.constant 18 : index
    %c0_353 = arith.constant 0 : index
    %c0_354 = arith.constant 0 : index
    %671 = vector.load %arg2[%c18_352, %c0_353, %c0_354] : memref<20x1x128xf32, #tpu.memory_space<vmem>>, vector<1x1x128xf32>
    %672 = vector.shape_cast %671 : vector<1x1x128xf32> to vector<1x128xf32>
    %673 = vector.broadcast %672 : vector<1x128xf32> to vector<8x128xf32>
    %674 = arith.addf %670, %673 : vector<8x128xf32>
    %cst_355 = arith.constant 0.00999999977 : f32
    %675 = vector.broadcast %cst_355 : f32 to vector<8x128xf32>
    %676 = arith.mulf %675, %674 : vector<8x128xf32>
    %677 = arith.maximumf %674, %676 : vector<8x128xf32>
    %cst_356 = arith.constant dense<0.000000e+00> : vector<128xf32>
    %678 = vector.multi_reduction <add>, %677, %cst_356 [0] : vector<8x128xf32> to vector<128xf32>
    %679 = vector.shape_cast %678 : vector<128xf32> to vector<1x128xf32>
    %680 = arith.mulf %677, %677 : vector<8x128xf32>
    %cst_357 = arith.constant dense<0.000000e+00> : vector<128xf32>
    %681 = vector.multi_reduction <add>, %680, %cst_357 [0] : vector<8x128xf32> to vector<128xf32>
    %682 = vector.shape_cast %681 : vector<128xf32> to vector<1x128xf32>
    %cst_358 = arith.constant 1.250000e-01 : f32
    %683 = vector.broadcast %cst_358 : f32 to vector<1x128xf32>
    %684 = arith.mulf %679, %683 : vector<1x128xf32>
    %cst_359 = arith.constant 1.250000e-01 : f32
    %685 = vector.broadcast %cst_359 : f32 to vector<1x128xf32>
    %686 = arith.mulf %682, %685 : vector<1x128xf32>
    %687 = arith.mulf %684, %684 : vector<1x128xf32>
    %688 = arith.subf %686, %687 : vector<1x128xf32>
    %cst_360 = arith.constant 0.000000e+00 : f32
    %689 = vector.broadcast %cst_360 : f32 to vector<1x128xf32>
    %690 = arith.maximumf %688, %689 : vector<1x128xf32>
    %cst_361 = arith.constant 9.99999974E-6 : f32
    %691 = vector.broadcast %cst_361 : f32 to vector<1x128xf32>
    %692 = arith.addf %690, %691 : vector<1x128xf32>
    %693 = math.rsqrt %692 : vector<1x128xf32>
    %c18_362 = arith.constant 18 : index
    %c0_363 = arith.constant 0 : index
    %c0_364 = arith.constant 0 : index
    %694 = vector.load %arg3[%c18_362, %c0_363, %c0_364] : memref<20x1x128xf32, #tpu.memory_space<vmem>>, vector<1x1x128xf32>
    %695 = vector.shape_cast %694 : vector<1x1x128xf32> to vector<1x128xf32>
    %696 = arith.mulf %695, %693 : vector<1x128xf32>
    %c18_365 = arith.constant 18 : index
    %c0_366 = arith.constant 0 : index
    %c0_367 = arith.constant 0 : index
    %697 = vector.load %arg4[%c18_365, %c0_366, %c0_367] : memref<20x1x128xf32, #tpu.memory_space<vmem>>, vector<1x1x128xf32>
    %698 = vector.shape_cast %697 : vector<1x1x128xf32> to vector<1x128xf32>
    %699 = arith.mulf %684, %696 : vector<1x128xf32>
    %700 = arith.subf %698, %699 : vector<1x128xf32>
    %701 = vector.broadcast %696 : vector<1x128xf32> to vector<8x128xf32>
    %702 = arith.mulf %677, %701 : vector<8x128xf32>
    %703 = vector.broadcast %700 : vector<1x128xf32> to vector<8x128xf32>
    %704 = arith.addf %702, %703 : vector<8x128xf32>
    %c19 = arith.constant 19 : index
    %c0_368 = arith.constant 0 : index
    %c0_369 = arith.constant 0 : index
    %705 = vector.load %arg1[%c19, %c0_368, %c0_369] : memref<20x128x128xf32, #tpu.memory_space<vmem>>, vector<1x128x128xf32>
    %706 = vector.shape_cast %705 : vector<1x128x128xf32> to vector<128x128xf32>
    %cst_370 = arith.constant dense<0.000000e+00> : vector<8x128xf32>
    %707 = tpu.matmul %704, %706, %cst_370 {dimension_numbers = #tpu.dot_dimension_numbers<[1], [0], [0], [1], [0, 0, 1, 1], [], []>} : vector<8x128xf32>, vector<128x128xf32>, vector<8x128xf32> -> vector<8x128xf32>
    %c19_371 = arith.constant 19 : index
    %c0_372 = arith.constant 0 : index
    %c0_373 = arith.constant 0 : index
    %708 = vector.load %arg2[%c19_371, %c0_372, %c0_373] : memref<20x1x128xf32, #tpu.memory_space<vmem>>, vector<1x1x128xf32>
    %709 = vector.shape_cast %708 : vector<1x1x128xf32> to vector<1x128xf32>
    %710 = vector.broadcast %709 : vector<1x128xf32> to vector<8x128xf32>
    %711 = arith.addf %707, %710 : vector<8x128xf32>
    %cst_374 = arith.constant dense<0.000000e+00> : vector<128xf32>
    %712 = vector.multi_reduction <add>, %711, %cst_374 [0] : vector<8x128xf32> to vector<128xf32>
    %713 = vector.shape_cast %712 : vector<128xf32> to vector<1x128xf32>
    %714 = arith.mulf %711, %711 : vector<8x128xf32>
    %cst_375 = arith.constant dense<0.000000e+00> : vector<128xf32>
    %715 = vector.multi_reduction <add>, %714, %cst_375 [0] : vector<8x128xf32> to vector<128xf32>
    %716 = vector.shape_cast %715 : vector<128xf32> to vector<1x128xf32>
    %cst_376 = arith.constant 1.250000e-01 : f32
    %717 = vector.broadcast %cst_376 : f32 to vector<1x128xf32>
    %718 = arith.mulf %713, %717 : vector<1x128xf32>
    %cst_377 = arith.constant 1.250000e-01 : f32
    %719 = vector.broadcast %cst_377 : f32 to vector<1x128xf32>
    %720 = arith.mulf %716, %719 : vector<1x128xf32>
    %721 = arith.mulf %718, %718 : vector<1x128xf32>
    %722 = arith.subf %720, %721 : vector<1x128xf32>
    %cst_378 = arith.constant 0.000000e+00 : f32
    %723 = vector.broadcast %cst_378 : f32 to vector<1x128xf32>
    %724 = arith.maximumf %722, %723 : vector<1x128xf32>
    %cst_379 = arith.constant 9.99999974E-6 : f32
    %725 = vector.broadcast %cst_379 : f32 to vector<1x128xf32>
    %726 = arith.addf %724, %725 : vector<1x128xf32>
    %727 = math.rsqrt %726 : vector<1x128xf32>
    %c19_380 = arith.constant 19 : index
    %c0_381 = arith.constant 0 : index
    %c0_382 = arith.constant 0 : index
    %728 = vector.load %arg3[%c19_380, %c0_381, %c0_382] : memref<20x1x128xf32, #tpu.memory_space<vmem>>, vector<1x1x128xf32>
    %729 = vector.shape_cast %728 : vector<1x1x128xf32> to vector<1x128xf32>
    %730 = arith.mulf %729, %727 : vector<1x128xf32>
    %c19_383 = arith.constant 19 : index
    %c0_384 = arith.constant 0 : index
    %c0_385 = arith.constant 0 : index
    %731 = vector.load %arg4[%c19_383, %c0_384, %c0_385] : memref<20x1x128xf32, #tpu.memory_space<vmem>>, vector<1x1x128xf32>
    %732 = vector.shape_cast %731 : vector<1x1x128xf32> to vector<1x128xf32>
    %733 = arith.mulf %718, %730 : vector<1x128xf32>
    %734 = arith.subf %732, %733 : vector<1x128xf32>
    %735 = vector.broadcast %730 : vector<1x128xf32> to vector<8x128xf32>
    %736 = arith.mulf %711, %735 : vector<8x128xf32>
    %737 = vector.broadcast %734 : vector<1x128xf32> to vector<8x128xf32>
    %738 = arith.addf %736, %737 : vector<8x128xf32>
    %c0_386 = arith.constant 0 : index
    %c0_387 = arith.constant 0 : index
    %739 = vector.load %arg5[%c0_386, %c0_387] : memref<8x128xf32, #tpu.memory_space<vmem>>, vector<8x128xf32>
    tpu.vector_store %arg5[%c0_386, %c0_387], %738 {strides = array<i32>} : memref<8x128xf32, #tpu.memory_space<vmem>>, vector<8x128xf32>,
    return
  }
}

</mosaic_0001>

<bundles_post_ra>
// kernel: ae_forward_fused.1
= control target key start
LH: loop header
LB: loop body
LE: loop exit
PB: predicated region body
PF: predicated region fallthrough
CT: control target
= control target key end

     0   :  { %10 = vsyncpa [#allocation4], 0  ;;  %s4962_s0 = inlined_call_operand.hbm [shape: f32[8,64], index: 0, kind: input, shape index: {}]   ;;  %s4963_s1 = inlined_call_operand.hbm [shape: f32[20,128,128], index: 1, kind: input, shape index: {}]   ;;  %s4964_s2 = inlined_call_operand.hbm [shape: f32[20,1,128], index: 2, kind: input, shape index: {}]   ;;  %s4965_s3 = inlined_call_operand.hbm [shape: f32[20,1,128], index: 3, kind: input, shape index: {}]   ;;  %s4966_s4 = inlined_call_operand.hbm [shape: f32[20,1,128], index: 4, kind: input, shape index: {}]   ;;  %s4967_s5 = inlined_call_operand.hbm [shape: f32[8,128], index: 5, kind: output, shape index: {}]  }
   0x1   :  { %11 = vsyncpa [#allocation7], 0 }
   0x2   :  { %12 = vsyncpa [#allocation10], 0 }
   0x3   :  { %13 = vsyncpa [#allocation5], 0  ;;  %s4595_s18 = smov [#allocation6]   ;;  %s4455_s22 = scalar_lea.hbm %s4963_s1, 40960 }
   0x4   :  { %s29_s19 = sshll.u32 %s4595_s18, 4  ;;  %p4456_p0 = scmp.ne.s32.totalorder %s4963_s1, %s4455_s22  ;;  %s30_s19 = int_to_ptr.vmem [resolvable:$true] %s29_s19 }
   0x5   :  { %p4459_p1 = scmp.lt.u32.totalorder %s4455_s22, %s4963_s1 }
   0x7   :  { %p4461_p2 = pnand %p4459_p1, %p4456_p0 }
   0x9   :  { %4464 = shalt.err (!%p4461_p2)
}
   0xa   :  { %s4465_s27 = scalar_lea.vmem %s30_s19, 40960  ;;  %p4470_p4 = scmp.lt.s32.totalorder %s30_s19, %s30_s19 }
   0xb   :  { %p4466_p3 = scmp.ne.s32.totalorder %s30_s19, %s4465_s27  ;;  %p4471_p5 = scmp.lt.s32.totalorder %s4465_s27, %s4465_s27 }
   0xd   :  { %p4472_p6 = por %p4471_p5, %p4470_p4 }
   0xf   :  { %p4473_p7 = pnand %p4472_p6, %p4466_p3 }
  0x11   :  { %4476 = shalt.err (!%p4473_p7)
}
  0x12   :  { %s4596_s28 = smov 128   ;;  %s4597_s29 = smov 8  }
  0x13   :  { %35 = dma.hbm_to_vmem [thread:$0]  %s4963_s1, 40960, %s30_s19, [#allocation7], %s4596_s28, %s4596_s28, %s4597_s29  }
  0x14   :  { %s4598_s7 = smov [#allocation9]   ;;  %s4599_s9 = smov [#allocation3]  }
  0x15   :  { %s53_s8 = sshll.u32 %s4598_s7, 4  ;;  %s20_s10 = sshll.u32 %s4599_s9, 4  ;;  %s54_s8 = int_to_ptr.vmem [resolvable:$true] %s53_s8  ;;  %s21_s10 = int_to_ptr.vmem [resolvable:$true] %s20_s10 }
  0x16   :  { %s4477_s13 = scalar_lea.hbm %s4965_s3, 320 }
  0x17   :  { %p4478_p8 = scmp.ne.s32.totalorder %s4965_s3, %s4477_s13  ;;  %p4481_p9 = scmp.lt.u32.totalorder %s4477_s13, %s4965_s3 }
  0x19   :  { %p4483_p10 = pnand %p4481_p9, %p4478_p8 }
  0x1b   :  { %4486 = shalt.err (!%p4483_p10)
}
  0x1c   :  { %s4487_s1 = scalar_lea.vmem %s54_s8, 320  ;;  %p4492_p12 = scmp.lt.s32.totalorder %s54_s8, %s54_s8 }
  0x1d   :  { %p4488_p11 = scmp.ne.s32.totalorder %s54_s8, %s4487_s1  ;;  %p4493_p13 = scmp.lt.s32.totalorder %s4487_s1, %s4487_s1 }
  0x1f   :  { %p4494_p0 = por %p4493_p13, %p4492_p12 }
  0x21   :  { %p4495_p1 = pnand %p4494_p0, %p4488_p11 }
  0x23   :  { %4498 = shalt.err (!%p4495_p1)
}
  0x24   :  { %s4600_s18 = smov 16   ;;  %s4601_s19 = smov 1  }
  0x25   :  { %59 = dma.hbm_to_vmem [thread:$0]  %s4965_s3, 320, %s54_s8, [#allocation10], %s4600_s18, %s4600_s18, %s4601_s19  }
  0x26   :  { %s4499_s24 = scalar_lea.hbm %s4962_s0, 128 }
  0x27   :  { %p4500_p2 = scmp.ne.s32.totalorder %s4962_s0, %s4499_s24  ;;  %p4503_p3 = scmp.lt.u32.totalorder %s4499_s24, %s4962_s0 }
  0x29   :  { %p4505_p4 = pnand %p4503_p3, %p4500_p2 }
  0x2b   :  { %4508 = shalt.err (!%p4505_p4)
}
  0x2c   :  { %s4509_s29 = scalar_lea.vmem %s21_s10, 128  ;;  %p4514_p6 = scmp.lt.s32.totalorder %s21_s10, %s21_s10 }
  0x2d   :  { %p4510_p5 = scmp.ne.s32.totalorder %s21_s10, %s4509_s29  ;;  %p4515_p7 = scmp.lt.s32.totalorder %s4509_s29, %s4509_s29 }
  0x2f   :  { %p4516_p8 = por %p4515_p7, %p4514_p6 }
  0x31   :  { %p4517_p9 = pnand %p4516_p8, %p4510_p5 }
  0x33   :  { %4520 = shalt.err (!%p4517_p9)
}
  0x34   :  { %23 = dma.hbm_to_vmem [thread:$0]  %s4962_s0, 128, %s21_s10, [#allocation4]  }
  0x35   :  { %s4602_s6 = smov [#allocation8]   ;;  %s4603_s8 = smov [#allocation11]  }
  0x36   :  { %s41_s7 = sshll.u32 %s4602_s6, 4  ;;  %s65_s9 = sshll.u32 %s4603_s8, 4  ;;  %s42_s7 = int_to_ptr.vmem [resolvable:$true] %s41_s7  ;;  %s66_s9 = int_to_ptr.vmem [resolvable:$true] %s65_s9 }
  0x37   :  { %s4521_s13 = scalar_lea.hbm %s4964_s2, 320 }
  0x38   :  { %p4522_p10 = scmp.ne.s32.totalorder %s4964_s2, %s4521_s13  ;;  %p4525_p11 = scmp.lt.u32.totalorder %s4521_s13, %s4964_s2 }
  0x3a   :  { %p4527_p12 = pnand %p4525_p11, %p4522_p10 }
  0x3c   :  { %4530 = shalt.err (!%p4527_p12)
}
  0x3d   :  { %s4531_s0 = scalar_lea.vmem %s42_s7, 320  ;;  %p4536_p0 = scmp.lt.s32.totalorder %s42_s7, %s42_s7 }
  0x3e   :  { %p4532_p13 = scmp.ne.s32.totalorder %s42_s7, %s4531_s0  ;;  %p4537_p1 = scmp.lt.s32.totalorder %s4531_s0, %s4531_s0 }
  0x40   :  { %p4538_p2 = por %p4537_p1, %p4536_p0 }
  0x42   :  { %p4539_p3 = pnand %p4538_p2, %p4532_p13 }
  0x44   :  { %4542 = shalt.err (!%p4539_p3)
}
  0x45   :  { %47 = dma.hbm_to_vmem [thread:$0]  %s4964_s2, 320, %s42_s7, [#allocation7], %s4600_s18, %s4600_s18, %s4601_s19  }
  0x46   :  { %s4543_s22 = scalar_lea.hbm %s4966_s4, 320 }
  0x47   :  { %p4544_p4 = scmp.ne.s32.totalorder %s4966_s4, %s4543_s22  ;;  %p4547_p5 = scmp.lt.u32.totalorder %s4543_s22, %s4966_s4 }
  0x49   :  { %p4549_p6 = pnand %p4547_p5, %p4544_p4 }
  0x4b   :  { %4552 = shalt.err (!%p4549_p6)
}
  0x4c   :  { %s4553_s27 = scalar_lea.vmem %s66_s9, 320  ;;  %p4558_p8 = scmp.lt.s32.totalorder %s66_s9, %s66_s9 }
  0x4d   :  { %p4554_p7 = scmp.ne.s32.totalorder %s66_s9, %s4553_s27  ;;  %p4559_p9 = scmp.lt.s32.totalorder %s4553_s27, %s4553_s27 }
  0x4f   :  { %p4560_p10 = por %p4559_p9, %p4558_p8 }
  0x51   :  { %p4561_p11 = pnand %p4560_p10, %p4554_p7 }
  0x53   :  { %4564 = shalt.err (!%p4561_p11)
}
  0x54   :  { %71 = dma.hbm_to_vmem [thread:$0]  %s4966_s4, 320, %s66_s9, [#allocation10], %s4600_s18, %s4600_s18, %s4601_s19  }
  0x55   :  { %4587 = dma.done.wait [#allocation4], 128  }
  0x56   :  { %4588 = vsyncadd [#allocation4], 4294967168 }
  0x57   :  { %4589 = dma.done.wait [#allocation7], 41280  }
  0x58   :  { %4590 = vsyncadd [#allocation7], 4294926016 }
  0x59   :  { %4591 = dma.done.wait [#allocation10], 640  }
  0x5a   :  { %4592 = vsyncadd [#allocation10], 4294966656  ;;  %v4604_v0 = vmov 0.0|0.0   ;;  %vm4605_vm0 = vmmov 0   ;;  %v4606_v1 = vmov 0.0   ;;  %v92_v2 = vld [vmem:[#allocation6] sm:$0xff] }
  0x5b   :  { %3922 = vmatprep.subr.bf16.mxu0 %v4604_v0  ;;  %3254 = vmatprep.mubr.msk.f32.mxu0 %vm4605_vm0, %v4606_v1  ;;  %87 = vst [vmem:[#allocation2] sm:$0xff] %v4606_v1  ;;  %v93_v3 = vld [vmem:[#allocation6 + $0x8] sm:$0xff]  ;;  %v94_v4 = vld [vmem:[#allocation6 + $0x10] sm:$0xff]  ;;  %v95_v6 = vld [vmem:[#allocation6 + $0x18] sm:$0xff]  ;;  %vm89_vm1 = vcmask 523264   ;;  %s4607_s4 = smov [#allocation12]  }
  0x5c   :  { %3946 = vmatprep.subr.bf16.mxu1 %v4604_v0  ;;  %3289 = vmatprep.mubr.msk.f32.mxu1 %vm4605_vm0, %v4606_v1  ;;  %v3923_v5 = vpack.c.bf16 %v93_v3, %v92_v2  ;;  %v3926_v7 = vpack.c.bf16 %v95_v6, %v94_v4  ;;  %v96_v8 = vld [vmem:[#allocation6 + $0x20] sm:$0xff]  ;;  %v97_v9 = vld [vmem:[#allocation6 + $0x28] sm:$0xff]  ;;  %v88_v10 = vld [vmem:[#allocation3] sm:$0xff]  ;;  %s2851_s18 = sshll.u32 %s4607_s4, 4  ;;  %s2852_s18 = int_to_ptr.vmem [resolvable:$true] %s2851_s18 }
  0x5d   :  { %90 = vst.msk [vmem:[#allocation2] sm:$0xff] %vm89_vm1, %v88_v10  ;;  %v3929_v11 = vpack.c.bf16 %v97_v9, %v96_v8  ;;  %v98_v12 = vld [vmem:[#allocation6 + $0x30] sm:$0xff]  ;;  %v99_v13 = vld [vmem:[#allocation6 + $0x38] sm:$0xff]  ;;  %v100_v15 = vld [vmem:[#allocation6 + $0x40] sm:$0xff]  ;;  %s4565_s19 = scalar_lea.vmem %s2852_s18, 128  ;;  %p4570_p13 = scmp.lt.s32.totalorder %s2852_s18, %s2852_s18 }
  0x5e   :  { %3924 = vmatpush3.bf16.msra.mxu0 %v3923_v5  ;;  %v3932_v14 = vpack.c.bf16 %v99_v13, %v98_v12  ;;  %v101_v16 = vld [vmem:[#allocation6 + $0x48] sm:$0xff]  ;;  %v102_v18 = vld [vmem:[#allocation6 + $0x50] sm:$0xff]  ;;  %v103_v19 = vld [vmem:[#allocation6 + $0x58] sm:$0xff]  ;;  %p4566_p12 = scmp.ne.s32.totalorder %s2852_s18, %s4565_s19  ;;  %p4571_p0 = scmp.lt.s32.totalorder %s4565_s19, %s4565_s19 }
  0x5f   :  { %3925 = vmatprep.subr.bf16.mxu0 %v4604_v0  ;;  %v3935_v17 = vpack.c.bf16 %v101_v16, %v100_v15  ;;  %v3938_v20 = vpack.c.bf16 %v103_v19, %v102_v18  ;;  %v104_v21 = vld [vmem:[#allocation6 + $0x60] sm:$0xff]  ;;  %v105_v22 = vld [vmem:[#allocation6 + $0x68] sm:$0xff]  ;;  %v106_v24 = vld [vmem:[#allocation6 + $0x70] sm:$0xff]  ;;  %v213_v15 = vlaneseq }
  0x60   :  { %v3941_v23 = vpack.c.bf16 %v105_v22, %v104_v21  ;;  %v107_v25 = vld [vmem:[#allocation6 + $0x78] sm:$0xff]  ;;  %v227_v28 = vld [vmem:[#allocation6 + $0x80] sm:$0xff]  ;;  %v228_v29 = vld [vmem:[#allocation6 + $0x88] sm:$0xff]  ;;  %p4572_p1 = por %p4571_p0, %p4570_p13 }
  0x61   :  { %v3944_v26 = vpack.c.bf16 %v107_v25, %v106_v24  ;;  %v3947_v30 = vpack.c.bf16 %v228_v29, %v227_v28  ;;  %v229_v31 = vld [vmem:[#allocation6 + $0x90] sm:$0xff]  ;;  %v230_v32 = vld [vmem:[#allocation6 + $0x98] sm:$0xff]  ;;  %v231_v34 = vld [vmem:[#allocation6 + $0xa0] sm:$0xff]  ;;  %v214_v16 = vshrl.u32 %v213_v15, 7 }
  0x62   :  { %3927 = vmatpush3.bf16.msra.mxu0 %v3926_v7  ;;  %v3950_v33 = vpack.c.bf16 %v230_v32, %v229_v31  ;;  %v232_v35 = vld [vmem:[#allocation6 + $0xa8] sm:$0xff]  ;;  %v233_v37 = vld [vmem:[#allocation6 + $0xb0] sm:$0xff]  ;;  %v234_v38 = vld [vmem:[#allocation6 + $0xb8] sm:$0xff]  ;;  %p4573_p2 = pnand %p4572_p1, %p4566_p12 }
  0x63   :  { %3928 = vmatprep.subr.bf16.mxu0 %v4604_v0  ;;  %3948 = vmatpush3.bf16.msra.mxu1 %v3947_v30  ;;  %v3953_v36 = vpack.c.bf16 %v232_v35, %v231_v34  ;;  %v3956_v39 = vpack.c.bf16 %v234_v38, %v233_v37  ;;  %v235_v40 = vld [vmem:[#allocation6 + $0xc0] sm:$0xff]  ;;  %v236_v41 = vld [vmem:[#allocation6 + $0xc8] sm:$0xff]  ;;  %v237_v43 = vld [vmem:[#allocation6 + $0xd0] sm:$0xff]  ;;  %v4732_v18 = vsub.s32 0, %v214_v16 }
  0x64   :  { %v91_v27 = vld [vmem:[#allocation2] sm:$0xff]  ;;  %3949 = vmatprep.subr.bf16.mxu1 %v4604_v0  ;;  %v3959_v42 = vpack.c.bf16 %v236_v41, %v235_v40  ;;  %v238_v44 = vld [vmem:[#allocation6 + $0xd8] sm:$0xff]  ;;  %v239_v46 = vld [vmem:[#allocation6 + $0xe0] sm:$0xff] }
  0x65   :  { %v3962_v45 = vpack.c.bf16 %v238_v44, %v237_v43  ;;  %v240_v47 = vld [vmem:[#allocation6 + $0xe8] sm:$0xff]  ;;  %v241_v49 = vld [vmem:[#allocation6 + $0xf0] sm:$0xff]  ;;  %v242_v50 = vld [vmem:[#allocation6 + $0xf8] sm:$0xff] }
  0x66   :  { %3930 = vmatpush3.bf16.msra.mxu0 %v3929_v11  ;;  %v3965_v48 = vpack.c.bf16 %v240_v47, %v239_v46  ;;  %v3968_v51 = vpack.c.bf16 %v242_v50, %v241_v49  ;;  %v2862_v52 = vld [vmem:[#allocation8] ss:$0 sm:$0xff]  ;;  %v209_v21 = vld [vmem:[#allocation11] sm:$0x1]  ;;  %v367_v31 = vld [vmem:[#allocation6 + $0x110] sm:$0xff] }
  0x67   :  { %3931 = vmatprep.subr.bf16.mxu0 %v4604_v0  ;;  %3951 = vmatpush3.bf16.msra.mxu1 %v3950_v33  ;;  %v365_v28 = vld [vmem:[#allocation6 + $0x100] sm:$0xff]  ;;  %v366_v29 = vld [vmem:[#allocation6 + $0x108] sm:$0xff]  ;;  %v368_v32 = vld [vmem:[#allocation6 + $0x118] sm:$0xff] }
  0x68   :  { %3952 = vmatprep.subr.bf16.mxu1 %v4604_v0  ;;  %v3971_v30 = vpack.c.bf16 %v366_v29, %v365_v28  ;;  %v3974_v33 = vpack.c.bf16 %v368_v32, %v367_v31  ;;  %v369_v34 = vld [vmem:[#allocation6 + $0x120] sm:$0xff]  ;;  %v370_v35 = vld [vmem:[#allocation6 + $0x128] sm:$0xff]  ;;  %v371_v37 = vld [vmem:[#allocation6 + $0x130] sm:$0xff] }
  0x69   :  { %v372_v38 = vld [vmem:[#allocation6 + $0x138] sm:$0xff]  ;;  %v373_v40 = vld [vmem:[#allocation6 + $0x140] sm:$0xff]  ;;  %v374_v41 = vld [vmem:[#allocation6 + $0x148] sm:$0xff] }
  0x6a   :  { %3933 = vmatpush3.bf16.msra.mxu0 %v3932_v14  ;;  %v375_v43 = vld [vmem:[#allocation6 + $0x150] sm:$0xff]  ;;  %v376_v44 = vld [vmem:[#allocation6 + $0x158] sm:$0xff]  ;;  %v377_v46 = vld [vmem:[#allocation6 + $0x160] sm:$0xff] }
  0x6b   :  { %3934 = vmatprep.subr.bf16.mxu0 %v4604_v0  ;;  %3954 = vmatpush3.bf16.msra.mxu1 %v3953_v36  ;;  %v3977_v36 = vpack.c.bf16 %v370_v35, %v369_v34  ;;  %v378_v47 = vld [vmem:[#allocation6 + $0x168] sm:$0xff]  ;;  %v379_v49 = vld [vmem:[#allocation6 + $0x170] sm:$0xff]  ;;  %v380_v50 = vld [vmem:[#allocation6 + $0x178] sm:$0xff] }
  0x6c   :  { %3955 = vmatprep.subr.bf16.mxu1 %v4604_v0  ;;  %v344_v15 = vld [vmem:[#allocation9 + $0x1] sm:$0x1]  ;;  %v507_v32 = vld [vmem:[#allocation6 + $0x1a0] sm:$0xff] }
  0x6d   :  { %v505_v29 = vld [vmem:[#allocation6 + $0x190] sm:$0xff] }
  0x6e   :  { %3936 = vmatpush3.bf16.msra.mxu0 %v3935_v17  ;;  %v207_v17 = vld [vmem:[#allocation9] sm:$0x1] }
  0x6f   :  { %3937 = vmatprep.subr.bf16.mxu0 %v4604_v0  ;;  %3957 = vmatpush3.bf16.msra.mxu1 %v3956_v39  ;;  %v3980_v39 = vpack.c.bf16 %v372_v38, %v371_v37  ;;  %v509_v35 = vld [vmem:[#allocation6 + $0x1b0] sm:$0xff]  ;;  %v511_v38 = vld [vmem:[#allocation6 + $0x1c0] sm:$0xff] }
  0x70   :  { %3958 = vmatprep.subr.bf16.mxu1 %v4604_v0 }
  0x72   :  { %3939 = vmatpush3.bf16.msra.mxu0 %v3938_v20 }
  0x73   :  { %3940 = vmatprep.subr.bf16.mxu0 %v4604_v0  ;;  %3960 = vmatpush3.bf16.msra.mxu1 %v3959_v42  ;;  %v3983_v42 = vpack.c.bf16 %v374_v41, %v373_v40  ;;  %v513_v41 = vld [vmem:[#allocation6 + $0x1d0] sm:$0xff] }
  0x74   :  { %3961 = vmatprep.subr.bf16.mxu1 %v4604_v0 }
  0x76   :  { %3942 = vmatpush3.bf16.msra.mxu0 %v3941_v23 }
  0x77   :  { %3943 = vmatprep.subr.bf16.mxu0 %v4604_v0  ;;  %3963 = vmatpush3.bf16.msra.mxu1 %v3962_v45  ;;  %v3986_v45 = vpack.c.bf16 %v376_v44, %v375_v43  ;;  %v515_v44 = vld [vmem:[#allocation6 + $0x1e0] sm:$0xff] }
  0x78   :  { %3964 = vmatprep.subr.bf16.mxu1 %v4604_v0 }
  0x7a   :  { %3945 = vmatpush3.bf16.msra.mxu0 %v3944_v26 }
  0x7b   :  { %3970 = vmatprep.subr.bf16.mxu0 %v4604_v0  ;;  %3966 = vmatpush3.bf16.msra.mxu1 %v3965_v48  ;;  %v3989_v48 = vpack.c.bf16 %v378_v47, %v377_v46  ;;  %v517_v47 = vld [vmem:[#allocation6 + $0x1f0] sm:$0xff] }
  0x7c   :  { %3967 = vmatprep.subr.bf16.mxu1 %v4604_v0 }
  0x7d   :  { %3255 = vmatmul.mubr.f32.vlgmr.msra.gmra.mrb[0].mxu0 %v91_v27 }
  0x7e   :  { %3324 = vmatprep.mubr.msk.f32.mxu0 %vm4605_vm0, %v4606_v1  ;;  %3972 = vmatpush3.bf16.msra.mxu0 %v3971_v30  ;;  %v506_v30 = vld [vmem:[#allocation6 + $0x198] sm:$0xff] }
  0x7f   :  { %3969 = vmatpush3.bf16.msra.mxu1 %v3968_v51  ;;  %3973 = vmatprep.subr.bf16.mxu0 %v4604_v0  ;;  %v3992_v51 = vpack.c.bf16 %v380_v50, %v379_v49  ;;  %v3998_v31 = vpack.c.bf16 %v506_v30, %v505_v29  ;;  %v2864_v50 = vld [vmem:[#allocation8 + $0x2] ss:$0 sm:$0xff] }
  0x80   :  { %3994 = vmatprep.subr.bf16.mxu1 %v4604_v0  ;;  %v645_v30 = vld [vmem:[#allocation6 + $0x220] sm:$0xff] }
  0x82   :  { %3975 = vmatpush3.bf16.msra.mxu0 %v3974_v33  ;;  %v508_v33 = vld [vmem:[#allocation6 + $0x1a8] sm:$0xff] }
  0x83   :  { %3976 = vmatprep.subr.bf16.mxu0 %v4604_v0  ;;  %v4001_v34 = vpack.c.bf16 %v508_v33, %v507_v32  ;;  %v647_v33 = vld [vmem:[#allocation6 + $0x230] sm:$0xff] }
  0x86   :  { %3978 = vmatpush3.bf16.msra.mxu0 %v3977_v36  ;;  %v510_v36 = vld [vmem:[#allocation6 + $0x1b8] sm:$0xff] }
  0x87   :  { %3979 = vmatprep.subr.bf16.mxu0 %v4604_v0  ;;  %v4004_v37 = vpack.c.bf16 %v510_v36, %v509_v35  ;;  %v649_v36 = vld [vmem:[#allocation6 + $0x240] sm:$0xff] }
  0x8a   :  { %3981 = vmatpush3.bf16.msra.mxu0 %v3980_v39  ;;  %v512_v39 = vld [vmem:[#allocation6 + $0x1c8] sm:$0xff] }
  0x8b   :  { %3982 = vmatprep.subr.bf16.mxu0 %v4604_v0  ;;  %v4007_v40 = vpack.c.bf16 %v512_v39, %v511_v38  ;;  %v651_v39 = vld [vmem:[#allocation6 + $0x250] sm:$0xff] }
  0x8e   :  { %3984 = vmatpush3.bf16.msra.mxu0 %v3983_v42  ;;  %v514_v42 = vld [vmem:[#allocation6 + $0x1d8] sm:$0xff] }
  0x8f   :  { %3985 = vmatprep.subr.bf16.mxu0 %v4604_v0  ;;  %v4010_v43 = vpack.c.bf16 %v514_v42, %v513_v41  ;;  %v653_v42 = vld [vmem:[#allocation6 + $0x260] sm:$0xff] }
  0x92   :  { %3987 = vmatpush3.bf16.msra.mxu0 %v3986_v45  ;;  %v516_v45 = vld [vmem:[#allocation6 + $0x1e8] sm:$0xff] }
  0x93   :  { %3988 = vmatprep.subr.bf16.mxu0 %v4604_v0  ;;  %v4013_v46 = vpack.c.bf16 %v516_v45, %v515_v44  ;;  %v655_v45 = vld [vmem:[#allocation6 + $0x270] sm:$0xff] }
  0x96   :  { %3990 = vmatpush3.bf16.msra.mxu0 %v3989_v48  ;;  %v518_v48 = vld [vmem:[#allocation6 + $0x1f8] sm:$0xff] }
  0x97   :  { %3991 = vmatprep.subr.bf16.mxu0 %v4604_v0  ;;  %v4016_v49 = vpack.c.bf16 %v518_v48, %v517_v47  ;;  %v2865_v48 = vld [vmem:[#allocation8 + $0x3] ss:$0 sm:$0xff] }
  0x9a   :  { %3993 = vmatpush3.bf16.msra.mxu0 %v3992_v51 }
  0x9b   :  { %4018 = vmatprep.subr.bf16.mxu0 %v4604_v0 }
 0x150   :  { %v181_v53 = vpop.f32.mrb[0].mxu0 }
 0x151   :  { %v182_v54 = vadd.f32 %v2862_v52, %v181_v53  ;;  %v3256_v55 = vpop.f32.mrb[1].mxu0  ;;  %v2863_v52 = vld [vmem:[#allocation8 + $0x1] ss:$0 sm:$0xff] }
 0x153   :  { %v185_v56 = vmul.f32 0.01, %v182_v54 }
 0x155   :  { %v186_v57 = vmax.f32 %v182_v54, %v185_v56 }
 0x157   :  { %v187_v58 = vrot.slane %v186_v57, 4  ;;  %v193_v59 = vmul.f32 %v186_v57, %v186_v57 }
 0x159   :  { %v188_v60 = vadd.f32 %v187_v58, %v186_v57  ;;  %v194_v61 = vrot.slane %v193_v59, 4 }
 0x15b   :  { %v189_v62 = vrot.slane %v188_v60, 2  ;;  %v195_v63 = vadd.f32 %v194_v61, %v193_v59 }
 0x15d   :  { %v190_v2 = vadd.f32 %v189_v62, %v188_v60  ;;  %v196_v3 = vrot.slane %v195_v63, 2 }
 0x15f   :  { %v197_v4 = vadd.f32 %v196_v3, %v195_v63  ;;  %v191_v5 = vrot.slane %v190_v2, 1 }
 0x161   :  { %v198_v6 = vrot.slane %v197_v4, 1  ;;  %v192_v7 = vadd.f32 %v191_v5, %v190_v2 }
 0x163   :  { %v199_v8 = vadd.f32 %v198_v6, %v197_v4  ;;  %v200_v9 = vmul.f32 0.125, %v192_v7 }
 0x165   :  { %v201_v10 = vmul.f32 0.125, %v199_v8  ;;  %v202_v11 = vmul.f32 %v200_v9, %v200_v9 }
 0x167   :  { %v203_v12 = vsub.f32 %v201_v10, %v202_v11 }
 0x169   :  { %v204_v13 = vmax.f32 %v203_v12, 0.0 }
 0x16b   :  { %v205_v14 = vadd.f32 1e-05, %v204_v13 }
 0x16d   :  { %4415 = vrsqrt.f32 %v205_v14 }
 0x177   :  { %v4416_v19 = vpop.eup %4415 }
 0x178   :  { %v208_v20 = vmul.f32 %v4416_v19, %v207_v17  ;;  %v347_v19 = vld [vmem:[#allocation11 + $0x1] sm:$0x1] }
 0x17a   :  { %v210_v22 = vmul.f32 %v208_v20, %v200_v9  ;;  %v216_v23 = vrot.slane %v208_v20, %v4732_v18 }
 0x17c   :  { %v211_v24 = vsub.f32 %v209_v21, %v210_v22  ;;  %v218_v25 = vmul.f32 %v216_v23, %v186_v57 }
 0x17e   :  { %v223_v26 = vrot.slane %v211_v24, %v4732_v18 }
 0x180   :  { %v225_v27 = vadd.f32 %v223_v26, %v218_v25  ;;  %v503_v26 = vld [vmem:[#allocation6 + $0x180] sm:$0xff] }
 0x182   :  { %3290 = vmatmul.mubr.f32.vlgmr.msra.gmra.mrb[0].mxu1 %v225_v27  ;;  %v504_v27 = vld [vmem:[#allocation6 + $0x188] sm:$0xff] }
 0x183   :  { %3359 = vmatprep.mubr.msk.f32.mxu1 %vm4605_vm0, %v4606_v1  ;;  %v3995_v28 = vpack.c.bf16 %v504_v27, %v503_v26  ;;  %v643_v27 = vld [vmem:[#allocation6 + $0x210] sm:$0xff] }
 0x185   :  { %3996 = vmatpush3.bf16.msra.mxu1 %v3995_v28  ;;  %v644_v28 = vld [vmem:[#allocation6 + $0x218] sm:$0xff] }
 0x186   :  { %3997 = vmatprep.subr.bf16.mxu1 %v4604_v0  ;;  %v4022_v29 = vpack.c.bf16 %v644_v28, %v643_v27  ;;  %v783_v28 = vld [vmem:[#allocation6 + $0x2a0] sm:$0xff] }
 0x189   :  { %3999 = vmatpush3.bf16.msra.mxu1 %v3998_v31  ;;  %v646_v31 = vld [vmem:[#allocation6 + $0x228] sm:$0xff] }
 0x18a   :  { %4000 = vmatprep.subr.bf16.mxu1 %v4604_v0  ;;  %v4025_v32 = vpack.c.bf16 %v646_v31, %v645_v30  ;;  %v785_v31 = vld [vmem:[#allocation6 + $0x2b0] sm:$0xff] }
 0x18d   :  { %4002 = vmatpush3.bf16.msra.mxu1 %v4001_v34  ;;  %v648_v34 = vld [vmem:[#allocation6 + $0x238] sm:$0xff] }
 0x18e   :  { %4003 = vmatprep.subr.bf16.mxu1 %v4604_v0  ;;  %v4028_v35 = vpack.c.bf16 %v648_v34, %v647_v33  ;;  %v787_v34 = vld [vmem:[#allocation6 + $0x2c0] sm:$0xff] }
 0x191   :  { %4005 = vmatpush3.bf16.msra.mxu1 %v4004_v37  ;;  %v650_v37 = vld [vmem:[#allocation6 + $0x248] sm:$0xff] }
 0x192   :  { %4006 = vmatprep.subr.bf16.mxu1 %v4604_v0  ;;  %v4031_v38 = vpack.c.bf16 %v650_v37, %v649_v36  ;;  %v789_v37 = vld [vmem:[#allocation6 + $0x2d0] sm:$0xff] }
 0x195   :  { %4008 = vmatpush3.bf16.msra.mxu1 %v4007_v40  ;;  %v652_v40 = vld [vmem:[#allocation6 + $0x258] sm:$0xff] }
 0x196   :  { %4009 = vmatprep.subr.bf16.mxu1 %v4604_v0  ;;  %v4034_v41 = vpack.c.bf16 %v652_v40, %v651_v39  ;;  %v791_v40 = vld [vmem:[#allocation6 + $0x2e0] sm:$0xff] }
 0x199   :  { %4011 = vmatpush3.bf16.msra.mxu1 %v4010_v43  ;;  %v654_v43 = vld [vmem:[#allocation6 + $0x268] sm:$0xff] }
 0x19a   :  { %4012 = vmatprep.subr.bf16.mxu1 %v4604_v0  ;;  %v4037_v44 = vpack.c.bf16 %v654_v43, %v653_v42  ;;  %v793_v43 = vld [vmem:[#allocation6 + $0x2f0] sm:$0xff] }
 0x19d   :  { %4014 = vmatpush3.bf16.msra.mxu1 %v4013_v46  ;;  %v656_v46 = vld [vmem:[#allocation6 + $0x278] sm:$0xff] }
 0x19e   :  { %4015 = vmatprep.subr.bf16.mxu1 %v4604_v0  ;;  %v4040_v47 = vpack.c.bf16 %v656_v46, %v655_v45  ;;  %v2866_v46 = vld [vmem:[#allocation8 + $0x4] ss:$0 sm:$0xff] }
 0x1a1   :  { %4017 = vmatpush3.bf16.msra.mxu1 %v4016_v49 }
 0x1a2   :  { %4042 = vmatprep.subr.bf16.mxu1 %v4604_v0 }
 0x255   :  { %v317_v53 = vpop.f32.mrb[0].mxu1 }
 0x256   :  { %v318_v54 = vadd.f32 %v2863_v52, %v317_v53  ;;  %v3291_v55 = vpop.f32.mrb[1].mxu1 }
 0x258   :  { %v321_v56 = vmul.f32 0.01, %v318_v54 }
 0x25a   :  { %v322_v57 = vmax.f32 %v318_v54, %v321_v56 }
 0x25c   :  { %v323_v58 = vrot.slane %v322_v57, 4  ;;  %v329_v59 = vmul.f32 %v322_v57, %v322_v57 }
 0x25e   :  { %v324_v60 = vadd.f32 %v323_v58, %v322_v57  ;;  %v330_v61 = vrot.slane %v329_v59, 4 }
 0x260   :  { %v325_v62 = vrot.slane %v324_v60, 2  ;;  %v331_v63 = vadd.f32 %v330_v61, %v329_v59 }
 0x262   :  { %v326_v2 = vadd.f32 %v325_v62, %v324_v60  ;;  %v332_v3 = vrot.slane %v331_v63, 2 }
 0x264   :  { %v327_v4 = vrot.slane %v326_v2, 1  ;;  %v333_v5 = vadd.f32 %v332_v3, %v331_v63 }
 0x266   :  { %v328_v6 = vadd.f32 %v327_v4, %v326_v2  ;;  %v334_v7 = vrot.slane %v333_v5, 1 }
 0x268   :  { %v335_v8 = vadd.f32 %v334_v7, %v333_v5  ;;  %v336_v9 = vmul.f32 0.125, %v328_v6 }
 0x26a   :  { %v337_v10 = vmul.f32 0.125, %v335_v8  ;;  %v338_v11 = vmul.f32 %v336_v9, %v336_v9 }
 0x26c   :  { %v339_v12 = vsub.f32 %v337_v10, %v338_v11 }
 0x26e   :  { %v340_v13 = vmax.f32 %v339_v12, 0.0 }
 0x270   :  { %v341_v14 = vadd.f32 1e-05, %v340_v13  ;;  %v482_v13 = vld [vmem:[#allocation9 + $0x2] sm:$0x1] }
 0x272   :  { %4417 = vrsqrt.f32 %v341_v14 }
 0x27c   :  { %v4418_v16 = vpop.eup %4417 }
 0x27d   :  { %v345_v17 = vmul.f32 %v4418_v16, %v344_v15  ;;  %v485_v16 = vld [vmem:[#allocation11 + $0x2] sm:$0x1] }
 0x27f   :  { %v348_v20 = vmul.f32 %v345_v17, %v336_v9  ;;  %v354_v21 = vrot.slane %v345_v17, %v4732_v18 }
 0x281   :  { %v349_v22 = vsub.f32 %v347_v19, %v348_v20  ;;  %v356_v23 = vmul.f32 %v354_v21, %v322_v57 }
 0x283   :  { %v361_v24 = vrot.slane %v349_v22, %v4732_v18 }
 0x285   :  { %v363_v25 = vadd.f32 %v361_v24, %v356_v23  ;;  %v641_v24 = vld [vmem:[#allocation6 + $0x200] sm:$0xff] }
 0x287   :  { %3325 = vmatmul.mubr.f32.vlgmr.msra.gmra.mrb[2].mxu0 %v363_v25  ;;  %v642_v25 = vld [vmem:[#allocation6 + $0x208] sm:$0xff] }
 0x288   :  { %3394 = vmatprep.mubr.msk.f32.mxu0 %vm4605_vm0, %v4606_v1  ;;  %v4019_v26 = vpack.c.bf16 %v642_v25, %v641_v24  ;;  %v781_v25 = vld [vmem:[#allocation6 + $0x290] sm:$0xff] }
 0x28a   :  { %4020 = vmatpush3.bf16.msra.mxu0 %v4019_v26  ;;  %v782_v26 = vld [vmem:[#allocation6 + $0x298] sm:$0xff] }
 0x28b   :  { %4021 = vmatprep.subr.bf16.mxu0 %v4604_v0  ;;  %v4046_v27 = vpack.c.bf16 %v782_v26, %v781_v25  ;;  %v921_v26 = vld [vmem:[#allocation6 + $0x320] sm:$0xff] }
 0x28e   :  { %4023 = vmatpush3.bf16.msra.mxu0 %v4022_v29  ;;  %v784_v29 = vld [vmem:[#allocation6 + $0x2a8] sm:$0xff] }
 0x28f   :  { %4024 = vmatprep.subr.bf16.mxu0 %v4604_v0  ;;  %v4049_v30 = vpack.c.bf16 %v784_v29, %v783_v28  ;;  %v923_v29 = vld [vmem:[#allocation6 + $0x330] sm:$0xff] }
 0x292   :  { %4026 = vmatpush3.bf16.msra.mxu0 %v4025_v32  ;;  %v786_v32 = vld [vmem:[#allocation6 + $0x2b8] sm:$0xff] }
 0x293   :  { %4027 = vmatprep.subr.bf16.mxu0 %v4604_v0  ;;  %v4052_v33 = vpack.c.bf16 %v786_v32, %v785_v31  ;;  %v925_v32 = vld [vmem:[#allocation6 + $0x340] sm:$0xff] }
 0x296   :  { %4029 = vmatpush3.bf16.msra.mxu0 %v4028_v35  ;;  %v788_v35 = vld [vmem:[#allocation6 + $0x2c8] sm:$0xff] }
 0x297   :  { %4030 = vmatprep.subr.bf16.mxu0 %v4604_v0  ;;  %v4055_v36 = vpack.c.bf16 %v788_v35, %v787_v34  ;;  %v927_v35 = vld [vmem:[#allocation6 + $0x350] sm:$0xff] }
 0x29a   :  { %4032 = vmatpush3.bf16.msra.mxu0 %v4031_v38  ;;  %v790_v38 = vld [vmem:[#allocation6 + $0x2d8] sm:$0xff] }
 0x29b   :  { %4033 = vmatprep.subr.bf16.mxu0 %v4604_v0  ;;  %v4058_v39 = vpack.c.bf16 %v790_v38, %v789_v37  ;;  %v929_v38 = vld [vmem:[#allocation6 + $0x360] sm:$0xff] }
 0x29e   :  { %4035 = vmatpush3.bf16.msra.mxu0 %v4034_v41  ;;  %v792_v41 = vld [vmem:[#allocation6 + $0x2e8] sm:$0xff] }
 0x29f   :  { %4036 = vmatprep.subr.bf16.mxu0 %v4604_v0  ;;  %v4061_v42 = vpack.c.bf16 %v792_v41, %v791_v40  ;;  %v931_v41 = vld [vmem:[#allocation6 + $0x370] sm:$0xff] }
 0x2a2   :  { %4038 = vmatpush3.bf16.msra.mxu0 %v4037_v44  ;;  %v794_v44 = vld [vmem:[#allocation6 + $0x2f8] sm:$0xff] }
 0x2a3   :  { %4039 = vmatprep.subr.bf16.mxu0 %v4604_v0  ;;  %v4064_v45 = vpack.c.bf16 %v794_v44, %v793_v43  ;;  %v2867_v44 = vld [vmem:[#allocation8 + $0x5] ss:$0 sm:$0xff] }
 0x2a6   :  { %4041 = vmatpush3.bf16.msra.mxu0 %v4040_v47 }
 0x2a7   :  { %4066 = vmatprep.subr.bf16.mxu0 %v4604_v0 }
 0x35a   :  { %v455_v51 = vpop.f32.mrb[2].mxu0 }
 0x35b   :  { %v456_v52 = vadd.f32 %v2864_v50, %v455_v51  ;;  %v3326_v53 = vpop.f32.mrb[3].mxu0 }
 0x35d   :  { %v459_v54 = vmul.f32 0.01, %v456_v52 }
 0x35f   :  { %v460_v55 = vmax.f32 %v456_v52, %v459_v54 }
 0x361   :  { %v461_v56 = vrot.slane %v460_v55, 4  ;;  %v467_v57 = vmul.f32 %v460_v55, %v460_v55 }
 0x363   :  { %v462_v58 = vadd.f32 %v461_v56, %v460_v55  ;;  %v468_v59 = vrot.slane %v467_v57, 4 }
 0x365   :  { %v463_v60 = vrot.slane %v462_v58, 2  ;;  %v469_v61 = vadd.f32 %v468_v59, %v467_v57 }
 0x367   :  { %v464_v62 = vadd.f32 %v463_v60, %v462_v58  ;;  %v470_v63 = vrot.slane %v469_v61, 2 }
 0x369   :  { %v465_v2 = vrot.slane %v464_v62, 1  ;;  %v471_v3 = vadd.f32 %v470_v63, %v469_v61 }
 0x36b   :  { %v466_v4 = vadd.f32 %v465_v2, %v464_v62  ;;  %v472_v5 = vrot.slane %v471_v3, 1 }
 0x36d   :  { %v473_v6 = vadd.f32 %v472_v5, %v471_v3  ;;  %v474_v7 = vmul.f32 0.125, %v466_v4 }
 0x36f   :  { %v475_v8 = vmul.f32 0.125, %v473_v6  ;;  %v476_v9 = vmul.f32 %v474_v7, %v474_v7 }
 0x371   :  { %v477_v10 = vsub.f32 %v475_v8, %v476_v9 }
 0x373   :  { %v478_v11 = vmax.f32 %v477_v10, 0.0 }
 0x375   :  { %v479_v12 = vadd.f32 1e-05, %v478_v11  ;;  %v620_v11 = vld [vmem:[#allocation9 + $0x3] sm:$0x1] }
 0x377   :  { %4419 = vrsqrt.f32 %v479_v12 }
 0x381   :  { %v4420_v14 = vpop.eup %4419 }
 0x382   :  { %v483_v15 = vmul.f32 %v4420_v14, %v482_v13  ;;  %v623_v14 = vld [vmem:[#allocation11 + $0x3] sm:$0x1] }
 0x384   :  { %v486_v17 = vmul.f32 %v483_v15, %v474_v7  ;;  %v492_v19 = vrot.slane %v483_v15, %v4732_v18 }
 0x386   :  { %v487_v20 = vsub.f32 %v485_v16, %v486_v17  ;;  %v494_v21 = vmul.f32 %v492_v19, %v460_v55 }
 0x388   :  { %v499_v22 = vrot.slane %v487_v20, %v4732_v18 }
 0x38a   :  { %v501_v23 = vadd.f32 %v499_v22, %v494_v21  ;;  %v779_v22 = vld [vmem:[#allocation6 + $0x280] sm:$0xff] }
 0x38c   :  { %3360 = vmatmul.mubr.f32.vlgmr.msra.gmra.mrb[2].mxu1 %v501_v23  ;;  %v780_v23 = vld [vmem:[#allocation6 + $0x288] sm:$0xff] }
 0x38d   :  { %3429 = vmatprep.mubr.msk.f32.mxu1 %vm4605_vm0, %v4606_v1  ;;  %v4043_v24 = vpack.c.bf16 %v780_v23, %v779_v22  ;;  %v919_v23 = vld [vmem:[#allocation6 + $0x310] sm:$0xff] }
 0x38f   :  { %4044 = vmatpush3.bf16.msra.mxu1 %v4043_v24  ;;  %v920_v24 = vld [vmem:[#allocation6 + $0x318] sm:$0xff] }
 0x390   :  { %4045 = vmatprep.subr.bf16.mxu1 %v4604_v0  ;;  %v4070_v25 = vpack.c.bf16 %v920_v24, %v919_v23  ;;  %v1059_v24 = vld [vmem:[#allocation6 + $0x3a0] sm:$0xff] }
 0x393   :  { %4047 = vmatpush3.bf16.msra.mxu1 %v4046_v27  ;;  %v922_v27 = vld [vmem:[#allocation6 + $0x328] sm:$0xff] }
 0x394   :  { %4048 = vmatprep.subr.bf16.mxu1 %v4604_v0  ;;  %v4073_v28 = vpack.c.bf16 %v922_v27, %v921_v26  ;;  %v1061_v27 = vld [vmem:[#allocation6 + $0x3b0] sm:$0xff] }
 0x397   :  { %4050 = vmatpush3.bf16.msra.mxu1 %v4049_v30  ;;  %v924_v30 = vld [vmem:[#allocation6 + $0x338] sm:$0xff] }
 0x398   :  { %4051 = vmatprep.subr.bf16.mxu1 %v4604_v0  ;;  %v4076_v31 = vpack.c.bf16 %v924_v30, %v923_v29  ;;  %v1063_v30 = vld [vmem:[#allocation6 + $0x3c0] sm:$0xff] }
 0x39b   :  { %4053 = vmatpush3.bf16.msra.mxu1 %v4052_v33  ;;  %v926_v33 = vld [vmem:[#allocation6 + $0x348] sm:$0xff] }
 0x39c   :  { %4054 = vmatprep.subr.bf16.mxu1 %v4604_v0  ;;  %v4079_v34 = vpack.c.bf16 %v926_v33, %v925_v32  ;;  %v1065_v33 = vld [vmem:[#allocation6 + $0x3d0] sm:$0xff] }
 0x39f   :  { %4056 = vmatpush3.bf16.msra.mxu1 %v4055_v36  ;;  %v928_v36 = vld [vmem:[#allocation6 + $0x358] sm:$0xff] }
 0x3a0   :  { %4057 = vmatprep.subr.bf16.mxu1 %v4604_v0  ;;  %v4082_v37 = vpack.c.bf16 %v928_v36, %v927_v35  ;;  %v1067_v36 = vld [vmem:[#allocation6 + $0x3e0] sm:$0xff] }
 0x3a3   :  { %4059 = vmatpush3.bf16.msra.mxu1 %v4058_v39  ;;  %v930_v39 = vld [vmem:[#allocation6 + $0x368] sm:$0xff] }
 0x3a4   :  { %4060 = vmatprep.subr.bf16.mxu1 %v4604_v0  ;;  %v4085_v40 = vpack.c.bf16 %v930_v39, %v929_v38  ;;  %v1069_v39 = vld [vmem:[#allocation6 + $0x3f0] sm:$0xff] }
 0x3a7   :  { %4062 = vmatpush3.bf16.msra.mxu1 %v4061_v42  ;;  %v932_v42 = vld [vmem:[#allocation6 + $0x378] sm:$0xff] }
 0x3a8   :  { %4063 = vmatprep.subr.bf16.mxu1 %v4604_v0  ;;  %v4088_v43 = vpack.c.bf16 %v932_v42, %v931_v41  ;;  %v2868_v42 = vld [vmem:[#allocation8 + $0x6] ss:$0 sm:$0xff] }
 0x3ab   :  { %4065 = vmatpush3.bf16.msra.mxu1 %v4064_v45 }
 0x3ac   :  { %4090 = vmatprep.subr.bf16.mxu1 %v4604_v0 }
 0x45f   :  { %v593_v49 = vpop.f32.mrb[2].mxu1 }
 0x460   :  { %v594_v50 = vadd.f32 %v2865_v48, %v593_v49  ;;  %v3361_v51 = vpop.f32.mrb[3].mxu1 }
 0x462   :  { %v597_v52 = vmul.f32 0.01, %v594_v50 }
 0x464   :  { %v598_v53 = vmax.f32 %v594_v50, %v597_v52 }
 0x466   :  { %v599_v54 = vrot.slane %v598_v53, 4  ;;  %v605_v55 = vmul.f32 %v598_v53, %v598_v53 }
 0x468   :  { %v600_v56 = vadd.f32 %v599_v54, %v598_v53  ;;  %v606_v57 = vrot.slane %v605_v55, 4 }
 0x46a   :  { %v601_v58 = vrot.slane %v600_v56, 2  ;;  %v607_v59 = vadd.f32 %v606_v57, %v605_v55 }
 0x46c   :  { %v602_v60 = vadd.f32 %v601_v58, %v600_v56  ;;  %v608_v61 = vrot.slane %v607_v59, 2 }
 0x46e   :  { %v603_v62 = vrot.slane %v602_v60, 1  ;;  %v609_v63 = vadd.f32 %v608_v61, %v607_v59 }
 0x470   :  { %v604_v2 = vadd.f32 %v603_v62, %v602_v60  ;;  %v610_v3 = vrot.slane %v609_v63, 1 }
 0x472   :  { %v611_v4 = vadd.f32 %v610_v3, %v609_v63  ;;  %v612_v5 = vmul.f32 0.125, %v604_v2 }
 0x474   :  { %v613_v6 = vmul.f32 0.125, %v611_v4  ;;  %v614_v7 = vmul.f32 %v612_v5, %v612_v5 }
 0x476   :  { %v615_v8 = vsub.f32 %v613_v6, %v614_v7 }
 0x478   :  { %v616_v9 = vmax.f32 %v615_v8, 0.0 }
 0x47a   :  { %v617_v10 = vadd.f32 1e-05, %v616_v9  ;;  %v758_v9 = vld [vmem:[#allocation9 + $0x4] sm:$0x1] }
 0x47c   :  { %4421 = vrsqrt.f32 %v617_v10 }
 0x486   :  { %v4422_v12 = vpop.eup %4421 }
 0x487   :  { %v621_v13 = vmul.f32 %v4422_v12, %v620_v11  ;;  %v761_v12 = vld [vmem:[#allocation11 + $0x4] sm:$0x1] }
 0x489   :  { %v624_v15 = vmul.f32 %v621_v13, %v612_v5  ;;  %v630_v16 = vrot.slane %v621_v13, %v4732_v18 }
 0x48b   :  { %v625_v17 = vsub.f32 %v623_v14, %v624_v15  ;;  %v632_v19 = vmul.f32 %v630_v16, %v598_v53 }
 0x48d   :  { %v637_v20 = vrot.slane %v625_v17, %v4732_v18 }
 0x48f   :  { %v639_v21 = vadd.f32 %v637_v20, %v632_v19  ;;  %v917_v20 = vld [vmem:[#allocation6 + $0x300] sm:$0xff] }
 0x491   :  { %3395 = vmatmul.mubr.f32.vlgmr.msra.gmra.mrb[4].mxu0 %v639_v21  ;;  %v918_v21 = vld [vmem:[#allocation6 + $0x308] sm:$0xff] }
 0x492   :  { %3464 = vmatprep.mubr.msk.f32.mxu0 %vm4605_vm0, %v4606_v1  ;;  %v4067_v22 = vpack.c.bf16 %v918_v21, %v917_v20  ;;  %v1057_v21 = vld [vmem:[#allocation6 + $0x390] sm:$0xff] }
 0x494   :  { %4068 = vmatpush3.bf16.msra.mxu0 %v4067_v22  ;;  %v1058_v22 = vld [vmem:[#allocation6 + $0x398] sm:$0xff] }
 0x495   :  { %4069 = vmatprep.subr.bf16.mxu0 %v4604_v0  ;;  %v4094_v23 = vpack.c.bf16 %v1058_v22, %v1057_v21  ;;  %v1197_v22 = vld [vmem:[#allocation6 + $0x420] sm:$0xff] }
 0x498   :  { %4071 = vmatpush3.bf16.msra.mxu0 %v4070_v25  ;;  %v1060_v25 = vld [vmem:[#allocation6 + $0x3a8] sm:$0xff] }
 0x499   :  { %4072 = vmatprep.subr.bf16.mxu0 %v4604_v0  ;;  %v4097_v26 = vpack.c.bf16 %v1060_v25, %v1059_v24  ;;  %v1199_v25 = vld [vmem:[#allocation6 + $0x430] sm:$0xff] }
 0x49c   :  { %4074 = vmatpush3.bf16.msra.mxu0 %v4073_v28  ;;  %v1062_v28 = vld [vmem:[#allocation6 + $0x3b8] sm:$0xff] }
 0x49d   :  { %4075 = vmatprep.subr.bf16.mxu0 %v4604_v0  ;;  %v4100_v29 = vpack.c.bf16 %v1062_v28, %v1061_v27  ;;  %v1201_v28 = vld [vmem:[#allocation6 + $0x440] sm:$0xff] }
 0x4a0   :  { %4077 = vmatpush3.bf16.msra.mxu0 %v4076_v31  ;;  %v1064_v31 = vld [vmem:[#allocation6 + $0x3c8] sm:$0xff] }
 0x4a1   :  { %4078 = vmatprep.subr.bf16.mxu0 %v4604_v0  ;;  %v4103_v32 = vpack.c.bf16 %v1064_v31, %v1063_v30  ;;  %v1203_v31 = vld [vmem:[#allocation6 + $0x450] sm:$0xff] }
 0x4a4   :  { %4080 = vmatpush3.bf16.msra.mxu0 %v4079_v34  ;;  %v1066_v34 = vld [vmem:[#allocation6 + $0x3d8] sm:$0xff] }
 0x4a5   :  { %4081 = vmatprep.subr.bf16.mxu0 %v4604_v0  ;;  %v4106_v35 = vpack.c.bf16 %v1066_v34, %v1065_v33  ;;  %v1205_v34 = vld [vmem:[#allocation6 + $0x460] sm:$0xff] }
 0x4a8   :  { %4083 = vmatpush3.bf16.msra.mxu0 %v4082_v37  ;;  %v1068_v37 = vld [vmem:[#allocation6 + $0x3e8] sm:$0xff] }
 0x4a9   :  { %4084 = vmatprep.subr.bf16.mxu0 %v4604_v0  ;;  %v4109_v38 = vpack.c.bf16 %v1068_v37, %v1067_v36  ;;  %v1207_v37 = vld [vmem:[#allocation6 + $0x470] sm:$0xff] }
 0x4ac   :  { %4086 = vmatpush3.bf16.msra.mxu0 %v4085_v40  ;;  %v1070_v40 = vld [vmem:[#allocation6 + $0x3f8] sm:$0xff] }
 0x4ad   :  { %4087 = vmatprep.subr.bf16.mxu0 %v4604_v0  ;;  %v4112_v41 = vpack.c.bf16 %v1070_v40, %v1069_v39  ;;  %v2869_v40 = vld [vmem:[#allocation8 + $0x7] ss:$0 sm:$0xff] }
 0x4b0   :  { %4089 = vmatpush3.bf16.msra.mxu0 %v4088_v43 }
 0x4b1   :  { %4114 = vmatprep.subr.bf16.mxu0 %v4604_v0 }
 0x564   :  { %v731_v47 = vpop.f32.mrb[4].mxu0 }
 0x565   :  { %v732_v48 = vadd.f32 %v2866_v46, %v731_v47  ;;  %v3396_v49 = vpop.f32.mrb[5].mxu0 }
 0x567   :  { %v735_v50 = vmul.f32 0.01, %v732_v48 }
 0x569   :  { %v736_v51 = vmax.f32 %v732_v48, %v735_v50 }
 0x56b   :  { %v737_v52 = vrot.slane %v736_v51, 4  ;;  %v743_v53 = vmul.f32 %v736_v51, %v736_v51 }
 0x56d   :  { %v738_v54 = vadd.f32 %v737_v52, %v736_v51  ;;  %v744_v55 = vrot.slane %v743_v53, 4 }
 0x56f   :  { %v739_v56 = vrot.slane %v738_v54, 2  ;;  %v745_v57 = vadd.f32 %v744_v55, %v743_v53 }
 0x571   :  { %v740_v58 = vadd.f32 %v739_v56, %v738_v54  ;;  %v746_v59 = vrot.slane %v745_v57, 2 }
 0x573   :  { %v741_v60 = vrot.slane %v740_v58, 1  ;;  %v747_v61 = vadd.f32 %v746_v59, %v745_v57 }
 0x575   :  { %v742_v62 = vadd.f32 %v741_v60, %v740_v58  ;;  %v748_v63 = vrot.slane %v747_v61, 1 }
 0x577   :  { %v749_v2 = vadd.f32 %v748_v63, %v747_v61  ;;  %v750_v3 = vmul.f32 0.125, %v742_v62 }
 0x579   :  { %v751_v4 = vmul.f32 0.125, %v749_v2  ;;  %v752_v5 = vmul.f32 %v750_v3, %v750_v3 }
 0x57b   :  { %v753_v6 = vsub.f32 %v751_v4, %v752_v5 }
 0x57d   :  { %v754_v7 = vmax.f32 %v753_v6, 0.0 }
 0x57f   :  { %v755_v8 = vadd.f32 1e-05, %v754_v7  ;;  %v896_v7 = vld [vmem:[#allocation9 + $0x5] sm:$0x1] }
 0x581   :  { %4423 = vrsqrt.f32 %v755_v8 }
 0x58b   :  { %v4424_v10 = vpop.eup %4423 }
 0x58c   :  { %v759_v11 = vmul.f32 %v4424_v10, %v758_v9  ;;  %v899_v10 = vld [vmem:[#allocation11 + $0x5] sm:$0x1] }
 0x58e   :  { %v762_v13 = vmul.f32 %v759_v11, %v750_v3  ;;  %v768_v14 = vrot.slane %v759_v11, %v4732_v18 }
 0x590   :  { %v763_v15 = vsub.f32 %v761_v12, %v762_v13  ;;  %v770_v16 = vmul.f32 %v768_v14, %v736_v51 }
 0x592   :  { %v775_v17 = vrot.slane %v763_v15, %v4732_v18 }
 0x594   :  { %v777_v19 = vadd.f32 %v775_v17, %v770_v16  ;;  %v1055_v17 = vld [vmem:[#allocation6 + $0x380] sm:$0xff] }
 0x596   :  { %3430 = vmatmul.mubr.f32.vlgmr.msra.gmra.mrb[4].mxu1 %v777_v19  ;;  %v1056_v19 = vld [vmem:[#allocation6 + $0x388] sm:$0xff] }
 0x597   :  { %3499 = vmatprep.mubr.msk.f32.mxu1 %vm4605_vm0, %v4606_v1  ;;  %v4091_v20 = vpack.c.bf16 %v1056_v19, %v1055_v17  ;;  %v1195_v19 = vld [vmem:[#allocation6 + $0x410] sm:$0xff] }
 0x599   :  { %4092 = vmatpush3.bf16.msra.mxu1 %v4091_v20  ;;  %v1196_v20 = vld [vmem:[#allocation6 + $0x418] sm:$0xff] }
 0x59a   :  { %4093 = vmatprep.subr.bf16.mxu1 %v4604_v0  ;;  %v4118_v21 = vpack.c.bf16 %v1196_v20, %v1195_v19  ;;  %v1335_v20 = vld [vmem:[#allocation6 + $0x4a0] sm:$0xff] }
 0x59d   :  { %4095 = vmatpush3.bf16.msra.mxu1 %v4094_v23  ;;  %v1198_v23 = vld [vmem:[#allocation6 + $0x428] sm:$0xff] }
 0x59e   :  { %4096 = vmatprep.subr.bf16.mxu1 %v4604_v0  ;;  %v4121_v24 = vpack.c.bf16 %v1198_v23, %v1197_v22  ;;  %v1337_v23 = vld [vmem:[#allocation6 + $0x4b0] sm:$0xff] }
 0x5a1   :  { %4098 = vmatpush3.bf16.msra.mxu1 %v4097_v26  ;;  %v1200_v26 = vld [vmem:[#allocation6 + $0x438] sm:$0xff] }
 0x5a2   :  { %4099 = vmatprep.subr.bf16.mxu1 %v4604_v0  ;;  %v4124_v27 = vpack.c.bf16 %v1200_v26, %v1199_v25  ;;  %v1339_v26 = vld [vmem:[#allocation6 + $0x4c0] sm:$0xff] }
 0x5a5   :  { %4101 = vmatpush3.bf16.msra.mxu1 %v4100_v29  ;;  %v1202_v29 = vld [vmem:[#allocation6 + $0x448] sm:$0xff] }
 0x5a6   :  { %4102 = vmatprep.subr.bf16.mxu1 %v4604_v0  ;;  %v4127_v30 = vpack.c.bf16 %v1202_v29, %v1201_v28  ;;  %v1341_v29 = vld [vmem:[#allocation6 + $0x4d0] sm:$0xff] }
 0x5a9   :  { %4104 = vmatpush3.bf16.msra.mxu1 %v4103_v32  ;;  %v1204_v32 = vld [vmem:[#allocation6 + $0x458] sm:$0xff] }
 0x5aa   :  { %4105 = vmatprep.subr.bf16.mxu1 %v4604_v0  ;;  %v4130_v33 = vpack.c.bf16 %v1204_v32, %v1203_v31  ;;  %v1343_v32 = vld [vmem:[#allocation6 + $0x4e0] sm:$0xff] }
 0x5ad   :  { %4107 = vmatpush3.bf16.msra.mxu1 %v4106_v35  ;;  %v1206_v35 = vld [vmem:[#allocation6 + $0x468] sm:$0xff] }
 0x5ae   :  { %4108 = vmatprep.subr.bf16.mxu1 %v4604_v0  ;;  %v4133_v36 = vpack.c.bf16 %v1206_v35, %v1205_v34  ;;  %v1345_v35 = vld [vmem:[#allocation6 + $0x4f0] sm:$0xff] }
 0x5b1   :  { %4110 = vmatpush3.bf16.msra.mxu1 %v4109_v38  ;;  %v1208_v38 = vld [vmem:[#allocation6 + $0x478] sm:$0xff] }
 0x5b2   :  { %4111 = vmatprep.subr.bf16.mxu1 %v4604_v0  ;;  %v4136_v39 = vpack.c.bf16 %v1208_v38, %v1207_v37  ;;  %v2870_v38 = vld [vmem:[#allocation8 + $0x8] ss:$0 sm:$0xff] }
 0x5b5   :  { %4113 = vmatpush3.bf16.msra.mxu1 %v4112_v41 }
 0x5b6   :  { %4138 = vmatprep.subr.bf16.mxu1 %v4604_v0 }
 0x669   :  { %v869_v45 = vpop.f32.mrb[4].mxu1 }
 0x66a   :  { %v870_v46 = vadd.f32 %v2867_v44, %v869_v45  ;;  %v3431_v47 = vpop.f32.mrb[5].mxu1 }
 0x66c   :  { %v873_v48 = vmul.f32 0.01, %v870_v46 }
 0x66e   :  { %v874_v49 = vmax.f32 %v870_v46, %v873_v48 }
 0x670   :  { %v875_v50 = vrot.slane %v874_v49, 4  ;;  %v881_v51 = vmul.f32 %v874_v49, %v874_v49 }
 0x672   :  { %v876_v52 = vadd.f32 %v875_v50, %v874_v49  ;;  %v882_v53 = vrot.slane %v881_v51, 4 }
 0x674   :  { %v877_v54 = vrot.slane %v876_v52, 2  ;;  %v883_v55 = vadd.f32 %v882_v53, %v881_v51 }
 0x676   :  { %v878_v56 = vadd.f32 %v877_v54, %v876_v52  ;;  %v884_v57 = vrot.slane %v883_v55, 2 }
 0x678   :  { %v879_v58 = vrot.slane %v878_v56, 1  ;;  %v885_v59 = vadd.f32 %v884_v57, %v883_v55 }
 0x67a   :  { %v880_v60 = vadd.f32 %v879_v58, %v878_v56  ;;  %v886_v61 = vrot.slane %v885_v59, 1 }
 0x67c   :  { %v887_v62 = vadd.f32 %v886_v61, %v885_v59  ;;  %v888_v63 = vmul.f32 0.125, %v880_v60 }
 0x67e   :  { %v889_v2 = vmul.f32 0.125, %v887_v62  ;;  %v890_v3 = vmul.f32 %v888_v63, %v888_v63 }
 0x680   :  { %v891_v4 = vsub.f32 %v889_v2, %v890_v3 }
 0x682   :  { %v892_v5 = vmax.f32 %v891_v4, 0.0 }
 0x684   :  { %v893_v6 = vadd.f32 1e-05, %v892_v5  ;;  %v1034_v5 = vld [vmem:[#allocation9 + $0x6] sm:$0x1] }
 0x686   :  { %4425 = vrsqrt.f32 %v893_v6 }
 0x690   :  { %v4426_v8 = vpop.eup %4425 }
 0x691   :  { %v897_v9 = vmul.f32 %v4426_v8, %v896_v7  ;;  %v1037_v8 = vld [vmem:[#allocation11 + $0x6] sm:$0x1] }
 0x693   :  { %v900_v11 = vmul.f32 %v897_v9, %v888_v63  ;;  %v906_v12 = vrot.slane %v897_v9, %v4732_v18 }
 0x695   :  { %v901_v13 = vsub.f32 %v899_v10, %v900_v11  ;;  %v908_v14 = vmul.f32 %v906_v12, %v874_v49 }
 0x697   :  { %v913_v15 = vrot.slane %v901_v13, %v4732_v18 }
 0x699   :  { %v915_v16 = vadd.f32 %v913_v15, %v908_v14  ;;  %v1193_v15 = vld [vmem:[#allocation6 + $0x400] sm:$0xff] }
 0x69b   :  { %3465 = vmatmul.mubr.f32.vlgmr.msra.gmra.mrb[6].mxu0 %v915_v16  ;;  %v1194_v16 = vld [vmem:[#allocation6 + $0x408] sm:$0xff] }
 0x69c   :  { %3534 = vmatprep.mubr.msk.f32.mxu0 %vm4605_vm0, %v4606_v1  ;;  %v4115_v17 = vpack.c.bf16 %v1194_v16, %v1193_v15  ;;  %v1333_v16 = vld [vmem:[#allocation6 + $0x490] sm:$0xff] }
 0x69e   :  { %4116 = vmatpush3.bf16.msra.mxu0 %v4115_v17  ;;  %v1334_v17 = vld [vmem:[#allocation6 + $0x498] sm:$0xff] }
 0x69f   :  { %4117 = vmatprep.subr.bf16.mxu0 %v4604_v0  ;;  %v4142_v19 = vpack.c.bf16 %v1334_v17, %v1333_v16  ;;  %v1471_v17 = vld [vmem:[#allocation6 + $0x520] sm:$0xff] }
 0x6a2   :  { %4119 = vmatpush3.bf16.msra.mxu0 %v4118_v21  ;;  %v1336_v21 = vld [vmem:[#allocation6 + $0x4a8] sm:$0xff] }
 0x6a3   :  { %4120 = vmatprep.subr.bf16.mxu0 %v4604_v0  ;;  %v4145_v22 = vpack.c.bf16 %v1336_v21, %v1335_v20  ;;  %v1473_v21 = vld [vmem:[#allocation6 + $0x530] sm:$0xff] }
 0x6a6   :  { %4122 = vmatpush3.bf16.msra.mxu0 %v4121_v24  ;;  %v1338_v24 = vld [vmem:[#allocation6 + $0x4b8] sm:$0xff] }
 0x6a7   :  { %4123 = vmatprep.subr.bf16.mxu0 %v4604_v0  ;;  %v4148_v25 = vpack.c.bf16 %v1338_v24, %v1337_v23  ;;  %v1475_v24 = vld [vmem:[#allocation6 + $0x540] sm:$0xff] }
 0x6aa   :  { %4125 = vmatpush3.bf16.msra.mxu0 %v4124_v27  ;;  %v1340_v27 = vld [vmem:[#allocation6 + $0x4c8] sm:$0xff] }
 0x6ab   :  { %4126 = vmatprep.subr.bf16.mxu0 %v4604_v0  ;;  %v4151_v28 = vpack.c.bf16 %v1340_v27, %v1339_v26  ;;  %v1477_v27 = vld [vmem:[#allocation6 + $0x550] sm:$0xff] }
 0x6ae   :  { %4128 = vmatpush3.bf16.msra.mxu0 %v4127_v30  ;;  %v1342_v30 = vld [vmem:[#allocation6 + $0x4d8] sm:$0xff] }
 0x6af   :  { %4129 = vmatprep.subr.bf16.mxu0 %v4604_v0  ;;  %v4154_v31 = vpack.c.bf16 %v1342_v30, %v1341_v29  ;;  %v1479_v30 = vld [vmem:[#allocation6 + $0x560] sm:$0xff] }
 0x6b2   :  { %4131 = vmatpush3.bf16.msra.mxu0 %v4130_v33  ;;  %v1344_v33 = vld [vmem:[#allocation6 + $0x4e8] sm:$0xff] }
 0x6b3   :  { %4132 = vmatprep.subr.bf16.mxu0 %v4604_v0  ;;  %v4157_v34 = vpack.c.bf16 %v1344_v33, %v1343_v32  ;;  %v1481_v33 = vld [vmem:[#allocation6 + $0x570] sm:$0xff] }
 0x6b6   :  { %4134 = vmatpush3.bf16.msra.mxu0 %v4133_v36  ;;  %v1346_v36 = vld [vmem:[#allocation6 + $0x4f8] sm:$0xff] }
 0x6b7   :  { %4135 = vmatprep.subr.bf16.mxu0 %v4604_v0  ;;  %v4160_v37 = vpack.c.bf16 %v1346_v36, %v1345_v35  ;;  %v2871_v36 = vld [vmem:[#allocation8 + $0x9] ss:$0 sm:$0xff] }
 0x6ba   :  { %4137 = vmatpush3.bf16.msra.mxu0 %v4136_v39 }
 0x6bb   :  { %4162 = vmatprep.subr.bf16.mxu0 %v4604_v0 }
 0x76e   :  { %v1007_v43 = vpop.f32.mrb[6].mxu0 }
 0x76f   :  { %v1008_v44 = vadd.f32 %v2868_v42, %v1007_v43  ;;  %v3466_v45 = vpop.f32.mrb[7].mxu0 }
 0x771   :  { %v1011_v46 = vmul.f32 0.01, %v1008_v44 }
 0x773   :  { %v1012_v47 = vmax.f32 %v1008_v44, %v1011_v46 }
 0x775   :  { %v1013_v48 = vrot.slane %v1012_v47, 4  ;;  %v1019_v49 = vmul.f32 %v1012_v47, %v1012_v47 }
 0x777   :  { %v1014_v50 = vadd.f32 %v1013_v48, %v1012_v47  ;;  %v1020_v51 = vrot.slane %v1019_v49, 4 }
 0x779   :  { %v1015_v52 = vrot.slane %v1014_v50, 2  ;;  %v1021_v53 = vadd.f32 %v1020_v51, %v1019_v49 }
 0x77b   :  { %v1016_v54 = vadd.f32 %v1015_v52, %v1014_v50  ;;  %v1022_v55 = vrot.slane %v1021_v53, 2 }
 0x77d   :  { %v1017_v56 = vrot.slane %v1016_v54, 1  ;;  %v1023_v57 = vadd.f32 %v1022_v55, %v1021_v53 }
 0x77f   :  { %v1018_v58 = vadd.f32 %v1017_v56, %v1016_v54  ;;  %v1024_v59 = vrot.slane %v1023_v57, 1 }
 0x781   :  { %v1025_v60 = vadd.f32 %v1024_v59, %v1023_v57  ;;  %v1026_v61 = vmul.f32 0.125, %v1018_v58 }
 0x783   :  { %v1027_v62 = vmul.f32 0.125, %v1025_v60  ;;  %v1028_v63 = vmul.f32 %v1026_v61, %v1026_v61 }
 0x785   :  { %v1029_v2 = vsub.f32 %v1027_v62, %v1028_v63 }
 0x787   :  { %v1030_v3 = vmax.f32 %v1029_v2, 0.0 }
 0x789   :  { %v1031_v4 = vadd.f32 1e-05, %v1030_v3  ;;  %v1172_v3 = vld [vmem:[#allocation9 + $0x7] sm:$0x1] }
 0x78b   :  { %4427 = vrsqrt.f32 %v1031_v4 }
 0x795   :  { %v4428_v6 = vpop.eup %4427 }
 0x796   :  { %v1035_v7 = vmul.f32 %v4428_v6, %v1034_v5  ;;  %v1175_v6 = vld [vmem:[#allocation11 + $0x7] sm:$0x1] }
 0x798   :  { %v1038_v9 = vmul.f32 %v1035_v7, %v1026_v61  ;;  %v1044_v10 = vrot.slane %v1035_v7, %v4732_v18 }
 0x79a   :  { %v1039_v11 = vsub.f32 %v1037_v8, %v1038_v9  ;;  %v1046_v12 = vmul.f32 %v1044_v10, %v1012_v47 }
 0x79c   :  { %v1051_v13 = vrot.slane %v1039_v11, %v4732_v18 }
 0x79e   :  { %v1053_v14 = vadd.f32 %v1051_v13, %v1046_v12  ;;  %v1331_v13 = vld [vmem:[#allocation6 + $0x480] sm:$0xff] }
 0x7a0   :  { %3500 = vmatmul.mubr.f32.vlgmr.msra.gmra.mrb[6].mxu1 %v1053_v14  ;;  %v1332_v14 = vld [vmem:[#allocation6 + $0x488] sm:$0xff] }
 0x7a1   :  { %3569 = vmatprep.mubr.msk.f32.mxu1 %vm4605_vm0, %v4606_v1  ;;  %v4139_v15 = vpack.c.bf16 %v1332_v14, %v1331_v13  ;;  %v1469_v14 = vld [vmem:[#allocation6 + $0x510] sm:$0xff] }
 0x7a3   :  { %4140 = vmatpush3.bf16.msra.mxu1 %v4139_v15  ;;  %v1470_v15 = vld [vmem:[#allocation6 + $0x518] sm:$0xff] }
 0x7a4   :  { %4141 = vmatprep.subr.bf16.mxu1 %v4604_v0  ;;  %v4166_v16 = vpack.c.bf16 %v1470_v15, %v1469_v14  ;;  %v1610_v14 = vld [vmem:[#allocation6 + $0x5a8] sm:$0xff] }
 0x7a7   :  { %4143 = vmatpush3.bf16.msra.mxu1 %v4142_v19  ;;  %v1472_v19 = vld [vmem:[#allocation6 + $0x528] sm:$0xff] }
 0x7a8   :  { %4144 = vmatprep.subr.bf16.mxu1 %v4604_v0  ;;  %v4169_v20 = vpack.c.bf16 %v1472_v19, %v1471_v17  ;;  %v1612_v17 = vld [vmem:[#allocation6 + $0x5b8] sm:$0xff] }
 0x7ab   :  { %4146 = vmatpush3.bf16.msra.mxu1 %v4145_v22  ;;  %v1474_v22 = vld [vmem:[#allocation6 + $0x538] sm:$0xff] }
 0x7ac   :  { %4147 = vmatprep.subr.bf16.mxu1 %v4604_v0  ;;  %v4172_v23 = vpack.c.bf16 %v1474_v22, %v1473_v21  ;;  %v1614_v21 = vld [vmem:[#allocation6 + $0x5c8] sm:$0xff] }
 0x7af   :  { %4149 = vmatpush3.bf16.msra.mxu1 %v4148_v25  ;;  %v1476_v25 = vld [vmem:[#allocation6 + $0x548] sm:$0xff] }
 0x7b0   :  { %4150 = vmatprep.subr.bf16.mxu1 %v4604_v0  ;;  %v4175_v26 = vpack.c.bf16 %v1476_v25, %v1475_v24  ;;  %v1616_v24 = vld [vmem:[#allocation6 + $0x5d8] sm:$0xff] }
 0x7b3   :  { %4152 = vmatpush3.bf16.msra.mxu1 %v4151_v28  ;;  %v1478_v28 = vld [vmem:[#allocation6 + $0x558] sm:$0xff] }
 0x7b4   :  { %4153 = vmatprep.subr.bf16.mxu1 %v4604_v0  ;;  %v4178_v29 = vpack.c.bf16 %v1478_v28, %v1477_v27  ;;  %v1618_v27 = vld [vmem:[#allocation6 + $0x5e8] sm:$0xff] }
 0x7b7   :  { %4155 = vmatpush3.bf16.msra.mxu1 %v4154_v31  ;;  %v1480_v31 = vld [vmem:[#allocation6 + $0x568] sm:$0xff] }
 0x7b8   :  { %4156 = vmatprep.subr.bf16.mxu1 %v4604_v0  ;;  %v4181_v32 = vpack.c.bf16 %v1480_v31, %v1479_v30  ;;  %v1620_v30 = vld [vmem:[#allocation6 + $0x5f8] sm:$0xff] }
 0x7bb   :  { %4158 = vmatpush3.bf16.msra.mxu1 %v4157_v34  ;;  %v1482_v34 = vld [vmem:[#allocation6 + $0x578] sm:$0xff] }
 0x7bc   :  { %4159 = vmatprep.subr.bf16.mxu1 %v4604_v0  ;;  %v4184_v35 = vpack.c.bf16 %v1482_v34, %v1481_v33 }
 0x7bf   :  { %4161 = vmatpush3.bf16.msra.mxu1 %v4160_v37 }
 0x7c0   :  { %4186 = vmatprep.subr.bf16.mxu1 %v4604_v0 }
 0x873   :  { %v1145_v41 = vpop.f32.mrb[6].mxu1 }
 0x874   :  { %v1146_v42 = vadd.f32 %v2869_v40, %v1145_v41  ;;  %v3501_v43 = vpop.f32.mrb[7].mxu1 }
 0x876   :  { %v1149_v44 = vmul.f32 0.01, %v1146_v42 }
 0x878   :  { %v1150_v45 = vmax.f32 %v1146_v42, %v1149_v44 }
 0x87a   :  { %v1151_v46 = vrot.slane %v1150_v45, 4  ;;  %v1157_v47 = vmul.f32 %v1150_v45, %v1150_v45 }
 0x87c   :  { %v1152_v48 = vadd.f32 %v1151_v46, %v1150_v45  ;;  %v1158_v49 = vrot.slane %v1157_v47, 4 }
 0x87e   :  { %v1153_v50 = vrot.slane %v1152_v48, 2  ;;  %v1159_v51 = vadd.f32 %v1158_v49, %v1157_v47 }
 0x880   :  { %v1154_v52 = vadd.f32 %v1153_v50, %v1152_v48  ;;  %v1160_v53 = vrot.slane %v1159_v51, 2 }
 0x882   :  { %v1155_v54 = vrot.slane %v1154_v52, 1  ;;  %v1161_v55 = vadd.f32 %v1160_v53, %v1159_v51 }
 0x884   :  { %v1156_v56 = vadd.f32 %v1155_v54, %v1154_v52  ;;  %v1162_v57 = vrot.slane %v1161_v55, 1 }
 0x886   :  { %v1163_v58 = vadd.f32 %v1162_v57, %v1161_v55  ;;  %v1164_v59 = vmul.f32 0.125, %v1156_v56 }
 0x888   :  { %v1165_v60 = vmul.f32 0.125, %v1163_v58  ;;  %v1166_v61 = vmul.f32 %v1164_v59, %v1164_v59 }
 0x88a   :  { %v1167_v62 = vsub.f32 %v1165_v60, %v1166_v61 }
 0x88c   :  { %v1168_v63 = vmax.f32 %v1167_v62, 0.0 }
 0x88e   :  { %v1169_v2 = vadd.f32 1e-05, %v1168_v63  ;;  %v1310_v63 = vld [vmem:[#allocation9 + $0x8] sm:$0x1] }
 0x890   :  { %4429 = vrsqrt.f32 %v1169_v2 }
 0x89a   :  { %v4430_v4 = vpop.eup %4429 }
 0x89b   :  { %v1173_v5 = vmul.f32 %v4430_v4, %v1172_v3  ;;  %v1313_v4 = vld [vmem:[#allocation11 + $0x8] sm:$0x1] }
 0x89d   :  { %v1176_v7 = vmul.f32 %v1173_v5, %v1164_v59  ;;  %v1182_v8 = vrot.slane %v1173_v5, %v4732_v18 }
 0x89f   :  { %v1177_v9 = vsub.f32 %v1175_v6, %v1176_v7  ;;  %v1184_v10 = vmul.f32 %v1182_v8, %v1150_v45 }
 0x8a1   :  { %v1189_v11 = vrot.slane %v1177_v9, %v4732_v18 }
 0x8a3   :  { %v1191_v12 = vadd.f32 %v1189_v11, %v1184_v10  ;;  %v1467_v11 = vld [vmem:[#allocation6 + $0x500] sm:$0xff] }
 0x8a5   :  { %3535 = vmatmul.mubr.f32.vlgmr.msra.gmra.mrb[8].mxu0 %v1191_v12  ;;  %v1468_v12 = vld [vmem:[#allocation6 + $0x508] sm:$0xff] }
 0x8a6   :  { %3604 = vmatprep.mubr.msk.f32.mxu0 %vm4605_vm0, %v4606_v1  ;;  %v4163_v13 = vpack.c.bf16 %v1468_v12, %v1467_v11  ;;  %v1608_v11 = vld [vmem:[#allocation6 + $0x598] sm:$0xff] }
 0x8a8   :  { %4164 = vmatpush3.bf16.msra.mxu0 %v4163_v13  ;;  %v1609_v13 = vld [vmem:[#allocation6 + $0x5a0] sm:$0xff] }
 0x8a9   :  { %4165 = vmatprep.subr.bf16.mxu0 %v4604_v0  ;;  %v4193_v15 = vpack.c.bf16 %v1610_v14, %v1609_v13  ;;  %v1749_v14 = vld [vmem:[#allocation6 + $0x630] sm:$0xff] }
 0x8ac   :  { %4167 = vmatpush3.bf16.msra.mxu0 %v4166_v16  ;;  %v1611_v16 = vld [vmem:[#allocation6 + $0x5b0] sm:$0xff] }
 0x8ad   :  { %4168 = vmatprep.subr.bf16.mxu0 %v4604_v0  ;;  %v4196_v19 = vpack.c.bf16 %v1612_v17, %v1611_v16  ;;  %v1751_v17 = vld [vmem:[#allocation6 + $0x640] sm:$0xff] }
 0x8b0   :  { %4170 = vmatpush3.bf16.msra.mxu0 %v4169_v20  ;;  %v1613_v20 = vld [vmem:[#allocation6 + $0x5c0] sm:$0xff] }
 0x8b1   :  { %4171 = vmatprep.subr.bf16.mxu0 %v4604_v0  ;;  %v4199_v22 = vpack.c.bf16 %v1614_v21, %v1613_v20  ;;  %v1753_v21 = vld [vmem:[#allocation6 + $0x650] sm:$0xff] }
 0x8b4   :  { %4173 = vmatpush3.bf16.msra.mxu0 %v4172_v23  ;;  %v1615_v23 = vld [vmem:[#allocation6 + $0x5d0] sm:$0xff] }
 0x8b5   :  { %4174 = vmatprep.subr.bf16.mxu0 %v4604_v0  ;;  %v4202_v25 = vpack.c.bf16 %v1616_v24, %v1615_v23  ;;  %v1755_v24 = vld [vmem:[#allocation6 + $0x660] sm:$0xff] }
 0x8b8   :  { %4176 = vmatpush3.bf16.msra.mxu0 %v4175_v26  ;;  %v1617_v26 = vld [vmem:[#allocation6 + $0x5e0] sm:$0xff] }
 0x8b9   :  { %4177 = vmatprep.subr.bf16.mxu0 %v4604_v0  ;;  %v4205_v28 = vpack.c.bf16 %v1618_v27, %v1617_v26  ;;  %v1757_v27 = vld [vmem:[#allocation6 + $0x670] sm:$0xff] }
 0x8bc   :  { %4179 = vmatpush3.bf16.msra.mxu0 %v4178_v29  ;;  %v1619_v29 = vld [vmem:[#allocation6 + $0x5f0] sm:$0xff] }
 0x8bd   :  { %4180 = vmatprep.subr.bf16.mxu0 %v4604_v0  ;;  %v4208_v31 = vpack.c.bf16 %v1620_v30, %v1619_v29  ;;  %v2873_v30 = vld [vmem:[#allocation8 + $0xb] ss:$0 sm:$0xff] }
 0x8c0   :  { %4182 = vmatpush3.bf16.msra.mxu0 %v4181_v32  ;;  %v2872_v32 = vld [vmem:[#allocation8 + $0xa] ss:$0 sm:$0xff] }
 0x8c1   :  { %4183 = vmatprep.subr.bf16.mxu0 %v4604_v0 }
 0x8c4   :  { %4185 = vmatpush3.bf16.msra.mxu0 %v4184_v35 }
 0x8c5   :  { %4210 = vmatprep.subr.bf16.mxu0 %v4604_v0 }
 0x978   :  { %v1283_v39 = vpop.f32.mrb[8].mxu0 }
 0x979   :  { %v1284_v40 = vadd.f32 %v2870_v38, %v1283_v39  ;;  %v3536_v41 = vpop.f32.mrb[9].mxu0 }
 0x97b   :  { %v1287_v42 = vmul.f32 0.01, %v1284_v40 }
 0x97d   :  { %v1288_v43 = vmax.f32 %v1284_v40, %v1287_v42 }
 0x97f   :  { %v1289_v44 = vrot.slane %v1288_v43, 4  ;;  %v1295_v45 = vmul.f32 %v1288_v43, %v1288_v43 }
 0x981   :  { %v1290_v46 = vadd.f32 %v1289_v44, %v1288_v43  ;;  %v1296_v47 = vrot.slane %v1295_v45, 4 }
 0x983   :  { %v1291_v48 = vrot.slane %v1290_v46, 2  ;;  %v1297_v49 = vadd.f32 %v1296_v47, %v1295_v45 }
 0x985   :  { %v1292_v50 = vadd.f32 %v1291_v48, %v1290_v46  ;;  %v1298_v51 = vrot.slane %v1297_v49, 2 }
 0x987   :  { %v1293_v52 = vrot.slane %v1292_v50, 1  ;;  %v1299_v53 = vadd.f32 %v1298_v51, %v1297_v49 }
 0x989   :  { %v1294_v54 = vadd.f32 %v1293_v52, %v1292_v50  ;;  %v1300_v55 = vrot.slane %v1299_v53, 1 }
 0x98b   :  { %v1301_v56 = vadd.f32 %v1300_v55, %v1299_v53  ;;  %v1302_v57 = vmul.f32 0.125, %v1294_v54 }
 0x98d   :  { %v1303_v58 = vmul.f32 0.125, %v1301_v56  ;;  %v1304_v59 = vmul.f32 %v1302_v57, %v1302_v57 }
 0x98f   :  { %v1305_v60 = vsub.f32 %v1303_v58, %v1304_v59  ;;  %v1446_v59 = vld [vmem:[#allocation9 + $0x9] sm:$0x1] }
 0x991   :  { %v1306_v61 = vmax.f32 %v1305_v60, 0.0 }
 0x993   :  { %v1307_v62 = vadd.f32 1e-05, %v1306_v61 }
 0x995   :  { %4431 = vrsqrt.f32 %v1307_v62  ;;  %v1449_v62 = vld [vmem:[#allocation11 + $0x9] sm:$0x1] }
 0x99f   :  { %v4432_v2 = vpop.eup %4431 }
 0x9a0   :  { %v1311_v3 = vmul.f32 %v4432_v2, %v1310_v63 }
 0x9a2   :  { %v1314_v5 = vmul.f32 %v1311_v3, %v1302_v57  ;;  %v1320_v6 = vrot.slane %v1311_v3, %v4732_v18 }
 0x9a4   :  { %v1315_v7 = vsub.f32 %v1313_v4, %v1314_v5  ;;  %v1322_v8 = vmul.f32 %v1320_v6, %v1288_v43 }
 0x9a6   :  { %v1327_v9 = vrot.slane %v1315_v7, %v4732_v18  ;;  %v1605_v7 = vld [vmem:[#allocation6 + $0x580] sm:$0xff] }
 0x9a8   :  { %v1329_v10 = vadd.f32 %v1327_v9, %v1322_v8  ;;  %v1606_v8 = vld [vmem:[#allocation6 + $0x588] sm:$0xff] }
 0x9a9   :  { %v4187_v9 = vpack.c.bf16 %v1606_v8, %v1605_v7  ;;  %v1745_v8 = vld [vmem:[#allocation6 + $0x610] sm:$0xff] }
 0x9aa   :  { %3570 = vmatmul.mubr.f32.vlgmr.msra.gmra.mrb[8].mxu1 %v1329_v10  ;;  %v1607_v10 = vld [vmem:[#allocation6 + $0x590] sm:$0xff] }
 0x9ab   :  { %3639 = vmatprep.mubr.msk.f32.mxu1 %vm4605_vm0, %v4606_v1  ;;  %4188 = vmatpush3.bf16.msra.mxu1 %v4187_v9  ;;  %v4190_v12 = vpack.c.bf16 %v1608_v11, %v1607_v10  ;;  %v1746_v9 = vld [vmem:[#allocation6 + $0x618] sm:$0xff]  ;;  %v1747_v11 = vld [vmem:[#allocation6 + $0x620] sm:$0xff] }
 0x9ac   :  { %4189 = vmatprep.subr.bf16.mxu1 %v4604_v0  ;;  %v4214_v10 = vpack.c.bf16 %v1746_v9, %v1745_v8  ;;  %v1885_v9 = vld [vmem:[#allocation6 + $0x6a0] sm:$0xff] }
 0x9af   :  { %4191 = vmatpush3.bf16.msra.mxu1 %v4190_v12  ;;  %v1748_v12 = vld [vmem:[#allocation6 + $0x628] sm:$0xff] }
 0x9b0   :  { %4192 = vmatprep.subr.bf16.mxu1 %v4604_v0  ;;  %v4217_v13 = vpack.c.bf16 %v1748_v12, %v1747_v11  ;;  %v1887_v12 = vld [vmem:[#allocation6 + $0x6b0] sm:$0xff] }
 0x9b3   :  { %4194 = vmatpush3.bf16.msra.mxu1 %v4193_v15  ;;  %v1750_v15 = vld [vmem:[#allocation6 + $0x638] sm:$0xff] }
 0x9b4   :  { %4195 = vmatprep.subr.bf16.mxu1 %v4604_v0  ;;  %v4220_v16 = vpack.c.bf16 %v1750_v15, %v1749_v14  ;;  %v1889_v15 = vld [vmem:[#allocation6 + $0x6c0] sm:$0xff] }
 0x9b7   :  { %4197 = vmatpush3.bf16.msra.mxu1 %v4196_v19  ;;  %v1752_v19 = vld [vmem:[#allocation6 + $0x648] sm:$0xff] }
 0x9b8   :  { %4198 = vmatprep.subr.bf16.mxu1 %v4604_v0  ;;  %v4223_v20 = vpack.c.bf16 %v1752_v19, %v1751_v17  ;;  %v1891_v19 = vld [vmem:[#allocation6 + $0x6d0] sm:$0xff] }
 0x9bb   :  { %4200 = vmatpush3.bf16.msra.mxu1 %v4199_v22  ;;  %v1754_v22 = vld [vmem:[#allocation6 + $0x658] sm:$0xff] }
 0x9bc   :  { %4201 = vmatprep.subr.bf16.mxu1 %v4604_v0  ;;  %v4226_v23 = vpack.c.bf16 %v1754_v22, %v1753_v21  ;;  %v1893_v22 = vld [vmem:[#allocation6 + $0x6e0] sm:$0xff] }
 0x9bf   :  { %4203 = vmatpush3.bf16.msra.mxu1 %v4202_v25  ;;  %v1756_v25 = vld [vmem:[#allocation6 + $0x668] sm:$0xff] }
 0x9c0   :  { %4204 = vmatprep.subr.bf16.mxu1 %v4604_v0  ;;  %v4229_v26 = vpack.c.bf16 %v1756_v25, %v1755_v24  ;;  %v1895_v25 = vld [vmem:[#allocation6 + $0x6f0] sm:$0xff] }
 0x9c3   :  { %4206 = vmatpush3.bf16.msra.mxu1 %v4205_v28  ;;  %v1758_v28 = vld [vmem:[#allocation6 + $0x678] sm:$0xff] }
 0x9c4   :  { %4207 = vmatprep.subr.bf16.mxu1 %v4604_v0  ;;  %v4232_v29 = vpack.c.bf16 %v1758_v28, %v1757_v27  ;;  %v2874_v28 = vld [vmem:[#allocation8 + $0xc] ss:$0 sm:$0xff] }
 0x9c7   :  { %4209 = vmatpush3.bf16.msra.mxu1 %v4208_v31 }
 0x9c8   :  { %4234 = vmatprep.subr.bf16.mxu1 %v4604_v0 }
 0xa7d   :  { %v1421_v37 = vpop.f32.mrb[8].mxu1 }
 0xa7e   :  { %v1422_v38 = vadd.f32 %v2871_v36, %v1421_v37  ;;  %v3571_v39 = vpop.f32.mrb[9].mxu1 }
 0xa80   :  { %v1425_v40 = vrot.slane %v1422_v38, 4  ;;  %v1431_v41 = vmul.f32 %v1422_v38, %v1422_v38 }
 0xa82   :  { %v1426_v42 = vadd.f32 %v1425_v40, %v1422_v38  ;;  %v1432_v43 = vrot.slane %v1431_v41, 4 }
 0xa84   :  { %v1427_v44 = vrot.slane %v1426_v42, 2  ;;  %v1433_v45 = vadd.f32 %v1432_v43, %v1431_v41 }
 0xa86   :  { %v1428_v46 = vadd.f32 %v1427_v44, %v1426_v42  ;;  %v1434_v47 = vrot.slane %v1433_v45, 2 }
 0xa88   :  { %v1429_v48 = vrot.slane %v1428_v46, 1  ;;  %v1435_v49 = vadd.f32 %v1434_v47, %v1433_v45 }
 0xa8a   :  { %v1430_v50 = vadd.f32 %v1429_v48, %v1428_v46  ;;  %v1436_v51 = vrot.slane %v1435_v49, 1 }
 0xa8c   :  { %v1437_v52 = vadd.f32 %v1436_v51, %v1435_v49  ;;  %v1438_v53 = vmul.f32 0.125, %v1430_v50 }
 0xa8e   :  { %v1439_v54 = vmul.f32 0.125, %v1437_v52  ;;  %v1440_v55 = vmul.f32 %v1438_v53, %v1438_v53 }
 0xa90   :  { %v1441_v56 = vsub.f32 %v1439_v54, %v1440_v55 }
 0xa92   :  { %v1442_v57 = vmax.f32 %v1441_v56, 0.0 }
 0xa94   :  { %v1443_v58 = vadd.f32 1e-05, %v1442_v57  ;;  %v1584_v57 = vld [vmem:[#allocation9 + $0xa] sm:$0x1] }
 0xa96   :  { %4433 = vrsqrt.f32 %v1443_v58 }
 0xaa0   :  { %v4434_v60 = vpop.eup %4433 }
 0xaa1   :  { %v1447_v61 = vmul.f32 %v4434_v60, %v1446_v59  ;;  %v1587_v60 = vld [vmem:[#allocation11 + $0xa] sm:$0x1] }
 0xaa3   :  { %v1456_v63 = vrot.slane %v1447_v61, %v4732_v18  ;;  %v1450_v2 = vmul.f32 %v1447_v61, %v1438_v53 }
 0xaa5   :  { %v1451_v3 = vsub.f32 %v1449_v62, %v1450_v2  ;;  %v1458_v4 = vmul.f32 %v1456_v63, %v1422_v38 }
 0xaa7   :  { %v1463_v5 = vrot.slane %v1451_v3, %v4732_v18 }
 0xaa9   :  { %v1465_v6 = vadd.f32 %v1463_v5, %v1458_v4  ;;  %v1743_v5 = vld [vmem:[#allocation6 + $0x600] sm:$0xff] }
 0xaab   :  { %3605 = vmatmul.mubr.f32.vlgmr.msra.gmra.mrb[10].mxu0 %v1465_v6  ;;  %v1744_v6 = vld [vmem:[#allocation6 + $0x608] sm:$0xff] }
 0xaac   :  { %3674 = vmatprep.mubr.msk.f32.mxu0 %vm4605_vm0, %v4606_v1  ;;  %v4211_v7 = vpack.c.bf16 %v1744_v6, %v1743_v5  ;;  %v1883_v6 = vld [vmem:[#allocation6 + $0x690] sm:$0xff] }
 0xaae   :  { %4212 = vmatpush3.bf16.msra.mxu0 %v4211_v7  ;;  %v1884_v7 = vld [vmem:[#allocation6 + $0x698] sm:$0xff] }
 0xaaf   :  { %4213 = vmatprep.subr.bf16.mxu0 %v4604_v0  ;;  %v4238_v8 = vpack.c.bf16 %v1884_v7, %v1883_v6  ;;  %v2023_v7 = vld [vmem:[#allocation6 + $0x720] sm:$0xff] }
 0xab2   :  { %4215 = vmatpush3.bf16.msra.mxu0 %v4214_v10  ;;  %v1886_v10 = vld [vmem:[#allocation6 + $0x6a8] sm:$0xff] }
 0xab3   :  { %4216 = vmatprep.subr.bf16.mxu0 %v4604_v0  ;;  %v4241_v11 = vpack.c.bf16 %v1886_v10, %v1885_v9  ;;  %v2025_v10 = vld [vmem:[#allocation6 + $0x730] sm:$0xff] }
 0xab6   :  { %4218 = vmatpush3.bf16.msra.mxu0 %v4217_v13  ;;  %v1888_v13 = vld [vmem:[#allocation6 + $0x6b8] sm:$0xff] }
 0xab7   :  { %4219 = vmatprep.subr.bf16.mxu0 %v4604_v0  ;;  %v4244_v14 = vpack.c.bf16 %v1888_v13, %v1887_v12  ;;  %v2027_v13 = vld [vmem:[#allocation6 + $0x740] sm:$0xff] }
 0xaba   :  { %4221 = vmatpush3.bf16.msra.mxu0 %v4220_v16  ;;  %v1890_v16 = vld [vmem:[#allocation6 + $0x6c8] sm:$0xff] }
 0xabb   :  { %4222 = vmatprep.subr.bf16.mxu0 %v4604_v0  ;;  %v4247_v17 = vpack.c.bf16 %v1890_v16, %v1889_v15  ;;  %v2029_v16 = vld [vmem:[#allocation6 + $0x750] sm:$0xff] }
 0xabe   :  { %4224 = vmatpush3.bf16.msra.mxu0 %v4223_v20  ;;  %v1892_v20 = vld [vmem:[#allocation6 + $0x6d8] sm:$0xff] }
 0xabf   :  { %4225 = vmatprep.subr.bf16.mxu0 %v4604_v0  ;;  %v4250_v21 = vpack.c.bf16 %v1892_v20, %v1891_v19  ;;  %v2031_v20 = vld [vmem:[#allocation6 + $0x760] sm:$0xff] }
 0xac2   :  { %4227 = vmatpush3.bf16.msra.mxu0 %v4226_v23  ;;  %v1894_v23 = vld [vmem:[#allocation6 + $0x6e8] sm:$0xff] }
 0xac3   :  { %4228 = vmatprep.subr.bf16.mxu0 %v4604_v0  ;;  %v4253_v24 = vpack.c.bf16 %v1894_v23, %v1893_v22  ;;  %v2033_v23 = vld [vmem:[#allocation6 + $0x770] sm:$0xff] }
 0xac6   :  { %4230 = vmatpush3.bf16.msra.mxu0 %v4229_v26  ;;  %v1896_v26 = vld [vmem:[#allocation6 + $0x6f8] sm:$0xff] }
 0xac7   :  { %4231 = vmatprep.subr.bf16.mxu0 %v4604_v0  ;;  %v4256_v27 = vpack.c.bf16 %v1896_v26, %v1895_v25  ;;  %v2875_v26 = vld [vmem:[#allocation8 + $0xd] ss:$0 sm:$0xff] }
 0xaca   :  { %4233 = vmatpush3.bf16.msra.mxu0 %v4232_v29 }
 0xacb   :  { %4258 = vmatprep.subr.bf16.mxu0 %v4604_v0 }
 0xb7e   :  { %v1557_v33 = vpop.f32.mrb[10].mxu0 }
 0xb7f   :  { %v1558_v34 = vadd.f32 %v2872_v32, %v1557_v33  ;;  %v3606_v35 = vpop.f32.mrb[11].mxu0 }
 0xb81   :  { %v1561_v36 = vmul.f32 0.01, %v1558_v34 }
 0xb83   :  { %v1562_v37 = vmax.f32 %v1558_v34, %v1561_v36 }
 0xb85   :  { %v1563_v38 = vrot.slane %v1562_v37, 4  ;;  %v1569_v39 = vmul.f32 %v1562_v37, %v1562_v37 }
 0xb87   :  { %v1564_v40 = vadd.f32 %v1563_v38, %v1562_v37  ;;  %v1570_v41 = vrot.slane %v1569_v39, 4 }
 0xb89   :  { %v1565_v42 = vrot.slane %v1564_v40, 2  ;;  %v1571_v43 = vadd.f32 %v1570_v41, %v1569_v39 }
 0xb8b   :  { %v1566_v44 = vadd.f32 %v1565_v42, %v1564_v40  ;;  %v1572_v45 = vrot.slane %v1571_v43, 2 }
 0xb8d   :  { %v1567_v46 = vrot.slane %v1566_v44, 1  ;;  %v1573_v47 = vadd.f32 %v1572_v45, %v1571_v43 }
 0xb8f   :  { %v1568_v48 = vadd.f32 %v1567_v46, %v1566_v44  ;;  %v1574_v49 = vrot.slane %v1573_v47, 1 }
 0xb91   :  { %v1575_v50 = vadd.f32 %v1574_v49, %v1573_v47  ;;  %v1576_v51 = vmul.f32 0.125, %v1568_v48 }
 0xb93   :  { %v1577_v52 = vmul.f32 0.125, %v1575_v50  ;;  %v1578_v53 = vmul.f32 %v1576_v51, %v1576_v51 }
 0xb95   :  { %v1579_v54 = vsub.f32 %v1577_v52, %v1578_v53 }
 0xb97   :  { %v1580_v55 = vmax.f32 %v1579_v54, 0.0 }
 0xb99   :  { %v1581_v56 = vadd.f32 1e-05, %v1580_v55  ;;  %v1722_v55 = vld [vmem:[#allocation9 + $0xb] sm:$0x1] }
 0xb9b   :  { %4435 = vrsqrt.f32 %v1581_v56 }
 0xba5   :  { %v4436_v58 = vpop.eup %4435 }
 0xba6   :  { %v1585_v59 = vmul.f32 %v4436_v58, %v1584_v57  ;;  %v1725_v58 = vld [vmem:[#allocation11 + $0xb] sm:$0x1] }
 0xba8   :  { %v1588_v61 = vmul.f32 %v1585_v59, %v1576_v51  ;;  %v1594_v62 = vrot.slane %v1585_v59, %v4732_v18 }
 0xbaa   :  { %v1589_v63 = vsub.f32 %v1587_v60, %v1588_v61  ;;  %v1596_v2 = vmul.f32 %v1594_v62, %v1562_v37 }
 0xbac   :  { %v1601_v3 = vrot.slane %v1589_v63, %v4732_v18 }
 0xbae   :  { %v1603_v4 = vadd.f32 %v1601_v3, %v1596_v2  ;;  %v1881_v3 = vld [vmem:[#allocation6 + $0x680] sm:$0xff] }
 0xbb0   :  { %3640 = vmatmul.mubr.f32.vlgmr.msra.gmra.mrb[10].mxu1 %v1603_v4  ;;  %v1882_v4 = vld [vmem:[#allocation6 + $0x688] sm:$0xff] }
 0xbb1   :  { %3709 = vmatprep.mubr.msk.f32.mxu1 %vm4605_vm0, %v4606_v1  ;;  %v4235_v5 = vpack.c.bf16 %v1882_v4, %v1881_v3  ;;  %v2021_v4 = vld [vmem:[#allocation6 + $0x710] sm:$0xff] }
 0xbb3   :  { %4236 = vmatpush3.bf16.msra.mxu1 %v4235_v5  ;;  %v2022_v5 = vld [vmem:[#allocation6 + $0x718] sm:$0xff] }
 0xbb4   :  { %4237 = vmatprep.subr.bf16.mxu1 %v4604_v0  ;;  %v4262_v6 = vpack.c.bf16 %v2022_v5, %v2021_v4  ;;  %v2161_v5 = vld [vmem:[#allocation6 + $0x7a0] sm:$0xff] }
 0xbb7   :  { %4239 = vmatpush3.bf16.msra.mxu1 %v4238_v8  ;;  %v2024_v8 = vld [vmem:[#allocation6 + $0x728] sm:$0xff] }
 0xbb8   :  { %4240 = vmatprep.subr.bf16.mxu1 %v4604_v0  ;;  %v4265_v9 = vpack.c.bf16 %v2024_v8, %v2023_v7  ;;  %v2163_v8 = vld [vmem:[#allocation6 + $0x7b0] sm:$0xff] }
 0xbbb   :  { %4242 = vmatpush3.bf16.msra.mxu1 %v4241_v11  ;;  %v2026_v11 = vld [vmem:[#allocation6 + $0x738] sm:$0xff] }
 0xbbc   :  { %4243 = vmatprep.subr.bf16.mxu1 %v4604_v0  ;;  %v4268_v12 = vpack.c.bf16 %v2026_v11, %v2025_v10  ;;  %v2165_v11 = vld [vmem:[#allocation6 + $0x7c0] sm:$0xff] }
 0xbbf   :  { %4245 = vmatpush3.bf16.msra.mxu1 %v4244_v14  ;;  %v2028_v14 = vld [vmem:[#allocation6 + $0x748] sm:$0xff] }
 0xbc0   :  { %4246 = vmatprep.subr.bf16.mxu1 %v4604_v0  ;;  %v4271_v15 = vpack.c.bf16 %v2028_v14, %v2027_v13  ;;  %v2167_v14 = vld [vmem:[#allocation6 + $0x7d0] sm:$0xff] }
 0xbc3   :  { %4248 = vmatpush3.bf16.msra.mxu1 %v4247_v17  ;;  %v2030_v17 = vld [vmem:[#allocation6 + $0x758] sm:$0xff] }
 0xbc4   :  { %4249 = vmatprep.subr.bf16.mxu1 %v4604_v0  ;;  %v4274_v19 = vpack.c.bf16 %v2030_v17, %v2029_v16  ;;  %v2169_v17 = vld [vmem:[#allocation6 + $0x7e0] sm:$0xff] }
 0xbc7   :  { %4251 = vmatpush3.bf16.msra.mxu1 %v4250_v21  ;;  %v2032_v21 = vld [vmem:[#allocation6 + $0x768] sm:$0xff] }
 0xbc8   :  { %4252 = vmatprep.subr.bf16.mxu1 %v4604_v0  ;;  %v4277_v22 = vpack.c.bf16 %v2032_v21, %v2031_v20  ;;  %v2171_v21 = vld [vmem:[#allocation6 + $0x7f0] sm:$0xff] }
 0xbcb   :  { %4254 = vmatpush3.bf16.msra.mxu1 %v4253_v24  ;;  %v2034_v24 = vld [vmem:[#allocation6 + $0x778] sm:$0xff] }
 0xbcc   :  { %4255 = vmatprep.subr.bf16.mxu1 %v4604_v0  ;;  %v4280_v25 = vpack.c.bf16 %v2034_v24, %v2033_v23  ;;  %v2876_v24 = vld [vmem:[#allocation8 + $0xe] ss:$0 sm:$0xff] }
 0xbcf   :  { %4257 = vmatpush3.bf16.msra.mxu1 %v4256_v27 }
 0xbd0   :  { %4282 = vmatprep.subr.bf16.mxu1 %v4604_v0 }
 0xc83   :  { %v1695_v31 = vpop.f32.mrb[10].mxu1 }
 0xc84   :  { %v1696_v32 = vadd.f32 %v2873_v30, %v1695_v31  ;;  %v3641_v33 = vpop.f32.mrb[11].mxu1 }
 0xc86   :  { %v1699_v34 = vmul.f32 0.01, %v1696_v32 }
 0xc88   :  { %v1700_v35 = vmax.f32 %v1696_v32, %v1699_v34 }
 0xc8a   :  { %v1701_v36 = vrot.slane %v1700_v35, 4  ;;  %v1707_v37 = vmul.f32 %v1700_v35, %v1700_v35 }
 0xc8c   :  { %v1702_v38 = vadd.f32 %v1701_v36, %v1700_v35  ;;  %v1708_v39 = vrot.slane %v1707_v37, 4 }
 0xc8e   :  { %v1703_v40 = vrot.slane %v1702_v38, 2  ;;  %v1709_v41 = vadd.f32 %v1708_v39, %v1707_v37 }
 0xc90   :  { %v1704_v42 = vadd.f32 %v1703_v40, %v1702_v38  ;;  %v1710_v43 = vrot.slane %v1709_v41, 2 }
 0xc92   :  { %v1705_v44 = vrot.slane %v1704_v42, 1  ;;  %v1711_v45 = vadd.f32 %v1710_v43, %v1709_v41 }
 0xc94   :  { %v1706_v46 = vadd.f32 %v1705_v44, %v1704_v42  ;;  %v1712_v47 = vrot.slane %v1711_v45, 1 }
 0xc96   :  { %v1713_v48 = vadd.f32 %v1712_v47, %v1711_v45  ;;  %v1714_v49 = vmul.f32 0.125, %v1706_v46 }
 0xc98   :  { %v1715_v50 = vmul.f32 0.125, %v1713_v48  ;;  %v1716_v51 = vmul.f32 %v1714_v49, %v1714_v49 }
 0xc9a   :  { %v1717_v52 = vsub.f32 %v1715_v50, %v1716_v51 }
 0xc9c   :  { %v1718_v53 = vmax.f32 %v1717_v52, 0.0 }
 0xc9e   :  { %v1719_v54 = vadd.f32 1e-05, %v1718_v53  ;;  %v1860_v53 = vld [vmem:[#allocation9 + $0xc] sm:$0x1] }
 0xca0   :  { %4437 = vrsqrt.f32 %v1719_v54 }
 0xcaa   :  { %v4438_v56 = vpop.eup %4437 }
 0xcab   :  { %v1723_v57 = vmul.f32 %v4438_v56, %v1722_v55  ;;  %v1863_v56 = vld [vmem:[#allocation11 + $0xc] sm:$0x1] }
 0xcad   :  { %v1726_v59 = vmul.f32 %v1723_v57, %v1714_v49  ;;  %v1732_v60 = vrot.slane %v1723_v57, %v4732_v18 }
 0xcaf   :  { %v1727_v61 = vsub.f32 %v1725_v58, %v1726_v59  ;;  %v1734_v62 = vmul.f32 %v1732_v60, %v1700_v35 }
 0xcb1   :  { %v1739_v63 = vrot.slane %v1727_v61, %v4732_v18 }
 0xcb3   :  { %v1741_v2 = vadd.f32 %v1739_v63, %v1734_v62  ;;  %v2019_v63 = vld [vmem:[#allocation6 + $0x700] sm:$0xff] }
 0xcb5   :  { %3675 = vmatmul.mubr.f32.vlgmr.msra.gmra.mrb[12].mxu0 %v1741_v2  ;;  %v2020_v2 = vld [vmem:[#allocation6 + $0x708] sm:$0xff] }
 0xcb6   :  { %3744 = vmatprep.mubr.msk.f32.mxu0 %vm4605_vm0, %v4606_v1  ;;  %v4259_v3 = vpack.c.bf16 %v2020_v2, %v2019_v63  ;;  %v2159_v2 = vld [vmem:[#allocation6 + $0x790] sm:$0xff] }
 0xcb8   :  { %4260 = vmatpush3.bf16.msra.mxu0 %v4259_v3  ;;  %v2160_v3 = vld [vmem:[#allocation6 + $0x798] sm:$0xff] }
 0xcb9   :  { %4261 = vmatprep.subr.bf16.mxu0 %v4604_v0  ;;  %v4286_v4 = vpack.c.bf16 %v2160_v3, %v2159_v2  ;;  %v2299_v3 = vld [vmem:[#allocation6 + $0x820] sm:$0xff] }
 0xcbc   :  { %4263 = vmatpush3.bf16.msra.mxu0 %v4262_v6  ;;  %v2162_v6 = vld [vmem:[#allocation6 + $0x7a8] sm:$0xff] }
 0xcbd   :  { %4264 = vmatprep.subr.bf16.mxu0 %v4604_v0  ;;  %v4289_v7 = vpack.c.bf16 %v2162_v6, %v2161_v5  ;;  %v2301_v6 = vld [vmem:[#allocation6 + $0x830] sm:$0xff] }
 0xcc0   :  { %4266 = vmatpush3.bf16.msra.mxu0 %v4265_v9  ;;  %v2164_v9 = vld [vmem:[#allocation6 + $0x7b8] sm:$0xff] }
 0xcc1   :  { %4267 = vmatprep.subr.bf16.mxu0 %v4604_v0  ;;  %v4292_v10 = vpack.c.bf16 %v2164_v9, %v2163_v8  ;;  %v2303_v9 = vld [vmem:[#allocation6 + $0x840] sm:$0xff] }
 0xcc4   :  { %4269 = vmatpush3.bf16.msra.mxu0 %v4268_v12  ;;  %v2166_v12 = vld [vmem:[#allocation6 + $0x7c8] sm:$0xff] }
 0xcc5   :  { %4270 = vmatprep.subr.bf16.mxu0 %v4604_v0  ;;  %v4295_v13 = vpack.c.bf16 %v2166_v12, %v2165_v11  ;;  %v2305_v12 = vld [vmem:[#allocation6 + $0x850] sm:$0xff] }
 0xcc8   :  { %4272 = vmatpush3.bf16.msra.mxu0 %v4271_v15  ;;  %v2168_v15 = vld [vmem:[#allocation6 + $0x7d8] sm:$0xff] }
 0xcc9   :  { %4273 = vmatprep.subr.bf16.mxu0 %v4604_v0  ;;  %v4298_v16 = vpack.c.bf16 %v2168_v15, %v2167_v14  ;;  %v2307_v15 = vld [vmem:[#allocation6 + $0x860] sm:$0xff] }
 0xccc   :  { %4275 = vmatpush3.bf16.msra.mxu0 %v4274_v19  ;;  %v2170_v19 = vld [vmem:[#allocation6 + $0x7e8] sm:$0xff] }
 0xccd   :  { %4276 = vmatprep.subr.bf16.mxu0 %v4604_v0  ;;  %v4301_v20 = vpack.c.bf16 %v2170_v19, %v2169_v17  ;;  %v2309_v19 = vld [vmem:[#allocation6 + $0x870] sm:$0xff] }
 0xcd0   :  { %4278 = vmatpush3.bf16.msra.mxu0 %v4277_v22  ;;  %v2172_v22 = vld [vmem:[#allocation6 + $0x7f8] sm:$0xff] }
 0xcd1   :  { %4279 = vmatprep.subr.bf16.mxu0 %v4604_v0  ;;  %v4304_v23 = vpack.c.bf16 %v2172_v22, %v2171_v21  ;;  %v2877_v22 = vld [vmem:[#allocation8 + $0xf] ss:$0 sm:$0xff] }
 0xcd4   :  { %4281 = vmatpush3.bf16.msra.mxu0 %v4280_v25 }
 0xcd5   :  { %4306 = vmatprep.subr.bf16.mxu0 %v4604_v0 }
 0xd88   :  { %v1833_v29 = vpop.f32.mrb[12].mxu0 }
 0xd89   :  { %v1834_v30 = vadd.f32 %v2874_v28, %v1833_v29  ;;  %v3676_v31 = vpop.f32.mrb[13].mxu0 }
 0xd8b   :  { %v1837_v32 = vmul.f32 0.01, %v1834_v30 }
 0xd8d   :  { %v1838_v33 = vmax.f32 %v1834_v30, %v1837_v32 }
 0xd8f   :  { %v1839_v34 = vrot.slane %v1838_v33, 4  ;;  %v1845_v35 = vmul.f32 %v1838_v33, %v1838_v33 }
 0xd91   :  { %v1840_v36 = vadd.f32 %v1839_v34, %v1838_v33  ;;  %v1846_v37 = vrot.slane %v1845_v35, 4 }
 0xd93   :  { %v1841_v38 = vrot.slane %v1840_v36, 2  ;;  %v1847_v39 = vadd.f32 %v1846_v37, %v1845_v35 }
 0xd95   :  { %v1842_v40 = vadd.f32 %v1841_v38, %v1840_v36  ;;  %v1848_v41 = vrot.slane %v1847_v39, 2 }
 0xd97   :  { %v1843_v42 = vrot.slane %v1842_v40, 1  ;;  %v1849_v43 = vadd.f32 %v1848_v41, %v1847_v39 }
 0xd99   :  { %v1844_v44 = vadd.f32 %v1843_v42, %v1842_v40  ;;  %v1850_v45 = vrot.slane %v1849_v43, 1 }
 0xd9b   :  { %v1851_v46 = vadd.f32 %v1850_v45, %v1849_v43  ;;  %v1852_v47 = vmul.f32 0.125, %v1844_v44 }
 0xd9d   :  { %v1853_v48 = vmul.f32 0.125, %v1851_v46  ;;  %v1854_v49 = vmul.f32 %v1852_v47, %v1852_v47 }
 0xd9f   :  { %v1855_v50 = vsub.f32 %v1853_v48, %v1854_v49 }
 0xda1   :  { %v1856_v51 = vmax.f32 %v1855_v50, 0.0 }
 0xda3   :  { %v1857_v52 = vadd.f32 1e-05, %v1856_v51  ;;  %v1998_v51 = vld [vmem:[#allocation9 + $0xd] sm:$0x1] }
 0xda5   :  { %4439 = vrsqrt.f32 %v1857_v52 }
 0xdaf   :  { %v4440_v54 = vpop.eup %4439 }
 0xdb0   :  { %v1861_v55 = vmul.f32 %v4440_v54, %v1860_v53  ;;  %v2001_v54 = vld [vmem:[#allocation11 + $0xd] sm:$0x1] }
 0xdb2   :  { %v1864_v57 = vmul.f32 %v1861_v55, %v1852_v47  ;;  %v1870_v58 = vrot.slane %v1861_v55, %v4732_v18 }
 0xdb4   :  { %v1865_v59 = vsub.f32 %v1863_v56, %v1864_v57  ;;  %v1872_v60 = vmul.f32 %v1870_v58, %v1838_v33 }
 0xdb6   :  { %v1877_v61 = vrot.slane %v1865_v59, %v4732_v18 }
 0xdb8   :  { %v1879_v62 = vadd.f32 %v1877_v61, %v1872_v60  ;;  %v2157_v61 = vld [vmem:[#allocation6 + $0x780] sm:$0xff] }
 0xdba   :  { %3710 = vmatmul.mubr.f32.vlgmr.msra.gmra.mrb[12].mxu1 %v1879_v62  ;;  %v2158_v62 = vld [vmem:[#allocation6 + $0x788] sm:$0xff] }
 0xdbb   :  { %3779 = vmatprep.mubr.msk.f32.mxu1 %vm4605_vm0, %v4606_v1  ;;  %v4283_v63 = vpack.c.bf16 %v2158_v62, %v2157_v61  ;;  %v2297_v62 = vld [vmem:[#allocation6 + $0x810] sm:$0xff] }
 0xdbd   :  { %4284 = vmatpush3.bf16.msra.mxu1 %v4283_v63  ;;  %v2298_v63 = vld [vmem:[#allocation6 + $0x818] sm:$0xff] }
 0xdbe   :  { %4285 = vmatprep.subr.bf16.mxu1 %v4604_v0  ;;  %v4310_v2 = vpack.c.bf16 %v2298_v63, %v2297_v62  ;;  %v2437_v63 = vld [vmem:[#allocation6 + $0x8a0] sm:$0xff] }
 0xdc1   :  { %4287 = vmatpush3.bf16.msra.mxu1 %v4286_v4  ;;  %v2300_v4 = vld [vmem:[#allocation6 + $0x828] sm:$0xff] }
 0xdc2   :  { %4288 = vmatprep.subr.bf16.mxu1 %v4604_v0  ;;  %v4313_v5 = vpack.c.bf16 %v2300_v4, %v2299_v3  ;;  %v2439_v4 = vld [vmem:[#allocation6 + $0x8b0] sm:$0xff] }
 0xdc5   :  { %4290 = vmatpush3.bf16.msra.mxu1 %v4289_v7  ;;  %v2302_v7 = vld [vmem:[#allocation6 + $0x838] sm:$0xff] }
 0xdc6   :  { %4291 = vmatprep.subr.bf16.mxu1 %v4604_v0  ;;  %v4316_v8 = vpack.c.bf16 %v2302_v7, %v2301_v6  ;;  %v2441_v7 = vld [vmem:[#allocation6 + $0x8c0] sm:$0xff] }
 0xdc9   :  { %4293 = vmatpush3.bf16.msra.mxu1 %v4292_v10  ;;  %v2304_v10 = vld [vmem:[#allocation6 + $0x848] sm:$0xff] }
 0xdca   :  { %4294 = vmatprep.subr.bf16.mxu1 %v4604_v0  ;;  %v4319_v11 = vpack.c.bf16 %v2304_v10, %v2303_v9  ;;  %v2443_v10 = vld [vmem:[#allocation6 + $0x8d0] sm:$0xff] }
 0xdcd   :  { %4296 = vmatpush3.bf16.msra.mxu1 %v4295_v13  ;;  %v2306_v13 = vld [vmem:[#allocation6 + $0x858] sm:$0xff] }
 0xdce   :  { %4297 = vmatprep.subr.bf16.mxu1 %v4604_v0  ;;  %v4322_v14 = vpack.c.bf16 %v2306_v13, %v2305_v12  ;;  %v2445_v13 = vld [vmem:[#allocation6 + $0x8e0] sm:$0xff] }
 0xdd1   :  { %4299 = vmatpush3.bf16.msra.mxu1 %v4298_v16  ;;  %v2308_v16 = vld [vmem:[#allocation6 + $0x868] sm:$0xff] }
 0xdd2   :  { %4300 = vmatprep.subr.bf16.mxu1 %v4604_v0  ;;  %v4325_v17 = vpack.c.bf16 %v2308_v16, %v2307_v15  ;;  %v2447_v16 = vld [vmem:[#allocation6 + $0x8f0] sm:$0xff] }
 0xdd5   :  { %4302 = vmatpush3.bf16.msra.mxu1 %v4301_v20  ;;  %v2310_v20 = vld [vmem:[#allocation6 + $0x878] sm:$0xff] }
 0xdd6   :  { %4303 = vmatprep.subr.bf16.mxu1 %v4604_v0  ;;  %v4328_v21 = vpack.c.bf16 %v2310_v20, %v2309_v19  ;;  %v2878_v20 = vld [vmem:[#allocation8 + $0x10] ss:$0 sm:$0xff] }
 0xdd9   :  { %4305 = vmatpush3.bf16.msra.mxu1 %v4304_v23 }
 0xdda   :  { %4330 = vmatprep.subr.bf16.mxu1 %v4604_v0 }
 0xe8d   :  { %v1971_v27 = vpop.f32.mrb[12].mxu1 }
 0xe8e   :  { %v1972_v28 = vadd.f32 %v2875_v26, %v1971_v27  ;;  %v3711_v29 = vpop.f32.mrb[13].mxu1 }
 0xe90   :  { %v1975_v30 = vmul.f32 0.01, %v1972_v28 }
 0xe92   :  { %v1976_v31 = vmax.f32 %v1972_v28, %v1975_v30 }
 0xe94   :  { %v1977_v32 = vrot.slane %v1976_v31, 4  ;;  %v1983_v33 = vmul.f32 %v1976_v31, %v1976_v31 }
 0xe96   :  { %v1978_v34 = vadd.f32 %v1977_v32, %v1976_v31  ;;  %v1984_v35 = vrot.slane %v1983_v33, 4 }
 0xe98   :  { %v1979_v36 = vrot.slane %v1978_v34, 2  ;;  %v1985_v37 = vadd.f32 %v1984_v35, %v1983_v33 }
 0xe9a   :  { %v1980_v38 = vadd.f32 %v1979_v36, %v1978_v34  ;;  %v1986_v39 = vrot.slane %v1985_v37, 2 }
 0xe9c   :  { %v1981_v40 = vrot.slane %v1980_v38, 1  ;;  %v1987_v41 = vadd.f32 %v1986_v39, %v1985_v37 }
 0xe9e   :  { %v1982_v42 = vadd.f32 %v1981_v40, %v1980_v38  ;;  %v1988_v43 = vrot.slane %v1987_v41, 1 }
 0xea0   :  { %v1989_v44 = vadd.f32 %v1988_v43, %v1987_v41  ;;  %v1990_v45 = vmul.f32 0.125, %v1982_v42 }
 0xea2   :  { %v1991_v46 = vmul.f32 0.125, %v1989_v44  ;;  %v1992_v47 = vmul.f32 %v1990_v45, %v1990_v45 }
 0xea4   :  { %v1993_v48 = vsub.f32 %v1991_v46, %v1992_v47 }
 0xea6   :  { %v1994_v49 = vmax.f32 %v1993_v48, 0.0 }
 0xea8   :  { %v1995_v50 = vadd.f32 1e-05, %v1994_v49  ;;  %v2136_v49 = vld [vmem:[#allocation9 + $0xe] sm:$0x1] }
 0xeaa   :  { %4441 = vrsqrt.f32 %v1995_v50 }
 0xeb4   :  { %v4442_v52 = vpop.eup %4441 }
 0xeb5   :  { %v1999_v53 = vmul.f32 %v4442_v52, %v1998_v51  ;;  %v2139_v52 = vld [vmem:[#allocation11 + $0xe] sm:$0x1] }
 0xeb7   :  { %v2002_v55 = vmul.f32 %v1999_v53, %v1990_v45  ;;  %v2008_v56 = vrot.slane %v1999_v53, %v4732_v18 }
 0xeb9   :  { %v2003_v57 = vsub.f32 %v2001_v54, %v2002_v55  ;;  %v2010_v58 = vmul.f32 %v2008_v56, %v1976_v31 }
 0xebb   :  { %v2015_v59 = vrot.slane %v2003_v57, %v4732_v18 }
 0xebd   :  { %v2017_v60 = vadd.f32 %v2015_v59, %v2010_v58  ;;  %v2295_v59 = vld [vmem:[#allocation6 + $0x800] sm:$0xff] }
 0xebf   :  { %3745 = vmatmul.mubr.f32.vlgmr.msra.gmra.mrb[14].mxu0 %v2017_v60  ;;  %v2296_v60 = vld [vmem:[#allocation6 + $0x808] sm:$0xff] }
 0xec0   :  { %3814 = vmatprep.mubr.msk.f32.mxu0 %vm4605_vm0, %v4606_v1  ;;  %v4307_v61 = vpack.c.bf16 %v2296_v60, %v2295_v59  ;;  %v2435_v60 = vld [vmem:[#allocation6 + $0x890] sm:$0xff] }
 0xec2   :  { %4308 = vmatpush3.bf16.msra.mxu0 %v4307_v61  ;;  %v2436_v61 = vld [vmem:[#allocation6 + $0x898] sm:$0xff] }
 0xec3   :  { %4309 = vmatprep.subr.bf16.mxu0 %v4604_v0  ;;  %v4334_v62 = vpack.c.bf16 %v2436_v61, %v2435_v60  ;;  %v2575_v61 = vld [vmem:[#allocation6 + $0x920] sm:$0xff] }
 0xec6   :  { %4311 = vmatpush3.bf16.msra.mxu0 %v4310_v2  ;;  %v2438_v2 = vld [vmem:[#allocation6 + $0x8a8] sm:$0xff] }
 0xec7   :  { %4312 = vmatprep.subr.bf16.mxu0 %v4604_v0  ;;  %v4337_v3 = vpack.c.bf16 %v2438_v2, %v2437_v63  ;;  %v2577_v2 = vld [vmem:[#allocation6 + $0x930] sm:$0xff] }
 0xeca   :  { %4314 = vmatpush3.bf16.msra.mxu0 %v4313_v5  ;;  %v2440_v5 = vld [vmem:[#allocation6 + $0x8b8] sm:$0xff] }
 0xecb   :  { %4315 = vmatprep.subr.bf16.mxu0 %v4604_v0  ;;  %v4340_v6 = vpack.c.bf16 %v2440_v5, %v2439_v4  ;;  %v2579_v4 = vld [vmem:[#allocation6 + $0x940] sm:$0xff]  ;;  %v2580_v5 = vld [vmem:[#allocation6 + $0x948] sm:$0xff] }
 0xece   :  { %4317 = vmatpush3.bf16.msra.mxu0 %v4316_v8  ;;  %v2442_v8 = vld [vmem:[#allocation6 + $0x8c8] sm:$0xff] }
 0xecf   :  { %4318 = vmatprep.subr.bf16.mxu0 %v4604_v0  ;;  %v4343_v9 = vpack.c.bf16 %v2442_v8, %v2441_v7  ;;  %v2581_v7 = vld [vmem:[#allocation6 + $0x950] sm:$0xff]  ;;  %v2582_v8 = vld [vmem:[#allocation6 + $0x958] sm:$0xff] }
 0xed2   :  { %4320 = vmatpush3.bf16.msra.mxu0 %v4319_v11  ;;  %v2444_v11 = vld [vmem:[#allocation6 + $0x8d8] sm:$0xff] }
 0xed3   :  { %4321 = vmatprep.subr.bf16.mxu0 %v4604_v0  ;;  %v4346_v12 = vpack.c.bf16 %v2444_v11, %v2443_v10  ;;  %v2583_v10 = vld [vmem:[#allocation6 + $0x960] sm:$0xff]  ;;  %v2584_v11 = vld [vmem:[#allocation6 + $0x968] sm:$0xff] }
 0xed6   :  { %4323 = vmatpush3.bf16.msra.mxu0 %v4322_v14  ;;  %v2446_v14 = vld [vmem:[#allocation6 + $0x8e8] sm:$0xff] }
 0xed7   :  { %4324 = vmatprep.subr.bf16.mxu0 %v4604_v0  ;;  %v4349_v15 = vpack.c.bf16 %v2446_v14, %v2445_v13  ;;  %v2585_v13 = vld [vmem:[#allocation6 + $0x970] sm:$0xff]  ;;  %v2586_v14 = vld [vmem:[#allocation6 + $0x978] sm:$0xff] }
 0xeda   :  { %4326 = vmatpush3.bf16.msra.mxu0 %v4325_v17  ;;  %v2448_v17 = vld [vmem:[#allocation6 + $0x8f8] sm:$0xff] }
 0xedb   :  { %4327 = vmatprep.subr.bf16.mxu0 %v4604_v0  ;;  %v4352_v19 = vpack.c.bf16 %v2448_v17, %v2447_v16  ;;  %v2879_v16 = vld [vmem:[#allocation8 + $0x11] ss:$0 sm:$0xff] }
 0xede   :  { %4329 = vmatpush3.bf16.msra.mxu0 %v4328_v21 }
 0xedf   :  { %4354 = vmatprep.subr.bf16.mxu0 %v4604_v0 }
 0xf92   :  { %v2109_v25 = vpop.f32.mrb[14].mxu0 }
 0xf93   :  { %v2110_v26 = vadd.f32 %v2876_v24, %v2109_v25  ;;  %v3746_v27 = vpop.f32.mrb[15].mxu0 }
 0xf95   :  { %v2113_v28 = vmul.f32 0.01, %v2110_v26 }
 0xf97   :  { %v2114_v29 = vmax.f32 %v2110_v26, %v2113_v28 }
 0xf99   :  { %v2115_v30 = vrot.slane %v2114_v29, 4  ;;  %v2121_v31 = vmul.f32 %v2114_v29, %v2114_v29 }
 0xf9b   :  { %v2116_v32 = vadd.f32 %v2115_v30, %v2114_v29  ;;  %v2122_v33 = vrot.slane %v2121_v31, 4 }
 0xf9d   :  { %v2117_v34 = vrot.slane %v2116_v32, 2  ;;  %v2123_v35 = vadd.f32 %v2122_v33, %v2121_v31 }
 0xf9f   :  { %v2118_v36 = vadd.f32 %v2117_v34, %v2116_v32  ;;  %v2124_v37 = vrot.slane %v2123_v35, 2 }
 0xfa1   :  { %v2119_v38 = vrot.slane %v2118_v36, 1  ;;  %v2125_v39 = vadd.f32 %v2124_v37, %v2123_v35 }
 0xfa3   :  { %v2120_v40 = vadd.f32 %v2119_v38, %v2118_v36  ;;  %v2126_v41 = vrot.slane %v2125_v39, 1 }
 0xfa5   :  { %v2127_v42 = vadd.f32 %v2126_v41, %v2125_v39  ;;  %v2128_v43 = vmul.f32 0.125, %v2120_v40 }
 0xfa7   :  { %v2129_v44 = vmul.f32 0.125, %v2127_v42  ;;  %v2130_v45 = vmul.f32 %v2128_v43, %v2128_v43 }
 0xfa9   :  { %v2131_v46 = vsub.f32 %v2129_v44, %v2130_v45 }
 0xfab   :  { %v2132_v47 = vmax.f32 %v2131_v46, 0.0 }
 0xfad   :  { %v2133_v48 = vadd.f32 1e-05, %v2132_v47  ;;  %v2274_v47 = vld [vmem:[#allocation9 + $0xf] sm:$0x1] }
 0xfaf   :  { %4443 = vrsqrt.f32 %v2133_v48 }
 0xfb9   :  { %v4444_v50 = vpop.eup %4443 }
 0xfba   :  { %v2137_v51 = vmul.f32 %v4444_v50, %v2136_v49  ;;  %v2277_v50 = vld [vmem:[#allocation11 + $0xf] sm:$0x1] }
 0xfbc   :  { %v2140_v53 = vmul.f32 %v2137_v51, %v2128_v43  ;;  %v2146_v54 = vrot.slane %v2137_v51, %v4732_v18 }
 0xfbe   :  { %v2141_v55 = vsub.f32 %v2139_v52, %v2140_v53  ;;  %v2148_v56 = vmul.f32 %v2146_v54, %v2114_v29 }
 0xfc0   :  { %v2153_v57 = vrot.slane %v2141_v55, %v4732_v18 }
 0xfc2   :  { %v2155_v58 = vadd.f32 %v2153_v57, %v2148_v56  ;;  %v2433_v57 = vld [vmem:[#allocation6 + $0x880] sm:$0xff] }
 0xfc4   :  { %3780 = vmatmul.mubr.f32.vlgmr.msra.gmra.mrb[14].mxu1 %v2155_v58  ;;  %v2434_v58 = vld [vmem:[#allocation6 + $0x888] sm:$0xff] }
 0xfc5   :  { %3849 = vmatprep.mubr.msk.f32.mxu1 %vm4605_vm0, %v4606_v1  ;;  %v4331_v59 = vpack.c.bf16 %v2434_v58, %v2433_v57  ;;  %v2573_v58 = vld [vmem:[#allocation6 + $0x910] sm:$0xff] }
 0xfc7   :  { %4332 = vmatpush3.bf16.msra.mxu1 %v4331_v59  ;;  %v2574_v59 = vld [vmem:[#allocation6 + $0x918] sm:$0xff] }
 0xfc8   :  { %4333 = vmatprep.subr.bf16.mxu1 %v4604_v0  ;;  %v4358_v60 = vpack.c.bf16 %v2574_v59, %v2573_v58  ;;  %v2713_v58 = vld [vmem:[#allocation6 + $0x9a0] sm:$0xff]  ;;  %v2714_v59 = vld [vmem:[#allocation6 + $0x9a8] sm:$0xff] }
 0xfcb   :  { %4335 = vmatpush3.bf16.msra.mxu1 %v4334_v62  ;;  %v2576_v62 = vld [vmem:[#allocation6 + $0x928] sm:$0xff] }
 0xfcc   :  { %4336 = vmatprep.subr.bf16.mxu1 %v4604_v0  ;;  %v4361_v63 = vpack.c.bf16 %v2576_v62, %v2575_v61  ;;  %v2715_v61 = vld [vmem:[#allocation6 + $0x9b0] sm:$0xff]  ;;  %v2716_v62 = vld [vmem:[#allocation6 + $0x9b8] sm:$0xff] }
 0xfcf   :  { %4338 = vmatpush3.bf16.msra.mxu1 %v4337_v3 }
 0xfd0   :  { %4339 = vmatprep.subr.bf16.mxu1 %v4604_v0 }
 0xfd3   :  { %4341 = vmatpush3.bf16.msra.mxu1 %v4340_v6  ;;  %v4367_v6 = vpack.c.bf16 %v2580_v5, %v2579_v4  ;;  %v2719_v4 = vld [vmem:[#allocation6 + $0x9d0] sm:$0xff]  ;;  %v2720_v5 = vld [vmem:[#allocation6 + $0x9d8] sm:$0xff] }
 0xfd4   :  { %4342 = vmatprep.subr.bf16.mxu1 %v4604_v0 }
 0xfd7   :  { %4344 = vmatpush3.bf16.msra.mxu1 %v4343_v9  ;;  %v4370_v9 = vpack.c.bf16 %v2582_v8, %v2581_v7  ;;  %v2721_v7 = vld [vmem:[#allocation6 + $0x9e0] sm:$0xff]  ;;  %v2722_v8 = vld [vmem:[#allocation6 + $0x9e8] sm:$0xff] }
 0xfd8   :  { %4345 = vmatprep.subr.bf16.mxu1 %v4604_v0 }
 0xfdb   :  { %4347 = vmatpush3.bf16.msra.mxu1 %v4346_v12  ;;  %v4373_v12 = vpack.c.bf16 %v2584_v11, %v2583_v10  ;;  %v2723_v10 = vld [vmem:[#allocation6 + $0x9f0] sm:$0xff]  ;;  %v2724_v11 = vld [vmem:[#allocation6 + $0x9f8] sm:$0xff] }
 0xfdc   :  { %4348 = vmatprep.subr.bf16.mxu1 %v4604_v0 }
 0xfdf   :  { %4350 = vmatpush3.bf16.msra.mxu1 %v4349_v15  ;;  %v4376_v15 = vpack.c.bf16 %v2586_v14, %v2585_v13  ;;  %v2880_v13 = vld [vmem:[#allocation8 + $0x12] ss:$0 sm:$0xff] }
 0xfe0   :  { %4351 = vmatprep.subr.bf16.mxu1 %v4604_v0 }
 0xfe3   :  { %4353 = vmatpush3.bf16.msra.mxu1 %v4352_v19 }
 0xfe4   :  { %4378 = vmatprep.subr.bf16.mxu1 %v4604_v0 }
0x1097   :  { %v2247_v23 = vpop.f32.mrb[14].mxu1 }
0x1098   :  { %v2248_v24 = vadd.f32 %v2877_v22, %v2247_v23  ;;  %v3781_v25 = vpop.f32.mrb[15].mxu1 }
0x109a   :  { %v2251_v26 = vmul.f32 0.01, %v2248_v24 }
0x109c   :  { %v2252_v27 = vmax.f32 %v2248_v24, %v2251_v26 }
0x109e   :  { %v2253_v28 = vrot.slane %v2252_v27, 4  ;;  %v2259_v29 = vmul.f32 %v2252_v27, %v2252_v27 }
0x10a0   :  { %v2254_v30 = vadd.f32 %v2253_v28, %v2252_v27  ;;  %v2260_v31 = vrot.slane %v2259_v29, 4 }
0x10a2   :  { %v2255_v32 = vrot.slane %v2254_v30, 2  ;;  %v2261_v33 = vadd.f32 %v2260_v31, %v2259_v29 }
0x10a4   :  { %v2256_v34 = vadd.f32 %v2255_v32, %v2254_v30  ;;  %v2262_v35 = vrot.slane %v2261_v33, 2 }
0x10a6   :  { %v2257_v36 = vrot.slane %v2256_v34, 1  ;;  %v2263_v37 = vadd.f32 %v2262_v35, %v2261_v33 }
0x10a8   :  { %v2258_v38 = vadd.f32 %v2257_v36, %v2256_v34  ;;  %v2264_v39 = vrot.slane %v2263_v37, 1 }
0x10aa   :  { %v2265_v40 = vadd.f32 %v2264_v39, %v2263_v37  ;;  %v2266_v41 = vmul.f32 0.125, %v2258_v38 }
0x10ac   :  { %v2267_v42 = vmul.f32 0.125, %v2265_v40  ;;  %v2268_v43 = vmul.f32 %v2266_v41, %v2266_v41 }
0x10ae   :  { %v2269_v44 = vsub.f32 %v2267_v42, %v2268_v43 }
0x10b0   :  { %v2270_v45 = vmax.f32 %v2269_v44, 0.0 }
0x10b2   :  { %v2271_v46 = vadd.f32 1e-05, %v2270_v45  ;;  %v2412_v45 = vld [vmem:[#allocation9 + $0x10] sm:$0x1] }
0x10b4   :  { %4445 = vrsqrt.f32 %v2271_v46 }
0x10be   :  { %v4446_v48 = vpop.eup %4445 }
0x10bf   :  { %v2275_v49 = vmul.f32 %v4446_v48, %v2274_v47  ;;  %v2415_v48 = vld [vmem:[#allocation11 + $0x10] sm:$0x1] }
0x10c1   :  { %v2278_v51 = vmul.f32 %v2275_v49, %v2266_v41  ;;  %v2284_v52 = vrot.slane %v2275_v49, %v4732_v18 }
0x10c3   :  { %v2279_v53 = vsub.f32 %v2277_v50, %v2278_v51  ;;  %v2286_v54 = vmul.f32 %v2284_v52, %v2252_v27 }
0x10c5   :  { %v2291_v55 = vrot.slane %v2279_v53, %v4732_v18 }
0x10c7   :  { %v2293_v56 = vadd.f32 %v2291_v55, %v2286_v54  ;;  %v2571_v55 = vld [vmem:[#allocation6 + $0x900] sm:$0xff] }
0x10c9   :  { %3815 = vmatmul.mubr.f32.vlgmr.msra.gmra.mrb[16].mxu0 %v2293_v56  ;;  %v2572_v56 = vld [vmem:[#allocation6 + $0x908] sm:$0xff] }
0x10ca   :  { %3884 = vmatprep.mubr.msk.f32.mxu0 %vm4605_vm0, %v4606_v1  ;;  %v4355_v57 = vpack.c.bf16 %v2572_v56, %v2571_v55  ;;  %v2711_v55 = vld [vmem:[#allocation6 + $0x990] sm:$0xff]  ;;  %v2712_v56 = vld [vmem:[#allocation6 + $0x998] sm:$0xff] }
0x10cc   :  { %4356 = vmatpush3.bf16.msra.mxu0 %v4355_v57  ;;  %v4382_v57 = vpack.c.bf16 %v2712_v56, %v2711_v55 }
0x10cd   :  { %4357 = vmatprep.subr.bf16.mxu0 %v4604_v0 }
0x10d0   :  { %4359 = vmatpush3.bf16.msra.mxu0 %v4358_v60  ;;  %v4385_v60 = vpack.c.bf16 %v2714_v59, %v2713_v58 }
0x10d1   :  { %4360 = vmatprep.subr.bf16.mxu0 %v4604_v0 }
0x10d4   :  { %4362 = vmatpush3.bf16.msra.mxu0 %v4361_v63  ;;  %v4388_v63 = vpack.c.bf16 %v2716_v62, %v2715_v61 }
0x10d5   :  { %4363 = vmatprep.subr.bf16.mxu0 %v4604_v0 }
0x119c   :  { %v2385_v21 = vpop.f32.mrb[16].mxu0 }
0x119d   :  { %v2386_v22 = vadd.f32 %v2878_v20, %v2385_v21  ;;  %v3816_v23 = vpop.f32.mrb[17].mxu0 }
0x119f   :  { %v2389_v24 = vmul.f32 0.01, %v2386_v22 }
0x11a1   :  { %v2390_v25 = vmax.f32 %v2386_v22, %v2389_v24 }
0x11a3   :  { %v2391_v26 = vrot.slane %v2390_v25, 4  ;;  %v2397_v27 = vmul.f32 %v2390_v25, %v2390_v25 }
0x11a5   :  { %v2392_v28 = vadd.f32 %v2391_v26, %v2390_v25  ;;  %v2398_v29 = vrot.slane %v2397_v27, 4 }
0x11a7   :  { %v2393_v30 = vrot.slane %v2392_v28, 2  ;;  %v2399_v31 = vadd.f32 %v2398_v29, %v2397_v27 }
0x11a9   :  { %v2394_v32 = vadd.f32 %v2393_v30, %v2392_v28  ;;  %v2400_v33 = vrot.slane %v2399_v31, 2 }
0x11ab   :  { %v2395_v34 = vrot.slane %v2394_v32, 1  ;;  %v2401_v35 = vadd.f32 %v2400_v33, %v2399_v31 }
0x11ad   :  { %v2396_v36 = vadd.f32 %v2395_v34, %v2394_v32  ;;  %v2402_v37 = vrot.slane %v2401_v35, 1 }
0x11af   :  { %v2403_v38 = vadd.f32 %v2402_v37, %v2401_v35  ;;  %v2404_v39 = vmul.f32 0.125, %v2396_v36 }
0x11b1   :  { %v2405_v40 = vmul.f32 0.125, %v2403_v38  ;;  %v2406_v41 = vmul.f32 %v2404_v39, %v2404_v39 }
0x11b3   :  { %v2407_v42 = vsub.f32 %v2405_v40, %v2406_v41 }
0x11b5   :  { %v2408_v43 = vmax.f32 %v2407_v42, 0.0  ;;  %v2550_v42 = vld [vmem:[#allocation9 + $0x11] sm:$0x1] }
0x11b7   :  { %v2409_v44 = vadd.f32 1e-05, %v2408_v43 }
0x11b9   :  { %4447 = vrsqrt.f32 %v2409_v44 }
0x11c3   :  { %v4448_v46 = vpop.eup %4447 }
0x11c4   :  { %v2413_v47 = vmul.f32 %v4448_v46, %v2412_v45  ;;  %v2553_v45 = vld [vmem:[#allocation11 + $0x11] sm:$0x1] }
0x11c6   :  { %v2416_v49 = vmul.f32 %v2413_v47, %v2404_v39  ;;  %v2422_v50 = vrot.slane %v2413_v47, %v4732_v18 }
0x11c8   :  { %v2417_v51 = vsub.f32 %v2415_v48, %v2416_v49  ;;  %v2424_v52 = vmul.f32 %v2422_v50, %v2390_v25 }
0x11ca   :  { %v2429_v53 = vrot.slane %v2417_v51, %v4732_v18 }
0x11cc   :  { %v2431_v54 = vadd.f32 %v2429_v53, %v2424_v52  ;;  %v2709_v52 = vld [vmem:[#allocation6 + $0x980] sm:$0xff]  ;;  %v2710_v53 = vld [vmem:[#allocation6 + $0x988] sm:$0xff] }
0x11ce   :  { %3850 = vmatmul.mubr.f32.vlgmr.msra.gmra.mrb[16].mxu1 %v2431_v54  ;;  %v4379_v54 = vpack.c.bf16 %v2710_v53, %v2709_v52 }
0x11cf   :  { %3919 = vmatprep.mubr.msk.f32.mxu1 %vm4605_vm0, %v4606_v1  ;;  %v2578_v1 = vld [vmem:[#allocation6 + $0x938] sm:$0xff] }
0x11d0   :  { %v4364_v3 = vpack.c.bf16 %v2578_v1, %v2577_v2  ;;  %4380 = vmatpush3.bf16.msra.mxu1 %v4379_v54  ;;  %v2717_v2 = vld [vmem:[#allocation6 + $0x9c0] sm:$0xff]  ;;  %v2718_v1 = vld [vmem:[#allocation6 + $0x9c8] sm:$0xff] }
0x11d1   :  { %4381 = vmatprep.subr.bf16.mxu1 %v4604_v0 }
0x11d2   :  { %4365 = vmatpush3.bf16.msra.mxu0 %v4364_v3  ;;  %v4391_v3 = vpack.c.bf16 %v2718_v1, %v2717_v2 }
0x11d3   :  { %4366 = vmatprep.subr.bf16.mxu0 %v4604_v0 }
0x11d4   :  { %4383 = vmatpush3.bf16.msra.mxu1 %v4382_v57 }
0x11d5   :  { %4384 = vmatprep.subr.bf16.mxu1 %v4604_v0 }
0x11d6   :  { %4368 = vmatpush3.bf16.msra.mxu0 %v4367_v6  ;;  %v4394_v6 = vpack.c.bf16 %v2720_v5, %v2719_v4 }
0x11d7   :  { %4369 = vmatprep.subr.bf16.mxu0 %v4604_v0 }
0x11d8   :  { %4386 = vmatpush3.bf16.msra.mxu1 %v4385_v60 }
0x11d9   :  { %4387 = vmatprep.subr.bf16.mxu1 %v4604_v0 }
0x11da   :  { %4371 = vmatpush3.bf16.msra.mxu0 %v4370_v9  ;;  %v4397_v9 = vpack.c.bf16 %v2722_v8, %v2721_v7  ;;  %v2824_v8 = vld [vmem:[#allocation9 + $0x13] sm:$0x1] }
0x11db   :  { %4372 = vmatprep.subr.bf16.mxu0 %v4604_v0 }
0x11dc   :  { %4389 = vmatpush3.bf16.msra.mxu1 %v4388_v63 }
0x11dd   :  { %4390 = vmatprep.subr.bf16.mxu1 %v4604_v0 }
0x11de   :  { %4374 = vmatpush3.bf16.msra.mxu0 %v4373_v12  ;;  %v4400_v12 = vpack.c.bf16 %v2724_v11, %v2723_v10  ;;  %v2827_v11 = vld [vmem:[#allocation11 + $0x13] sm:$0x1] }
0x11df   :  { %4375 = vmatprep.subr.bf16.mxu0 %v4604_v0 }
0x11e0   :  { %4392 = vmatpush3.bf16.msra.mxu1 %v4391_v3 }
0x11e1   :  { %4393 = vmatprep.subr.bf16.mxu1 %v4604_v0 }
0x11e2   :  { %4377 = vmatpush3.bf16.msra.mxu0 %v4376_v15 }
0x11e4   :  { %4395 = vmatpush3.bf16.msra.mxu1 %v4394_v6 }
0x11e5   :  { %4396 = vmatprep.subr.bf16.mxu1 %v4604_v0 }
0x11e8   :  { %4398 = vmatpush3.bf16.msra.mxu1 %v4397_v9 }
0x11e9   :  { %4399 = vmatprep.subr.bf16.mxu1 %v4604_v0 }
0x11ec   :  { %4401 = vmatpush3.bf16.msra.mxu1 %v4400_v12 }
0x12a1   :  { %v2523_v17 = vpop.f32.mrb[16].mxu1 }
0x12a2   :  { %v2524_v19 = vadd.f32 %v2879_v16, %v2523_v17  ;;  %v3851_v20 = vpop.f32.mrb[17].mxu1 }
0x12a4   :  { %v2527_v21 = vmul.f32 0.01, %v2524_v19 }
0x12a6   :  { %v2528_v22 = vmax.f32 %v2524_v19, %v2527_v21 }
0x12a8   :  { %v2529_v23 = vrot.slane %v2528_v22, 4  ;;  %v2535_v24 = vmul.f32 %v2528_v22, %v2528_v22 }
0x12aa   :  { %v2530_v25 = vadd.f32 %v2529_v23, %v2528_v22  ;;  %v2536_v26 = vrot.slane %v2535_v24, 4 }
0x12ac   :  { %v2531_v27 = vrot.slane %v2530_v25, 2  ;;  %v2537_v28 = vadd.f32 %v2536_v26, %v2535_v24 }
0x12ae   :  { %v2532_v29 = vadd.f32 %v2531_v27, %v2530_v25  ;;  %v2538_v30 = vrot.slane %v2537_v28, 2 }
0x12b0   :  { %v2533_v31 = vrot.slane %v2532_v29, 1  ;;  %v2539_v32 = vadd.f32 %v2538_v30, %v2537_v28 }
0x12b2   :  { %v2534_v33 = vadd.f32 %v2533_v31, %v2532_v29  ;;  %v2540_v34 = vrot.slane %v2539_v32, 1 }
0x12b4   :  { %v2541_v35 = vadd.f32 %v2540_v34, %v2539_v32  ;;  %v2542_v36 = vmul.f32 0.125, %v2534_v33 }
0x12b6   :  { %v2543_v37 = vmul.f32 0.125, %v2541_v35  ;;  %v2544_v38 = vmul.f32 %v2542_v36, %v2542_v36 }
0x12b8   :  { %v2545_v39 = vsub.f32 %v2543_v37, %v2544_v38  ;;  %v2688_v38 = vld [vmem:[#allocation9 + $0x12] sm:$0x1] }
0x12ba   :  { %v2546_v40 = vmax.f32 %v2545_v39, 0.0 }
0x12bc   :  { %v2547_v41 = vadd.f32 1e-05, %v2546_v40 }
0x12be   :  { %4449 = vrsqrt.f32 %v2547_v41  ;;  %v2691_v41 = vld [vmem:[#allocation11 + $0x12] sm:$0x1] }
0x12c8   :  { %v4450_v43 = vpop.eup %4449 }
0x12c9   :  { %v2551_v44 = vmul.f32 %v4450_v43, %v2550_v42 }
0x12cb   :  { %v2554_v46 = vmul.f32 %v2551_v44, %v2542_v36  ;;  %v2560_v47 = vrot.slane %v2551_v44, %v4732_v18 }
0x12cd   :  { %v2555_v48 = vsub.f32 %v2553_v45, %v2554_v46  ;;  %v2562_v49 = vmul.f32 %v2560_v47, %v2528_v22 }
0x12cf   :  { %v2567_v50 = vrot.slane %v2555_v48, %v4732_v18  ;;  %v2881_v48 = vld [vmem:[#allocation8 + $0x13] ss:$0 sm:$0xff] }
0x12d1   :  { %v2569_v51 = vadd.f32 %v2567_v50, %v2562_v49 }
0x12d3   :  { %3885 = vmatmul.mubr.f32.vlgmr.msra.gmra.mrb[18].mxu0 %v2569_v51 }
0x13a6   :  { %v2661_v14 = vpop.f32.mrb[18].mxu0 }
0x13a7   :  { %v2662_v15 = vadd.f32 %v2880_v13, %v2661_v14  ;;  %v3886_v16 = vpop.f32.mrb[19].mxu0 }
0x13a9   :  { %v2665_v17 = vmul.f32 0.01, %v2662_v15 }
0x13ab   :  { %v2666_v19 = vmax.f32 %v2662_v15, %v2665_v17 }
0x13ad   :  { %v2667_v20 = vrot.slane %v2666_v19, 4  ;;  %v2673_v21 = vmul.f32 %v2666_v19, %v2666_v19 }
0x13af   :  { %v2668_v22 = vadd.f32 %v2667_v20, %v2666_v19  ;;  %v2674_v23 = vrot.slane %v2673_v21, 4 }
0x13b1   :  { %v2669_v24 = vrot.slane %v2668_v22, 2  ;;  %v2675_v25 = vadd.f32 %v2674_v23, %v2673_v21 }
0x13b3   :  { %v2670_v26 = vadd.f32 %v2669_v24, %v2668_v22  ;;  %v2676_v27 = vrot.slane %v2675_v25, 2 }
0x13b5   :  { %v2671_v28 = vrot.slane %v2670_v26, 1  ;;  %v2677_v29 = vadd.f32 %v2676_v27, %v2675_v25 }
0x13b7   :  { %v2672_v30 = vadd.f32 %v2671_v28, %v2670_v26  ;;  %v2678_v31 = vrot.slane %v2677_v29, 1 }
0x13b9   :  { %v2679_v0 = vadd.f32 %v2678_v31, %v2677_v29  ;;  %v2680_v32 = vmul.f32 0.125, %v2672_v30 }
0x13bb   :  { %v2681_v33 = vmul.f32 0.125, %v2679_v0  ;;  %v2682_v34 = vmul.f32 %v2680_v32, %v2680_v32 }
0x13bd   :  { %v2683_v35 = vsub.f32 %v2681_v33, %v2682_v34 }
0x13bf   :  { %v2684_v36 = vmax.f32 %v2683_v35, 0.0 }
0x13c1   :  { %v2685_v37 = vadd.f32 1e-05, %v2684_v36 }
0x13c3   :  { %4451 = vrsqrt.f32 %v2685_v37 }
0x13cd   :  { %v4452_v39 = vpop.eup %4451 }
0x13ce   :  { %v2689_v40 = vmul.f32 %v4452_v39, %v2688_v38 }
0x13d0   :  { %v2692_v42 = vmul.f32 %v2689_v40, %v2680_v32  ;;  %v2698_v43 = vrot.slane %v2689_v40, %v4732_v18 }
0x13d2   :  { %v2693_v44 = vsub.f32 %v2691_v41, %v2692_v42  ;;  %v2700_v45 = vmul.f32 %v2698_v43, %v2666_v19 }
0x13d4   :  { %v2705_v46 = vrot.slane %v2693_v44, %v4732_v18 }
0x13d6   :  { %v2707_v47 = vadd.f32 %v2705_v46, %v2700_v45 }
0x13d8   :  { %3920 = vmatmul.mubr.f32.vlgmr.msra.gmra.mrb[18].mxu1 %v2707_v47 }
0x14ab   :  { %v2799_v49 = vpop.f32.mrb[18].mxu1 }
0x14ac   :  { %v2800_v50 = vadd.f32 %v2881_v48, %v2799_v49  ;;  %v3921_v51 = vpop.f32.mrb[19].mxu1 }
0x14ae   :  { %v2803_v52 = vrot.slane %v2800_v50, 4  ;;  %v2809_v53 = vmul.f32 %v2800_v50, %v2800_v50 }
0x14b0   :  { %v2804_v54 = vadd.f32 %v2803_v52, %v2800_v50  ;;  %v2810_v55 = vrot.slane %v2809_v53, 4 }
0x14b2   :  { %v2805_v56 = vrot.slane %v2804_v54, 2  ;;  %v2811_v57 = vadd.f32 %v2810_v55, %v2809_v53 }
0x14b4   :  { %v2806_v58 = vadd.f32 %v2805_v56, %v2804_v54  ;;  %v2812_v59 = vrot.slane %v2811_v57, 2 }
0x14b6   :  { %v2807_v60 = vrot.slane %v2806_v58, 1  ;;  %v2813_v61 = vadd.f32 %v2812_v59, %v2811_v57 }
0x14b8   :  { %v2814_v62 = vrot.slane %v2813_v61, 1  ;;  %v2808_v63 = vadd.f32 %v2807_v60, %v2806_v58 }
0x14ba   :  { %v2815_v2 = vadd.f32 %v2814_v62, %v2813_v61  ;;  %v2816_v1 = vmul.f32 0.125, %v2808_v63 }
0x14bc   :  { %v2817_v3 = vmul.f32 0.125, %v2815_v2  ;;  %v2818_v4 = vmul.f32 %v2816_v1, %v2816_v1 }
0x14be   :  { %v2819_v5 = vsub.f32 %v2817_v3, %v2818_v4 }
0x14c0   :  { %v2820_v6 = vmax.f32 %v2819_v5, 0.0 }
0x14c2   :  { %v2821_v7 = vadd.f32 1e-05, %v2820_v6 }
0x14c4   :  { %4453 = vrsqrt.f32 %v2821_v7 }
0x14ce   :  { %v4454_v9 = vpop.eup %4453 }
0x14cf   :  { %v2825_v10 = vmul.f32 %v4454_v9, %v2824_v8 }
0x14d1   :  { %v2828_v12 = vmul.f32 %v2825_v10, %v2816_v1  ;;  %v2834_v13 = vrot.slane %v2825_v10, %v4732_v18 }
0x14d3   :  { %v2829_v14 = vsub.f32 %v2827_v11, %v2828_v12  ;;  %v2836_v15 = vmul.f32 %v2834_v13, %v2800_v50 }
0x14d5   :  { %v2841_v16 = vrot.slane %v2829_v14, %v4732_v18 }
0x14d7   :  { %v2843_v17 = vadd.f32 %v2841_v16, %v2836_v15 }
0x14d9   :  { %2844 = vst [vmem:[#allocation12] sm:$0xff] %v2843_v17 }
0x14da   :  { %4576 = shalt.err (!%p4573_p2)
}
0x14db   :  { %s4577_s30 = scalar_lea.hbm %s4967_s5, 128 }
0x14dc   :  { %p4578_p3 = scmp.ne.s32.totalorder %s4967_s5, %s4577_s30  ;;  %p4581_p4 = scmp.lt.u32.totalorder %s4577_s30, %s4967_s5 }
0x14de   :  { %p4583_p5 = pnand %p4581_p4, %p4578_p3 }
0x14e0   :  { %4586 = shalt.err (!%p4583_p5)
}
0x14e1   :  { %2854 = dma.vmem_to_hbm [thread:$0]  %s2852_s18, 128, %s4967_s5, [#allocation5]  }
0x14e2   :  { %4593 = dma.done.wait [#allocation5], 128  }
0x14e3   :  { %4594 = vsyncadd [#allocation5], 4294967168 }
0x14e4   :  { %2858 = vsyncpa [#allocation4], 1 }
0x14e5   :  { %2859 = vsyncpa [#allocation7], 1 }
0x14e6   :  { %2860 = vsyncpa [#allocation10], 1 }
0x14e7   :  { %2861 = vsyncpa [#allocation5], 1 }

</bundles_post_ra>
